<compile_context>
chip_gen: v7x
topology: tpu7x:2x2x1
jax: 0.10.0
libtpu: 0.0.40
codegen_flags: <defaults>
</compile_context>

<pallas_src>
import jax
import jax.numpy as jnp
from jax.experimental import pallas as pl
from jax.experimental.pallas import tpu as pltpu


def _round_up(x, m):
    return (x + m - 1) // m * m


def _ceil_div(a, b):
    return (a + b - 1) // b


def _pick_tile_b(batch, max_tile_b=1024):
    """Chip-aware batch tile: 1 big tile on single-TC chips, >=2 tiles on v7x."""
    try:
        kind = jax.devices()[0].device_kind.lower()
    except Exception:  # pragma: no cover - backend probe failure
        kind = ""
    min_tiles = 2 if "7" in kind else 1  # v7x has 2 TensorCores per chip
    n_tiles = max(min_tiles, _ceil_div(batch, max_tile_b))
    # Multiple of 16: bf16 packs 16 rows per sublane group (avoids relayouts).
    return _round_up(_ceil_div(batch, n_tiles), 16)


def _mlp_kernel(x_ref, w1_ref, b1_ref, w2_ref, b2_ref, o_ref):
    # Cast x to bf16 in-kernel (saves a separate XLA pad/cast pass over HBM).
    x = x_ref[...].astype(jnp.bfloat16)
    # fc1: bf16 operands, f32 accumulation on the MXU.
    h = jnp.dot(x, w1_ref[...], preferred_element_type=jnp.float32)
    # Bias + ReLU in f32 on the VPU (v5e has no bf16 VALU).
    h = jnp.maximum(h + b1_ref[...], 0.0)
    # fc2: cast activation to bf16 only at the matmul boundary.
    y = jnp.dot(h.astype(w2_ref.dtype), w2_ref[...],
                preferred_element_type=jnp.float32)
    # Lane-dense (128-padded), bf16 store: unmasked vst, half the writeback.
    o_ref[...] = (y + b2_ref[...]).astype(o_ref.dtype)


def prepare_params(w1, b1, w2, b2):
    """One-time parameter prep (do at load time, NOT per forward call).

    w1: (D_in, H), b1: (1, H), w2: (H, D_out), b2: (1, D_out).
    Pads the output-feature dim to a multiple of 128 (lane-dense output) with
    zeros and casts matmul operands to bf16 / biases to f32.
    """
    out_size = w2.shape[1]
    n_pad = _round_up(out_size, 128)
    if n_pad != out_size:
        w2 = jnp.pad(w2, ((0, 0), (0, n_pad - out_size)))
        b2 = jnp.pad(b2, ((0, 0), (0, n_pad - out_size)))
    return {
        "w1": w1.astype(jnp.bfloat16),
        "b1": b1.astype(jnp.float32),
        "w2": w2.astype(jnp.bfloat16),
        "b2": b2.astype(jnp.float32),
        "out_size": out_size,
    }


def mlp_forward(x, params, *, max_tile_b=1024, out_dtype=jnp.bfloat16):
    """x: (B, D_in) float32. Returns (B, D_out) logits in `out_dtype`.

    Equals relu(x @ w1 + b1) @ w2 + b2 computed with bf16 matmul inputs and
    f32 accumulation.
    """
    w1, b1, w2, b2 = params["w1"], params["b1"], params["w2"], params["b2"]
    out_size = params["out_size"]

    B, d_in = x.shape
    h_dim = w1.shape[1]
    n_pad = w2.shape[1]

    tile_b = _pick_tile_b(B, max_tile_b)
    b_pad = _round_up(B, tile_b)
    if b_pad != B:
        # Only for ragged batches (no-op here). Padded rows [B:b_pad] compute
        # relu(b1) @ w2 + b2 "garbage"; they are sliced off below and must not
        # be consumed if this slice is ever removed.
        x = jnp.pad(x, ((0, b_pad - B), (0, 0)))

    grid = (b_pad // tile_b,)
    flops = 2 * b_pad * (d_in * h_dim + h_dim * n_pad)
    bytes_accessed = (b_pad * d_in * 4          # x (f32 in)
                      + w1.size * 2 + w2.size * 2
                      + b1.size * 4 + b2.size * 4
                      + b_pad * n_pad * jnp.dtype(out_dtype).itemsize)

    def _run(use_buffered):
        def resident(shape):
            # Constant index_map -> block never re-DMA'd; single buffer is
            # enough (halves resident-weight VMEM at real model sizes).
            if use_buffered:
                return pl.BlockSpec(shape, lambda i: (0, 0),
                                    pipeline_mode=pl.Buffered(1))
            return pl.BlockSpec(shape, lambda i: (0, 0))

        in_specs = [
            pl.BlockSpec((tile_b, d_in), lambda i: (i, 0)),  # x: tiled on batch
            resident((d_in, h_dim)),                         # w1
            resident((1, h_dim)),                            # b1
            resident((h_dim, n_pad)),                        # w2
            resident((1, n_pad)),                            # b2
        ]
        return pl.pallas_call(
            _mlp_kernel,
            out_shape=jax.ShapeDtypeStruct((b_pad, n_pad), out_dtype),
            grid=grid,
            in_specs=in_specs,
            out_specs=pl.BlockSpec((tile_b, n_pad), lambda i: (i, 0)),
            compiler_params=pltpu.CompilerParams(
                dimension_semantics=("parallel",)),
            cost_estimate=pl.CostEstimate(
                flops=flops, bytes_accessed=bytes_accessed, transcendentals=0),
        )(x, w1, b1, w2, b2)

    try:
        out = _run(True)
    except Exception:
        # pipeline_mode=Buffered(1) unsupported in this jax build: use defaults.
        out = _run(False)

    # Un-pad batch rows and output columns (for serving, keep the padded
    # lane-dense array and slice lazily at the consumer instead).
    return out[:B, :out_size]


def init_params(key, input_size, hidden_size, output_size):
    """Deterministic PyTorch-style init: U(-1/sqrt(fan_in), 1/sqrt(fan_in)).

    Weights are stored pre-transposed as (in_features, out_features) so the
    kernel computes y = x @ W + b (same math as PyTorch's x @ W.T)."""
    k1, k2, k3, k4 = jax.random.split(key, 4)
    bound1 = 1.0 / (input_size ** 0.5)
    bound2 = 1.0 / (hidden_size ** 0.5)
    w1 = jax.random.uniform(k1, (input_size, hidden_size), jnp.float32,
                            -bound1, bound1)
    b1 = jax.random.uniform(k2, (1, hidden_size), jnp.float32, -bound1, bound1)
    w2 = jax.random.uniform(k3, (hidden_size, output_size), jnp.float32,
                            -bound2, bound2)
    b2 = jax.random.uniform(k4, (1, output_size), jnp.float32, -bound2, bound2)
    return w1, b1, w2, b2


if __name__ == "__main__":
    # MNIST MLP: input=784, hidden=128, output=10, batch=256.
    # v5e/v6e -> one 256-row tile (grid=(1,)); v7x -> two 128-row tiles.
    batch, input_size, hidden_size, output_size = 256, 784, 128, 10

    key = jax.random.PRNGKey(0)
    kx, kp = jax.random.split(key)
    x = jax.random.normal(kx, (batch, input_size), dtype=jnp.float32)
    w1, b1, w2, b2 = init_params(kp, input_size, hidden_size, output_size)

    params = prepare_params(w1, b1, w2, b2)  # one-time, load-time prep
    out = mlp_forward(x, params)
    out = jax.block_until_ready(out)

    # Pure-JAX reference with the same bf16-matmul / f32-accumulate recipe.
    xb, w1b, w2b = (a.astype(jnp.bfloat16) for a in (x, w1, w2))
    h_ref = jnp.maximum(
        jnp.dot(xb, w1b, preferred_element_type=jnp.float32) + b1, 0.0)
    ref = jnp.dot(h_ref.astype(jnp.bfloat16), w2b,
                  preferred_element_type=jnp.float32) + b2

    assert out.shape == (batch, output_size)
    assert jnp.allclose(out.astype(jnp.float32), ref, atol=3e-2, rtol=3e-2)

    print("KERNEL_OK")
</pallas_src>

<mosaic_0001>
module attributes {stable_mosaic.version = 11 : i64} {
  func.func @_mlp_kernel(%arg0: i32, %arg1: memref<256x784xf32, #tpu.memory_space<vmem>>, %arg2: memref<784x128xbf16, #tpu.memory_space<vmem>>, %arg3: memref<1x128xf32, #tpu.memory_space<vmem>>, %arg4: memref<128x128xbf16, #tpu.memory_space<vmem>>, %arg5: memref<1x128xf32, #tpu.memory_space<vmem>>, %arg6: memref<256x128xbf16, #tpu.memory_space<vmem>>) attributes {dimension_semantics = [#tpu.dimension_semantics<parallel>], iteration_bounds = array<i64: 1>, scalar_prefetch = 0 : i64, scratch_operands = 0 : i64, tpu.core_type = #tpu.core_type<tc>, window_params = [{transform_indices = @transform_0, window_bounds = array<i64: 256, 784>}, {pipeline_mode = #tpu.pipeline_mode<synchronous>, transform_indices = @transform_1, window_bounds = array<i64: 784, 128>}, {pipeline_mode = #tpu.pipeline_mode<synchronous>, transform_indices = @transform_2, window_bounds = array<i64: 1, 128>}, {pipeline_mode = #tpu.pipeline_mode<synchronous>, transform_indices = @transform_3, window_bounds = array<i64: 128, 128>}, {pipeline_mode = #tpu.pipeline_mode<synchronous>, transform_indices = @transform_4, window_bounds = array<i64: 1, 128>}, {transform_indices = @transform_5, window_bounds = array<i64: 256, 128>}]} {
    %c0 = arith.constant 0 : index
    %c0_0 = arith.constant 0 : index
    %0 = vector.load %arg1[%c0, %c0_0] : memref<256x784xf32, #tpu.memory_space<vmem>>, vector<256x784xf32>
    %1 = arith.truncf %0 : vector<256x784xf32> to vector<256x784xbf16>
    %c0_1 = arith.constant 0 : index
    %c0_2 = arith.constant 0 : index
    %2 = vector.load %arg2[%c0_1, %c0_2] : memref<784x128xbf16, #tpu.memory_space<vmem>>, vector<784x128xbf16>
    %cst = arith.constant dense<0.000000e+00> : vector<256x128xf32>
    %3 = tpu.matmul %1, %2, %cst {dimension_numbers = #tpu.dot_dimension_numbers<[1], [0], [0], [1], [0, 0, 1, 1], [], []>} : vector<256x784xbf16>, vector<784x128xbf16>, vector<256x128xf32> -> vector<256x128xf32>
    %c0_3 = arith.constant 0 : index
    %c0_4 = arith.constant 0 : index
    %4 = vector.load %arg3[%c0_3, %c0_4] : memref<1x128xf32, #tpu.memory_space<vmem>>, vector<1x128xf32>
    %5 = vector.broadcast %4 : vector<1x128xf32> to vector<256x128xf32>
    %6 = arith.addf %3, %5 : vector<256x128xf32>
    %cst_5 = arith.constant 0.000000e+00 : f32
    %7 = vector.broadcast %cst_5 : f32 to vector<256x128xf32>
    %8 = arith.maximumf %6, %7 : vector<256x128xf32>
    %9 = arith.truncf %8 : vector<256x128xf32> to vector<256x128xbf16>
    %c0_6 = arith.constant 0 : index
    %c0_7 = arith.constant 0 : index
    %10 = vector.load %arg4[%c0_6, %c0_7] : memref<128x128xbf16, #tpu.memory_space<vmem>>, vector<128x128xbf16>
    %cst_8 = arith.constant dense<0.000000e+00> : vector<256x128xf32>
    %11 = tpu.matmul %9, %10, %cst_8 {dimension_numbers = #tpu.dot_dimension_numbers<[1], [0], [0], [1], [0, 0, 1, 1], [], []>} : vector<256x128xbf16>, vector<128x128xbf16>, vector<256x128xf32> -> vector<256x128xf32>
    %c0_9 = arith.constant 0 : index
    %c0_10 = arith.constant 0 : index
    %12 = vector.load %arg5[%c0_9, %c0_10] : memref<1x128xf32, #tpu.memory_space<vmem>>, vector<1x128xf32>
    %13 = vector.broadcast %12 : vector<1x128xf32> to vector<256x128xf32>
    %14 = arith.addf %11, %13 : vector<256x128xf32>
    %15 = arith.truncf %14 : vector<256x128xf32> to vector<256x128xbf16>
    %c0_11 = arith.constant 0 : index
    %c0_12 = arith.constant 0 : index
    %16 = vector.load %arg6[%c0_11, %c0_12] : memref<256x128xbf16, #tpu.memory_space<vmem>>, vector<256x128xbf16>
    tpu.vector_store %arg6[%c0_11, %c0_12], %15 {strides = array<i32>} : memref<256x128xbf16, #tpu.memory_space<vmem>>, vector<256x128xbf16>,
    return
  }
  func.func @transform_0(%arg0: i32) -> (i32, i32) {
    %c0_i32 = arith.constant 0 : i32
    %c0_i32_0 = arith.constant 0 : i32
    return %arg0, %c0_i32 : i32, i32
  }
  func.func @transform_1(%arg0: i32) -> (i32, i32) {
    %c0_i32 = arith.constant 0 : i32
    %c0_i32_0 = arith.constant 0 : i32
    %c0_i32_1 = arith.constant 0 : i32
    return %c0_i32, %c0_i32_0 : i32, i32
  }
  func.func @transform_2(%arg0: i32) -> (i32, i32) {
    %c0_i32 = arith.constant 0 : i32
    %c0_i32_0 = arith.constant 0 : i32
    %c0_i32_1 = arith.constant 0 : i32
    return %c0_i32, %c0_i32_0 : i32, i32
  }
  func.func @transform_3(%arg0: i32) -> (i32, i32) {
    %c0_i32 = arith.constant 0 : i32
    %c0_i32_0 = arith.constant 0 : i32
    %c0_i32_1 = arith.constant 0 : i32
    return %c0_i32, %c0_i32_0 : i32, i32
  }
  func.func @transform_4(%arg0: i32) -> (i32, i32) {
    %c0_i32 = arith.constant 0 : i32
    %c0_i32_0 = arith.constant 0 : i32
    %c0_i32_1 = arith.constant 0 : i32
    return %c0_i32, %c0_i32_0 : i32, i32
  }
  func.func @transform_5(%arg0: i32) -> (i32, i32) {
    %c0_i32 = arith.constant 0 : i32
    %c0_i32_0 = arith.constant 0 : i32
    return %arg0, %c0_i32 : i32, i32
  }
}

module attributes {stable_mosaic.version = 11 : i64} {
  func.func @_mlp_kernel(%arg0: i32, %arg1: memref<256x784xf32, #tpu.memory_space<vmem>>, %arg2: memref<784x128xbf16, #tpu.memory_space<vmem>>, %arg3: memref<1x128xf32, #tpu.memory_space<vmem>>, %arg4: memref<128x128xbf16, #tpu.memory_space<vmem>>, %arg5: memref<1x128xf32, #tpu.memory_space<vmem>>, %arg6: memref<256x128xbf16, #tpu.memory_space<vmem>>) attributes {dimension_semantics = [#tpu.dimension_semantics<parallel>], iteration_bounds = array<i64: 1>, scalar_prefetch = 0 : i64, scratch_operands = 0 : i64, tpu.core_type = #tpu.core_type<tc>, window_params = [{transform_indices = @transform_0, window_bounds = array<i64: 256, 784>}, {pipeline_mode = #tpu.pipeline_mode<synchronous>, transform_indices = @transform_1, window_bounds = array<i64: 784, 128>}, {pipeline_mode = #tpu.pipeline_mode<synchronous>, transform_indices = @transform_2, window_bounds = array<i64: 1, 128>}, {pipeline_mode = #tpu.pipeline_mode<synchronous>, transform_indices = @transform_3, window_bounds = array<i64: 128, 128>}, {pipeline_mode = #tpu.pipeline_mode<synchronous>, transform_indices = @transform_4, window_bounds = array<i64: 1, 128>}, {transform_indices = @transform_5, window_bounds = array<i64: 256, 128>}]} {
    %c0 = arith.constant 0 : index
    %c0_0 = arith.constant 0 : index
    %0 = vector.load %arg1[%c0, %c0_0] : memref<256x784xf32, #tpu.memory_space<vmem>>, vector<256x784xf32>
    %1 = arith.truncf %0 : vector<256x784xf32> to vector<256x784xbf16>
    %c0_1 = arith.constant 0 : index
    %c0_2 = arith.constant 0 : index
    %2 = vector.load %arg2[%c0_1, %c0_2] : memref<784x128xbf16, #tpu.memory_space<vmem>>, vector<784x128xbf16>
    %cst = arith.constant dense<0.000000e+00> : vector<256x128xf32>
    %3 = tpu.matmul %1, %2, %cst {dimension_numbers = #tpu.dot_dimension_numbers<[1], [0], [0], [1], [0, 0, 1, 1], [], []>} : vector<256x784xbf16>, vector<784x128xbf16>, vector<256x128xf32> -> vector<256x128xf32>
    %c0_3 = arith.constant 0 : index
    %c0_4 = arith.constant 0 : index
    %4 = vector.load %arg3[%c0_3, %c0_4] : memref<1x128xf32, #tpu.memory_space<vmem>>, vector<1x128xf32>
    %5 = vector.broadcast %4 : vector<1x128xf32> to vector<256x128xf32>
    %6 = arith.addf %3, %5 : vector<256x128xf32>
    %cst_5 = arith.constant 0.000000e+00 : f32
    %7 = vector.broadcast %cst_5 : f32 to vector<256x128xf32>
    %8 = arith.maximumf %6, %7 : vector<256x128xf32>
    %9 = arith.truncf %8 : vector<256x128xf32> to vector<256x128xbf16>
    %c0_6 = arith.constant 0 : index
    %c0_7 = arith.constant 0 : index
    %10 = vector.load %arg4[%c0_6, %c0_7] : memref<128x128xbf16, #tpu.memory_space<vmem>>, vector<128x128xbf16>
    %cst_8 = arith.constant dense<0.000000e+00> : vector<256x128xf32>
    %11 = tpu.matmul %9, %10, %cst_8 {dimension_numbers = #tpu.dot_dimension_numbers<[1], [0], [0], [1], [0, 0, 1, 1], [], []>} : vector<256x128xbf16>, vector<128x128xbf16>, vector<256x128xf32> -> vector<256x128xf32>
    %c0_9 = arith.constant 0 : index
    %c0_10 = arith.constant 0 : index
    %12 = vector.load %arg5[%c0_9, %c0_10] : memref<1x128xf32, #tpu.memory_space<vmem>>, vector<1x128xf32>
    %13 = vector.broadcast %12 : vector<1x128xf32> to vector<256x128xf32>
    %14 = arith.addf %11, %13 : vector<256x128xf32>
    %15 = arith.truncf %14 : vector<256x128xf32> to vector<256x128xbf16>
    %c0_11 = arith.constant 0 : index
    %c0_12 = arith.constant 0 : index
    %16 = vector.load %arg6[%c0_11, %c0_12] : memref<256x128xbf16, #tpu.memory_space<vmem>>, vector<256x128xbf16>
    tpu.vector_store %arg6[%c0_11, %c0_12], %15 {strides = array<i32>} : memref<256x128xbf16, #tpu.memory_space<vmem>>, vector<256x128xbf16>,
    return
  }
  func.func @transform_0(%arg0: i32) -> (i32, i32) {
    %c0_i32 = arith.constant 0 : i32
    %c0_i32_0 = arith.constant 0 : i32
    return %arg0, %c0_i32 : i32, i32
  }
  func.func @transform_1(%arg0: i32) -> (i32, i32) {
    %c0_i32 = arith.constant 0 : i32
    %c0_i32_0 = arith.constant 0 : i32
    %c0_i32_1 = arith.constant 0 : i32
    return %c0_i32, %c0_i32_0 : i32, i32
  }
  func.func @transform_2(%arg0: i32) -> (i32, i32) {
    %c0_i32 = arith.constant 0 : i32
    %c0_i32_0 = arith.constant 0 : i32
    %c0_i32_1 = arith.constant 0 : i32
    return %c0_i32, %c0_i32_0 : i32, i32
  }
  func.func @transform_3(%arg0: i32) -> (i32, i32) {
    %c0_i32 = arith.constant 0 : i32
    %c0_i32_0 = arith.constant 0 : i32
    %c0_i32_1 = arith.constant 0 : i32
    return %c0_i32, %c0_i32_0 : i32, i32
  }
  func.func @transform_4(%arg0: i32) -> (i32, i32) {
    %c0_i32 = arith.constant 0 : i32
    %c0_i32_0 = arith.constant 0 : i32
    %c0_i32_1 = arith.constant 0 : i32
    return %c0_i32, %c0_i32_0 : i32, i32
  }
  func.func @transform_5(%arg0: i32) -> (i32, i32) {
    %c0_i32 = arith.constant 0 : i32
    %c0_i32_0 = arith.constant 0 : i32
    return %arg0, %c0_i32 : i32, i32
  }
}

</mosaic_0001>

<bundles_post_ra>
// kernel: tpu_custom_call.1
= control target key start
LH: loop header
LB: loop body
LE: loop exit
PB: predicated region body
PF: predicated region fallthrough
CT: control target
= control target key end

     0   :  { %s3811_s0 = inlined_call_operand.vmem [shape: f32[256,784], index: 0, kind: input, shape index: {}]   ;;  %s3812_s1 = inlined_call_operand.vmem [shape: bf16[784,128], index: 1, kind: input, shape index: {}]   ;;  %s3813_s2 = inlined_call_operand.vmem [shape: f32[1,128], index: 2, kind: input, shape index: {}]   ;;  %s3814_s3 = inlined_call_operand.vmem [shape: bf16[128,128], index: 3, kind: input, shape index: {}]   ;;  %s3815_s4 = inlined_call_operand.vmem [shape: f32[1,128], index: 4, kind: input, shape index: {}]   ;;  %s3816_s5 = inlined_call_operand.hbm [shape: bf16[256,128], index: 5, kind: output, shape index: {}]  }
   0x1   :  { %v2602_v0 = vld [vmem:[%s3812_s1 + $0x40] sm:$0xff]   ;;  %v2606_v4 = vld [vmem:[%s3812_s1 + $0x48] sm:$0xff]   ;;  %v2610_v8 = vld [vmem:[%s3812_s1 + $0x50] sm:$0xff]  }
   0x2   :  { %v2603_v1 = vld [vmem:[%s3812_s1] sm:$0xff]   ;;  %2140 = vmatprep.subr.bf16.mxu0 %v2602_v0  ;;  %v2607_v5 = vld [vmem:[%s3812_s1 + $0x8] sm:$0xff]   ;;  %v2611_v9 = vld [vmem:[%s3812_s1 + $0x10] sm:$0xff]  }
   0x3   :  { %v2604_v2 = vld [vmem:[%s3812_s1 + $0xc0] sm:$0xff]   ;;  %2141 = vmatpush3.bf16.msra.mxu0 %v2603_v1  ;;  %v2608_v6 = vld [vmem:[%s3812_s1 + $0xc8] sm:$0xff]   ;;  %v2612_v10 = vld [vmem:[%s3812_s1 + $0xd0] sm:$0xff]  }
   0x4   :  { %v2605_v3 = vld [vmem:[%s3812_s1 + $0x80] sm:$0xff]   ;;  %2252 = vmatprep.subr.bf16.mxu1 %v2604_v2  ;;  %2142 = vmatprep.subr.bf16.mxu0 %v2606_v4  ;;  %v2609_v7 = vld [vmem:[%s3812_s1 + $0x88] sm:$0xff]   ;;  %v2613_v11 = vld [vmem:[%s3812_s1 + $0x90] sm:$0xff]  }
   0x5   :  { %2253 = vmatpush3.bf16.msra.mxu1 %v2605_v3  ;;  %v2614_v12 = vld [vmem:[%s3812_s1 + $0x58] sm:$0xff]   ;;  %v2618_v16 = vld [vmem:[%s3812_s1 + $0x60] sm:$0xff]   ;;  %v2622_v20 = vld [vmem:[%s3812_s1 + $0x68] sm:$0xff]  }
   0x6   :  { %2254 = vmatprep.subr.bf16.mxu1 %v2608_v6  ;;  %v2615_v13 = vld [vmem:[%s3812_s1 + $0x18] sm:$0xff]   ;;  %v2619_v17 = vld [vmem:[%s3812_s1 + $0x20] sm:$0xff]   ;;  %v2623_v21 = vld [vmem:[%s3812_s1 + $0x28] sm:$0xff]  }
   0x7   :  { %2143 = vmatpush3.bf16.msra.mxu0 %v2607_v5  ;;  %v2616_v14 = vld [vmem:[%s3812_s1 + $0xd8] sm:$0xff]   ;;  %v2620_v18 = vld [vmem:[%s3812_s1 + $0xe0] sm:$0xff]   ;;  %v2624_v22 = vld [vmem:[%s3812_s1 + $0xe8] sm:$0xff]  }
   0x8   :  { %2144 = vmatprep.subr.bf16.mxu0 %v2610_v8  ;;  %v2617_v15 = vld [vmem:[%s3812_s1 + $0x98] sm:$0xff]   ;;  %v2621_v19 = vld [vmem:[%s3812_s1 + $0xa0] sm:$0xff]   ;;  %v2625_v23 = vld [vmem:[%s3812_s1 + $0xa8] sm:$0xff]  }
   0x9   :  { %2255 = vmatpush3.bf16.msra.mxu1 %v2609_v7  ;;  %v2626_v24 = vld [vmem:[%s3812_s1 + $0x70] sm:$0xff]   ;;  %v2630_v28 = vld [vmem:[%s3812_s1 + $0x78] sm:$0xff]   ;;  %v23_v31 = vld [vmem:[%s3811_s0 + $0x8] sm:$0xff] }
   0xa   :  { %2256 = vmatprep.subr.bf16.mxu1 %v2612_v10  ;;  %v2627_v25 = vld [vmem:[%s3812_s1 + $0x30] sm:$0xff]   ;;  %v2631_v29 = vld [vmem:[%s3812_s1 + $0x38] sm:$0xff]   ;;  %v30_v32 = vld [vmem:[%s3811_s0 + $0x40] sm:$0xff] }
   0xb   :  { %2145 = vmatpush3.bf16.msra.mxu0 %v2611_v9  ;;  %v2628_v26 = vld [vmem:[%s3812_s1 + $0xf0] sm:$0xff]   ;;  %v2632_v30 = vld [vmem:[%s3812_s1 + $0xf8] sm:$0xff]   ;;  %v247_v33 = vpack.c.bf16 %v30_v32, %v23_v31  ;;  %v22_v35 = vld [vmem:[%s3811_s0] sm:$0xff] }
   0xc   :  { %2146 = vmatprep.subr.bf16.mxu0 %v2614_v12  ;;  %v2629_v27 = vld [vmem:[%s3812_s1 + $0xb0] sm:$0xff]   ;;  %v2633_v34 = vld [vmem:[%s3812_s1 + $0xb8] sm:$0xff]   ;;  %v2634_v38 = vld [vmem:[%s3812_s1 + $0x140] sm:$0xff]  }
   0xd   :  { %2257 = vmatpush3.bf16.msra.mxu1 %v2613_v11  ;;  %v29_v36 = vld [vmem:[%s3811_s0 + $0x38] sm:$0xff]  ;;  %838 = vmatprep.mubr.bf16.mxu0 %v247_v33  ;;  %v32_v40 = vld [vmem:[%s3811_s0 + $0x50] sm:$0xff]  ;;  %v2635_v42 = vld [vmem:[%s3812_s1 + $0x100] sm:$0xff]  }
   0xe   :  { %2258 = vmatprep.subr.bf16.mxu1 %v2616_v14  ;;  %v246_v37 = vpack.c.bf16 %v29_v36, %v22_v35  ;;  %v25_v39 = vld [vmem:[%s3811_s0 + $0x18] sm:$0xff]  ;;  %v24_v43 = vld [vmem:[%s3811_s0 + $0x10] sm:$0xff]  ;;  %v31_v44 = vld [vmem:[%s3811_s0 + $0x48] sm:$0xff] }
   0xf   :  { %2147 = vmatpush3.bf16.msra.mxu0 %v2615_v13  ;;  %v249_v41 = vpack.c.bf16 %v32_v40, %v25_v39  ;;  %v37_v45 = vld [vmem:[%s3811_s0 + $0x78] sm:$0xff]  ;;  %v248_v46 = vpack.c.bf16 %v31_v44, %v24_v43  ;;  %v44_v47 = vld [vmem:[%s3811_s0 + $0xb0] sm:$0xff]  ;;  %v43_v49 = vld [vmem:[%s3811_s0 + $0xa8] sm:$0xff] }
  0x10   :  { %2148 = vmatprep.subr.bf16.mxu0 %v2618_v16  ;;  %v36_v48 = vld [vmem:[%s3811_s0 + $0x70] sm:$0xff]  ;;  %v254_v50 = vpack.c.bf16 %v44_v47, %v37_v45  ;;  %v39_v51 = vld [vmem:[%s3811_s0 + $0x88] sm:$0xff]  ;;  %v46_v52 = vld [vmem:[%s3811_s0 + $0xc0] sm:$0xff] }
  0x11   :  { %2259 = vmatpush3.bf16.msra.mxu1 %v2617_v15  ;;  %999 = vmatprep.mubr.bf16.mxu1 %v249_v41  ;;  %v256_v53 = vpack.c.bf16 %v46_v52, %v39_v51  ;;  %v51_v54 = vld [vmem:[%s3811_s0 + $0xe8] sm:$0xff]  ;;  %v58_v55 = vld [vmem:[%s3811_s0 + $0x120] sm:$0xff]  ;;  %v253_v56 = vpack.c.bf16 %v43_v49, %v36_v48  ;;  %v45_v58 = vld [vmem:[%s3811_s0 + $0xb8] sm:$0xff] }
  0x12   :  { %2260 = vmatprep.subr.bf16.mxu1 %v2620_v18  ;;  %v38_v57 = vld [vmem:[%s3811_s0 + $0x80] sm:$0xff]  ;;  %v261_v59 = vpack.c.bf16 %v58_v55, %v51_v54  ;;  %v2636_v60 = vld [vmem:[%s3812_s1 + $0x148] sm:$0xff]   ;;  %v53_v61 = vld [vmem:[%s3811_s0 + $0xf8] sm:$0xff] }
  0x13   :  { %2149 = vmatpush3.bf16.msra.mxu0 %v2619_v17  ;;  %v60_v62 = vld [vmem:[%s3811_s0 + $0x130] sm:$0xff]  ;;  %v255_v63 = vpack.c.bf16 %v45_v58, %v38_v57  ;;  %v2637_v0 = vld [vmem:[%s3812_s1 + $0x108] sm:$0xff]   ;;  %v50_v2 = vld [vmem:[%s3811_s0 + $0xe0] sm:$0xff] }
  0x14   :  { %2150 = vmatprep.subr.bf16.mxu0 %v2622_v20  ;;  %v263_v1 = vpack.c.bf16 %v60_v62, %v53_v61  ;;  %v57_v3 = vld [vmem:[%s3811_s0 + $0x118] sm:$0xff]  ;;  %v72_v5 = vld [vmem:[%s3811_s0 + $0x190] sm:$0xff]  ;;  %v59_v7 = vld [vmem:[%s3811_s0 + $0x128] sm:$0xff] }
  0x15   :  { %2261 = vmatpush3.bf16.msra.mxu1 %v2621_v19  ;;  %v65_v4 = vld [vmem:[%s3811_s0 + $0x158] sm:$0xff]  ;;  %v52_v6 = vld [vmem:[%s3811_s0 + $0xf0] sm:$0xff]  ;;  %v260_v8 = vpack.c.bf16 %v57_v3, %v50_v2  ;;  %v67_v11 = vld [vmem:[%s3811_s0 + $0x168] sm:$0xff] }
  0x16   :  { %2262 = vmatprep.subr.bf16.mxu1 %v2624_v22  ;;  %v2638_v9 = vld [vmem:[%s3812_s1 + $0x150] sm:$0xff]   ;;  %v268_v10 = vpack.c.bf16 %v72_v5, %v65_v4  ;;  %v74_v12 = vld [vmem:[%s3811_s0 + $0x1a0] sm:$0xff]  ;;  %v262_v14 = vpack.c.bf16 %v59_v7, %v52_v6  ;;  %v71_v17 = vld [vmem:[%s3811_s0 + $0x188] sm:$0xff] }
  0x17   :  { %2151 = vmatpush3.bf16.msra.mxu0 %v2623_v21  ;;  %v2639_v13 = vld [vmem:[%s3812_s1 + $0x110] sm:$0xff]   ;;  %v270_v15 = vpack.c.bf16 %v74_v12, %v67_v11  ;;  %v66_v18 = vld [vmem:[%s3811_s0 + $0x160] sm:$0xff]  ;;  %v79_v19 = vld [vmem:[%s3811_s0 + $0x1c8] sm:$0xff] }
  0x18   :  { %2152 = vmatprep.subr.bf16.mxu0 %v2626_v24  ;;  %v64_v16 = vld [vmem:[%s3811_s0 + $0x150] sm:$0xff]  ;;  %v86_v20 = vld [vmem:[%s3811_s0 + $0x200] sm:$0xff]  ;;  %v73_v21 = vld [vmem:[%s3811_s0 + $0x198] sm:$0xff] }
  0x19   :  { %2263 = vmatpush3.bf16.msra.mxu1 %v2625_v23  ;;  %v267_v22 = vpack.c.bf16 %v71_v17, %v64_v16  ;;  %v81_v23 = vld [vmem:[%s3811_s0 + $0x1d8] sm:$0xff]  ;;  %v88_v24 = vld [vmem:[%s3811_s0 + $0x210] sm:$0xff]  ;;  %v2642_v35 = vld [vmem:[%s3812_s1 + $0x160] sm:$0xff]  }
  0x1a   :  { %2264 = vmatprep.subr.bf16.mxu1 %v2628_v26  ;;  %v275_v26 = vpack.c.bf16 %v86_v20, %v79_v19  ;;  %v85_v31 = vld [vmem:[%s3811_s0 + $0x1f8] sm:$0xff]  ;;  %v100_v33 = vld [vmem:[%s3811_s0 + $0x270] sm:$0xff]  ;;  %v95_v39 = vld [vmem:[%s3811_s0 + $0x248] sm:$0xff] }
  0x1b   :  { %2153 = vmatpush3.bf16.msra.mxu0 %v2627_v25  ;;  %v2640_v25 = vld [vmem:[%s3812_s1 + $0x158] sm:$0xff]   ;;  %v102_v40 = vld [vmem:[%s3811_s0 + $0x280] sm:$0xff]  ;;  %v92_v45 = vld [vmem:[%s3811_s0 + $0x230] sm:$0xff] }
  0x1c   :  { %2154 = vmatprep.subr.bf16.mxu0 %v2630_v28  ;;  %v269_v28 = vpack.c.bf16 %v73_v21, %v66_v18  ;;  %v93_v32 = vld [vmem:[%s3811_s0 + $0x238] sm:$0xff]  ;;  %v2643_v41 = vld [vmem:[%s3812_s1 + $0x120] sm:$0xff]   ;;  %v284_v44 = vpack.c.bf16 %v102_v40, %v95_v39  ;;  %v107_v48 = vld [vmem:[%s3811_s0 + $0x2a8] sm:$0xff] }
  0x1d   :  { %2265 = vmatpush3.bf16.msra.mxu1 %v2629_v27  ;;  %v2641_v27 = vld [vmem:[%s3812_s1 + $0x118] sm:$0xff]   ;;  %v94_v47 = vld [vmem:[%s3811_s0 + $0x240] sm:$0xff]  ;;  %v116_v55 = vld [vmem:[%s3811_s0 + $0x2f0] sm:$0xff] }
  0x1e   :  { %2266 = vmatprep.subr.bf16.mxu1 %v2632_v30  ;;  %v78_v30 = vld [vmem:[%s3811_s0 + $0x1c0] sm:$0xff]  ;;  %v101_v52 = vld [vmem:[%s3811_s0 + $0x278] sm:$0xff]  ;;  %v128_v62 = vld [vmem:[%s3811_s0 + $0x350] sm:$0xff] }
  0x1f   :  { %2155 = vmatpush3.bf16.msra.mxu0 %v2631_v29  ;;  %v277_v29 = vpack.c.bf16 %v88_v24, %v81_v23  ;;  %v274_v36 = vpack.c.bf16 %v85_v31, %v78_v30  ;;  %v114_v49 = vld [vmem:[%s3811_s0 + $0x2e0] sm:$0xff]  ;;  %v283_v57 = vpack.c.bf16 %v101_v52, %v94_v47  ;;  %v121_v61 = vld [vmem:[%s3811_s0 + $0x318] sm:$0xff]  ;;  %v2648_v3 = vld [vmem:[%s3812_s1 + $0x130] sm:$0xff]  }
  0x20   :  { %2364 = vmatprep.subr.bf16.mxu0 %v2634_v38  ;;  %v282_v38 = vpack.c.bf16 %v100_v33, %v93_v32  ;;  %v289_v54 = vpack.c.bf16 %v114_v49, %v107_v48  ;;  %v296_v4 = vpack.c.bf16 %v128_v62, %v121_v61  ;;  %v123_v5 = vld [vmem:[%s3811_s0 + $0x328] sm:$0xff]  ;;  %v130_v6 = vld [vmem:[%s3811_s0 + $0x360] sm:$0xff]  ;;  %v129_v16 = vld [vmem:[%s3811_s0 + $0x358] sm:$0xff] }
  0x21   :  { %2267 = vmatpush3.bf16.msra.mxu1 %v2633_v34  ;;  %v80_v34 = vld [vmem:[%s3811_s0 + $0x1d0] sm:$0xff]  ;;  %v135_v11 = vld [vmem:[%s3811_s0 + $0x388] sm:$0xff]  ;;  %v142_v12 = vld [vmem:[%s3811_s0 + $0x3c0] sm:$0xff] }
  0x22   :  { %839 = vmatmul.mubr.bf16.vlgmr.msra.gmra.mrb[0].mxu0 %v246_v37  ;;  %v87_v37 = vld [vmem:[%s3811_s0 + $0x208] sm:$0xff]  ;;  %v2650_v17 = vld [vmem:[%s3812_s1 + $0x138] sm:$0xff]   ;;  %v303_v18 = vpack.c.bf16 %v142_v12, %v135_v11  ;;  %v144_v20 = vld [vmem:[%s3811_s0 + $0x3d0] sm:$0xff] }
  0x23   :  { %2365 = vmatpush3.bf16.msra.mxu0 %v2635_v42  ;;  %846 = vmatprep.mubr.bf16.mxu0 %v254_v50  ;;  %v2644_v42 = vld [vmem:[%s3812_s1 + $0x180] sm:$0xff]   ;;  %v276_v43 = vpack.c.bf16 %v87_v37, %v80_v34  ;;  %v2645_v50 = vld [vmem:[%s3812_s1 + $0x168] sm:$0xff]   ;;  %v137_v19 = vld [vmem:[%s3811_s0 + $0x398] sm:$0xff] }
  0x24   :  { %1000 = vmatmul.mubr.bf16.vlgmr.msra.gmra.mrb[0].mxu1 %v248_v46  ;;  %2366 = vmatprep.subr.bf16.mxu0 %v2636_v60  ;;  %v99_v46 = vld [vmem:[%s3811_s0 + $0x268] sm:$0xff]  ;;  %v113_v60 = vld [vmem:[%s3811_s0 + $0x2d8] sm:$0xff]  ;;  %v134_v23 = vld [vmem:[%s3811_s0 + $0x380] sm:$0xff] }
  0x25   :  { %1007 = vmatprep.mubr.bf16.mxu1 %v256_v53  ;;  %2517 = vmatprep.subr.bf16.mxu1 %v2644_v42  ;;  %v281_v51 = vpack.c.bf16 %v99_v46, %v92_v45  ;;  %v109_v53 = vld [vmem:[%s3811_s0 + $0x2b8] sm:$0xff]  ;;  %v151_v31 = vld [vmem:[%s3811_s0 + $0x408] sm:$0xff]  ;;  %v158_v32 = vld [vmem:[%s3811_s0 + $0x440] sm:$0xff] }
  0x26   :  { %2518 = vmatpush3.bf16.msra.mxu1 %v2644_v42  ;;  %v291_v58 = vpack.c.bf16 %v116_v55, %v109_v53  ;;  %v141_v24 = vld [vmem:[%s3811_s0 + $0x3b8] sm:$0xff]  ;;  %v312_v34 = vpack.c.bf16 %v158_v32, %v151_v31  ;;  %v163_v37 = vld [vmem:[%s3811_s0 + $0x468] sm:$0xff]  ;;  %v150_v40 = vld [vmem:[%s3811_s0 + $0x400] sm:$0xff] }
  0x27   :  { %2367 = vmatpush3.bf16.msra.mxu0 %v2637_v0  ;;  %v115_v0 = vld [vmem:[%s3811_s0 + $0x2e8] sm:$0xff]  ;;  %v162_v47 = vld [vmem:[%s3811_s0 + $0x460] sm:$0xff]  ;;  %v169_v48 = vld [vmem:[%s3811_s0 + $0x498] sm:$0xff] }
  0x28   :  { %2368 = vmatprep.subr.bf16.mxu0 %v2638_v9  ;;  %v298_v9 = vpack.c.bf16 %v130_v6, %v123_v5  ;;  %v177_v49 = vld [vmem:[%s3811_s0 + $0x4d8] sm:$0xff]  ;;  %v316_v52 = vpack.c.bf16 %v169_v48, %v162_v47  ;;  %v171_v53 = vld [vmem:[%s3811_s0 + $0x4a8] sm:$0xff]  ;;  %v186_v55 = vld [vmem:[%s3811_s0 + $0x520] sm:$0xff] }
  0x29   :  { %v191_v61 = vld [vmem:[%s3811_s0 + $0x548] sm:$0xff]  ;;  %v198_v62 = vld [vmem:[%s3811_s0 + $0x580] sm:$0xff] }
  0x2a   :  { %847 = vmatmul.mubr.bf16.gmra.mrb[4].mxu0 %v253_v56  ;;  %v2646_v56 = vld [vmem:[%s3812_s1 + $0x128] sm:$0xff]  }
  0x2b   :  { %854 = vmatprep.mubr.bf16.mxu0 %v261_v59  ;;  %2369 = vmatpush3.bf16.msra.mxu0 %v2639_v13  ;;  %v106_v59 = vld [vmem:[%s3811_s0 + $0x2a0] sm:$0xff]  ;;  %v2649_v13 = vld [vmem:[%s3812_s1 + $0x178] sm:$0xff]  }
  0x2c   :  { %1008 = vmatmul.mubr.bf16.gmra.mrb[4].mxu1 %v255_v63  ;;  %2370 = vmatprep.subr.bf16.mxu0 %v2640_v25  ;;  %v108_v63 = vld [vmem:[%s3811_s0 + $0x2b0] sm:$0xff]  ;;  %v288_v2 = vpack.c.bf16 %v113_v60, %v106_v59  ;;  %v149_v25 = vld [vmem:[%s3811_s0 + $0x3f8] sm:$0xff]  ;;  %v183_v60 = vld [vmem:[%s3811_s0 + $0x508] sm:$0xff] }
  0x2d   :  { %1015 = vmatprep.mubr.bf16.mxu1 %v263_v1  ;;  %v2647_v1 = vld [vmem:[%s3812_s1 + $0x170] sm:$0xff]   ;;  %v290_v7 = vpack.c.bf16 %v115_v0, %v108_v63  ;;  %v178_v0 = vld [vmem:[%s3811_s0 + $0x4e0] sm:$0xff] }
  0x2e   :  { %v176_v59 = vld [vmem:[%s3811_s0 + $0x4d0] sm:$0xff] }
  0x2f   :  { %2371 = vmatpush3.bf16.msra.mxu0 %v2641_v27  ;;  %v302_v27 = vpack.c.bf16 %v141_v24, %v134_v23  ;;  %v323_v63 = vpack.c.bf16 %v183_v60, %v176_v59 }
  0x30   :  { %2372 = vmatprep.subr.bf16.mxu0 %v2642_v35  ;;  %v148_v35 = vld [vmem:[%s3811_s0 + $0x3f0] sm:$0xff] }
  0x32   :  { %855 = vmatmul.mubr.bf16.gmra.mrb[8].mxu0 %v260_v8  ;;  %v120_v8 = vld [vmem:[%s3811_s0 + $0x310] sm:$0xff] }
  0x33   :  { %862 = vmatprep.mubr.bf16.mxu0 %v268_v10  ;;  %2373 = vmatpush3.bf16.msra.mxu0 %v2643_v41  ;;  %v127_v10 = vld [vmem:[%s3811_s0 + $0x348] sm:$0xff]  ;;  %v157_v41 = vld [vmem:[%s3811_s0 + $0x438] sm:$0xff] }
  0x34   :  { %1016 = vmatmul.mubr.bf16.gmra.mrb[8].mxu1 %v262_v14  ;;  %2374 = vmatprep.subr.bf16.mxu0 %v2645_v50  ;;  %v295_v14 = vpack.c.bf16 %v127_v10, %v120_v8  ;;  %v311_v45 = vpack.c.bf16 %v157_v41, %v150_v40  ;;  %v184_v50 = vld [vmem:[%s3811_s0 + $0x510] sm:$0xff] }
  0x35   :  { %1023 = vmatprep.mubr.bf16.mxu1 %v270_v15  ;;  %v122_v15 = vld [vmem:[%s3811_s0 + $0x320] sm:$0xff] }
  0x36   :  { %v297_v21 = vpack.c.bf16 %v129_v16, %v122_v15 }
  0x37   :  { %2375 = vmatpush3.bf16.msra.mxu0 %v2646_v56  ;;  %v324_v56 = vpack.c.bf16 %v184_v50, %v177_v49 }
  0x38   :  { %2376 = vmatprep.subr.bf16.mxu0 %v2647_v1  ;;  %v185_v1 = vld [vmem:[%s3811_s0 + $0x518] sm:$0xff] }
  0x3a   :  { %863 = vmatmul.mubr.bf16.gmra.mrb[12].mxu0 %v267_v22  ;;  %v305_v22 = vpack.c.bf16 %v144_v20, %v137_v19 }
  0x3b   :  { %870 = vmatprep.mubr.bf16.mxu0 %v275_v26  ;;  %2377 = vmatpush3.bf16.msra.mxu0 %v2648_v3  ;;  %v156_v26 = vld [vmem:[%s3811_s0 + $0x430] sm:$0xff] }
  0x3c   :  { %1024 = vmatmul.mubr.bf16.gmra.mrb[12].mxu1 %v269_v28  ;;  %2378 = vmatprep.subr.bf16.mxu0 %v2649_v13  ;;  %v136_v28 = vld [vmem:[%s3811_s0 + $0x390] sm:$0xff]  ;;  %v310_v30 = vpack.c.bf16 %v156_v26, %v149_v25 }
  0x3d   :  { %1031 = vmatprep.mubr.bf16.mxu1 %v277_v29  ;;  %v143_v29 = vld [vmem:[%s3811_s0 + $0x3c8] sm:$0xff] }
  0x3e   :  { %v304_v33 = vpack.c.bf16 %v143_v29, %v136_v28 }
  0x3f   :  { %2379 = vmatpush3.bf16.msra.mxu0 %v2650_v17 }
  0x42   :  { %871 = vmatmul.mubr.bf16.gmra.mrb[16].mxu0 %v274_v36  ;;  %v155_v36 = vld [vmem:[%s3811_s0 + $0x428] sm:$0xff] }
  0x43   :  { %878 = vmatprep.mubr.bf16.mxu0 %v282_v38  ;;  %v170_v38 = vld [vmem:[%s3811_s0 + $0x4a0] sm:$0xff]  ;;  %v309_v39 = vpack.c.bf16 %v155_v36, %v148_v35 }
  0x44   :  { %1032 = vmatmul.mubr.bf16.gmra.mrb[16].mxu1 %v276_v43  ;;  %v317_v42 = vpack.c.bf16 %v170_v38, %v163_v37  ;;  %v165_v43 = vld [vmem:[%s3811_s0 + $0x478] sm:$0xff] }
  0x45   :  { %1039 = vmatprep.mubr.bf16.mxu1 %v284_v44  ;;  %v172_v44 = vld [vmem:[%s3811_s0 + $0x4b0] sm:$0xff] }
  0x46   :  { %v319_v46 = vpack.c.bf16 %v172_v44, %v165_v43 }
  0x4a   :  { %879 = vmatmul.mubr.bf16.gmra.mrb[20].mxu0 %v281_v51  ;;  %v164_v51 = vld [vmem:[%s3811_s0 + $0x470] sm:$0xff] }
  0x4b   :  { %886 = vmatprep.mubr.bf16.mxu0 %v289_v54  ;;  %v179_v54 = vld [vmem:[%s3811_s0 + $0x4e8] sm:$0xff] }
  0x4c   :  { %1040 = vmatmul.mubr.bf16.gmra.mrb[20].mxu1 %v283_v57  ;;  %v318_v57 = vpack.c.bf16 %v171_v53, %v164_v51 }
  0x4d   :  { %1047 = vmatprep.mubr.bf16.mxu1 %v291_v58  ;;  %v326_v58 = vpack.c.bf16 %v186_v55, %v179_v54 }
  0x52   :  { %887 = vmatmul.mubr.bf16.gmra.mrb[24].mxu0 %v288_v2 }
  0x53   :  { %894 = vmatprep.mubr.bf16.mxu0 %v296_v4 }
  0x54   :  { %1048 = vmatmul.mubr.bf16.gmra.mrb[24].mxu1 %v290_v7 }
  0x55   :  { %1055 = vmatprep.mubr.bf16.mxu1 %v298_v9 }
  0x5a   :  { %895 = vmatmul.mubr.bf16.gmra.mrb[28].mxu0 %v295_v14 }
  0x5b   :  { %902 = vmatprep.mubr.bf16.mxu0 %v303_v18 }
  0x5c   :  { %1056 = vmatmul.mubr.bf16.gmra.mrb[28].mxu1 %v297_v21 }
  0x5d   :  { %1063 = vmatprep.mubr.bf16.mxu1 %v305_v22 }
  0x62   :  { %903 = vmatmul.mubr.bf16.gmra.mrb[32].mxu0 %v302_v27 }
  0x63   :  { %910 = vmatprep.mubr.bf16.mxu0 %v310_v30 }
  0x64   :  { %1064 = vmatmul.mubr.bf16.gmra.mrb[32].mxu1 %v304_v33 }
  0x65   :  { %1071 = vmatprep.mubr.bf16.mxu1 %v312_v34 }
  0x6a   :  { %911 = vmatmul.mubr.bf16.gmra.mrb[36].mxu0 %v309_v39 }
  0x6b   :  { %918 = vmatprep.mubr.bf16.mxu0 %v317_v42 }
  0x6c   :  { %1072 = vmatmul.mubr.bf16.gmra.mrb[36].mxu1 %v311_v45 }
  0x6d   :  { %1079 = vmatprep.mubr.bf16.mxu1 %v319_v46 }
  0x72   :  { %919 = vmatmul.mubr.bf16.gmra.mrb[40].mxu0 %v316_v52 }
  0x73   :  { %926 = vmatprep.mubr.bf16.mxu0 %v324_v56 }
  0x74   :  { %1080 = vmatmul.mubr.bf16.gmra.mrb[40].mxu1 %v318_v57 }
  0x75   :  { %1087 = vmatprep.mubr.bf16.mxu1 %v326_v58 }
  0x76   :  { %10 = vsyncpa [#allocation3], 0  ;;  %v331_v2 = vpack.c.bf16 %v198_v62, %v191_v61  ;;  %v193_v3 = vld [vmem:[%s3811_s0 + $0x558] sm:$0xff]  ;;  %v200_v4 = vld [vmem:[%s3811_s0 + $0x590] sm:$0xff]  ;;  %v325_v5 = vpack.c.bf16 %v185_v1, %v178_v0  ;;  %vm757_vm0 = vcmask 130048  }
  0x77   :  { %v333_v6 = vpack.c.bf16 %v200_v4, %v193_v3  ;;  %v190_v7 = vld [vmem:[%s3811_s0 + $0x540] sm:$0xff]  ;;  %v197_v8 = vld [vmem:[%s3811_s0 + $0x578] sm:$0xff]  ;;  %v212_v10 = vld [vmem:[%s3811_s0 + $0x5f0] sm:$0xff] }
  0x78   :  { %v205_v9 = vld [vmem:[%s3811_s0 + $0x5b8] sm:$0xff]  ;;  %v330_v11 = vpack.c.bf16 %v197_v8, %v190_v7  ;;  %v192_v12 = vld [vmem:[%s3811_s0 + $0x550] sm:$0xff]  ;;  %v199_v13 = vld [vmem:[%s3811_s0 + $0x588] sm:$0xff] }
  0x79   :  { %v338_v14 = vpack.c.bf16 %v212_v10, %v205_v9  ;;  %v207_v15 = vld [vmem:[%s3811_s0 + $0x5c8] sm:$0xff]  ;;  %v214_v16 = vld [vmem:[%s3811_s0 + $0x600] sm:$0xff]  ;;  %v332_v17 = vpack.c.bf16 %v199_v13, %v192_v12  ;;  %v204_v19 = vld [vmem:[%s3811_s0 + $0x5b0] sm:$0xff] }
  0x7a   :  { %927 = vmatmul.mubr.bf16.gmra.mrb[44].mxu0 %v323_v63  ;;  %v340_v18 = vpack.c.bf16 %v214_v16, %v207_v15  ;;  %v211_v20 = vld [vmem:[%s3811_s0 + $0x5e8] sm:$0xff]  ;;  %v226_v22 = vld [vmem:[%s3811_s0 + $0x660] sm:$0xff]  ;;  %v213_v25 = vld [vmem:[%s3811_s0 + $0x5f8] sm:$0xff] }
  0x7b   :  { %934 = vmatprep.mubr.bf16.mxu0 %v331_v2  ;;  %v219_v21 = vld [vmem:[%s3811_s0 + $0x628] sm:$0xff]  ;;  %v337_v23 = vpack.c.bf16 %v211_v20, %v204_v19  ;;  %v206_v24 = vld [vmem:[%s3811_s0 + $0x5c0] sm:$0xff]  ;;  %v221_v27 = vld [vmem:[%s3811_s0 + $0x638] sm:$0xff] }
  0x7c   :  { %1088 = vmatmul.mubr.bf16.gmra.mrb[44].mxu1 %v325_v5  ;;  %v345_v26 = vpack.c.bf16 %v226_v22, %v219_v21  ;;  %v228_v28 = vld [vmem:[%s3811_s0 + $0x670] sm:$0xff]  ;;  %v339_v29 = vpack.c.bf16 %v213_v25, %v206_v24  ;;  %v218_v31 = vld [vmem:[%s3811_s0 + $0x620] sm:$0xff]  ;;  %v225_v32 = vld [vmem:[%s3811_s0 + $0x658] sm:$0xff] }
  0x7d   :  { %1095 = vmatprep.mubr.bf16.mxu1 %v333_v6  ;;  %v347_v30 = vpack.c.bf16 %v228_v28, %v221_v27  ;;  %v233_v33 = vld [vmem:[%s3811_s0 + $0x698] sm:$0xff]  ;;  %v240_v34 = vld [vmem:[%s3811_s0 + $0x6d0] sm:$0xff]  ;;  %v344_v35 = vpack.c.bf16 %v225_v32, %v218_v31  ;;  %v227_v37 = vld [vmem:[%s3811_s0 + $0x668] sm:$0xff] }
  0x7e   :  { %v220_v36 = vld [vmem:[%s3811_s0 + $0x630] sm:$0xff]  ;;  %v352_v38 = vpack.c.bf16 %v240_v34, %v233_v33  ;;  %v235_v39 = vld [vmem:[%s3811_s0 + $0x6a8] sm:$0xff]  ;;  %v242_v40 = vld [vmem:[%s3811_s0 + $0x6e0] sm:$0xff] }
  0x7f   :  { %v346_v41 = vpack.c.bf16 %v227_v37, %v220_v36  ;;  %v354_v42 = vpack.c.bf16 %v242_v40, %v235_v39  ;;  %v232_v43 = vld [vmem:[%s3811_s0 + $0x690] sm:$0xff]  ;;  %v239_v44 = vld [vmem:[%s3811_s0 + $0x6c8] sm:$0xff]  ;;  %v34_v46 = vld [vmem:[%s3811_s0 + $0x60] sm:$0xff] }
  0x80   :  { %v27_v45 = vld [vmem:[%s3811_s0 + $0x28] sm:$0xff]  ;;  %v351_v47 = vpack.c.bf16 %v239_v44, %v232_v43  ;;  %v234_v48 = vld [vmem:[%s3811_s0 + $0x6a0] sm:$0xff]  ;;  %v241_v49 = vld [vmem:[%s3811_s0 + $0x6d8] sm:$0xff] }
  0x81   :  { %v251_v50 = vpack.c.bf16 %v34_v46, %v27_v45  ;;  %v28_v51 = vld [vmem:[%s3811_s0 + $0x30] sm:$0xff]  ;;  %v35_v52 = vld [vmem:[%s3811_s0 + $0x68] sm:$0xff]  ;;  %v353_v53 = vpack.c.bf16 %v241_v49, %v234_v48  ;;  %v26_v55 = vld [vmem:[%s3811_s0 + $0x20] sm:$0xff] }
  0x82   :  { %935 = vmatmul.mubr.bf16.gmra.mrb[48].mxu0 %v330_v11  ;;  %v252_v54 = vpack.c.bf16 %v35_v52, %v28_v51  ;;  %v33_v56 = vld [vmem:[%s3811_s0 + $0x58] sm:$0xff]  ;;  %v48_v58 = vld [vmem:[%s3811_s0 + $0xd0] sm:$0xff]  ;;  %v42_v60 = vld [vmem:[%s3811_s0 + $0xa0] sm:$0xff] }
  0x83   :  { %942 = vmatprep.mubr.bf16.mxu0 %v338_v14  ;;  %v41_v57 = vld [vmem:[%s3811_s0 + $0x98] sm:$0xff]  ;;  %v250_v59 = vpack.c.bf16 %v33_v56, %v26_v55  ;;  %v56_v63 = vld [vmem:[%s3811_s0 + $0x110] sm:$0xff]  ;;  %v63_v0 = vld [vmem:[%s3811_s0 + $0x148] sm:$0xff] }
  0x84   :  { %1096 = vmatmul.mubr.bf16.gmra.mrb[48].mxu1 %v332_v17  ;;  %v49_v61 = vld [vmem:[%s3811_s0 + $0xd8] sm:$0xff]  ;;  %v258_v62 = vpack.c.bf16 %v48_v58, %v41_v57  ;;  %v266_v2 = vpack.c.bf16 %v63_v0, %v56_v63  ;;  %v40_v3 = vld [vmem:[%s3811_s0 + $0x90] sm:$0xff]  ;;  %v47_v4 = vld [vmem:[%s3811_s0 + $0xc8] sm:$0xff] }
  0x85   :  { %1103 = vmatprep.mubr.bf16.mxu1 %v340_v18  ;;  %v259_v1 = vpack.c.bf16 %v49_v61, %v42_v60  ;;  %v55_v5 = vld [vmem:[%s3811_s0 + $0x108] sm:$0xff]  ;;  %v62_v6 = vld [vmem:[%s3811_s0 + $0x140] sm:$0xff]  ;;  %v257_v7 = vpack.c.bf16 %v47_v4, %v40_v3  ;;  %v77_v9 = vld [vmem:[%s3811_s0 + $0x1b8] sm:$0xff] }
  0x86   :  { %v70_v8 = vld [vmem:[%s3811_s0 + $0x180] sm:$0xff]  ;;  %v265_v10 = vpack.c.bf16 %v62_v6, %v55_v5  ;;  %v84_v11 = vld [vmem:[%s3811_s0 + $0x1f0] sm:$0xff]  ;;  %v91_v12 = vld [vmem:[%s3811_s0 + $0x228] sm:$0xff] }
  0x87   :  { %v273_v13 = vpack.c.bf16 %v77_v9, %v70_v8  ;;  %v280_v14 = vpack.c.bf16 %v91_v12, %v84_v11  ;;  %v54_v15 = vld [vmem:[%s3811_s0 + $0x100] sm:$0xff]  ;;  %v61_v16 = vld [vmem:[%s3811_s0 + $0x138] sm:$0xff]  ;;  %v76_v18 = vld [vmem:[%s3811_s0 + $0x1b0] sm:$0xff] }
  0x88   :  { %v69_v17 = vld [vmem:[%s3811_s0 + $0x178] sm:$0xff]  ;;  %v264_v19 = vpack.c.bf16 %v61_v16, %v54_v15  ;;  %v98_v20 = vld [vmem:[%s3811_s0 + $0x260] sm:$0xff]  ;;  %v119_v24 = vld [vmem:[%s3811_s0 + $0x308] sm:$0xff] }
  0x89   :  { %v105_v21 = vld [vmem:[%s3811_s0 + $0x298] sm:$0xff]  ;;  %v272_v22 = vpack.c.bf16 %v76_v18, %v69_v17  ;;  %v68_v27 = vld [vmem:[%s3811_s0 + $0x170] sm:$0xff]  ;;  %v75_v28 = vld [vmem:[%s3811_s0 + $0x1a8] sm:$0xff] }
  0x8a   :  { %943 = vmatmul.mubr.bf16.gmra.mrb[52].mxu0 %v337_v23  ;;  %v112_v23 = vld [vmem:[%s3811_s0 + $0x2d0] sm:$0xff]  ;;  %v287_v25 = vpack.c.bf16 %v105_v21, %v98_v20  ;;  %v271_v31 = vpack.c.bf16 %v75_v28, %v68_v27  ;;  %v126_v32 = vld [vmem:[%s3811_s0 + $0x340] sm:$0xff]  ;;  %v133_v33 = vld [vmem:[%s3811_s0 + $0x378] sm:$0xff] }
  0x8b   :  { %950 = vmatprep.mubr.bf16.mxu0 %v345_v26  ;;  %v294_v26 = vpack.c.bf16 %v119_v24, %v112_v23  ;;  %v147_v36 = vld [vmem:[%s3811_s0 + $0x3e8] sm:$0xff]  ;;  %v301_v37 = vpack.c.bf16 %v133_v33, %v126_v32  ;;  %v82_v39 = vld [vmem:[%s3811_s0 + $0x1e0] sm:$0xff]  ;;  %v89_v40 = vld [vmem:[%s3811_s0 + $0x218] sm:$0xff] }
  0x8c   :  { %1104 = vmatmul.mubr.bf16.gmra.mrb[52].mxu1 %v339_v29  ;;  %v83_v29 = vld [vmem:[%s3811_s0 + $0x1e8] sm:$0xff]  ;;  %v278_v43 = vpack.c.bf16 %v89_v40, %v82_v39  ;;  %v154_v44 = vld [vmem:[%s3811_s0 + $0x420] sm:$0xff]  ;;  %v161_v45 = vld [vmem:[%s3811_s0 + $0x458] sm:$0xff] }
  0x8d   :  { %1111 = vmatprep.mubr.bf16.mxu1 %v347_v30  ;;  %v90_v30 = vld [vmem:[%s3811_s0 + $0x220] sm:$0xff]  ;;  %v175_v48 = vld [vmem:[%s3811_s0 + $0x4c8] sm:$0xff]  ;;  %v315_v49 = vpack.c.bf16 %v161_v45, %v154_v44  ;;  %v96_v51 = vld [vmem:[%s3811_s0 + $0x250] sm:$0xff] }
  0x8e   :  { %v279_v34 = vpack.c.bf16 %v90_v30, %v83_v29  ;;  %v103_v52 = vld [vmem:[%s3811_s0 + $0x288] sm:$0xff]  ;;  %v182_v56 = vld [vmem:[%s3811_s0 + $0x500] sm:$0xff]  ;;  %v189_v57 = vld [vmem:[%s3811_s0 + $0x538] sm:$0xff] }
  0x8f   :  { %v285_v55 = vpack.c.bf16 %v103_v52, %v96_v51  ;;  %v203_v60 = vld [vmem:[%s3811_s0 + $0x5a8] sm:$0xff]  ;;  %v329_v61 = vpack.c.bf16 %v189_v57, %v182_v56  ;;  %v110_v63 = vld [vmem:[%s3811_s0 + $0x2c0] sm:$0xff]  ;;  %v117_v0 = vld [vmem:[%s3811_s0 + $0x2f8] sm:$0xff] }
  0x90   :  { %v292_v3 = vpack.c.bf16 %v117_v0, %v110_v63  ;;  %v210_v4 = vld [vmem:[%s3811_s0 + $0x5e0] sm:$0xff]  ;;  %v217_v5 = vld [vmem:[%s3811_s0 + $0x618] sm:$0xff]  ;;  %v231_v8 = vld [vmem:[%s3811_s0 + $0x688] sm:$0xff] }
  0x91   :  { %v343_v9 = vpack.c.bf16 %v217_v5, %v210_v4  ;;  %v124_v11 = vld [vmem:[%s3811_s0 + $0x330] sm:$0xff]  ;;  %v131_v12 = vld [vmem:[%s3811_s0 + $0x368] sm:$0xff]  ;;  %v238_v16 = vld [vmem:[%s3811_s0 + $0x6c0] sm:$0xff] }
  0x92   :  { %951 = vmatmul.mubr.bf16.gmra.mrb[56].mxu0 %v344_v35  ;;  %v140_v35 = vld [vmem:[%s3811_s0 + $0x3b0] sm:$0xff]  ;;  %v299_v15 = vpack.c.bf16 %v131_v12, %v124_v11  ;;  %v245_v17 = vld [vmem:[%s3811_s0 + $0x6f8] sm:$0xff]  ;;  %v138_v20 = vld [vmem:[%s3811_s0 + $0x3a0] sm:$0xff] }
  0x93   :  { %958 = vmatprep.mubr.bf16.mxu0 %v352_v38  ;;  %v308_v38 = vpack.c.bf16 %v147_v36, %v140_v35  ;;  %v145_v21 = vld [vmem:[%s3811_s0 + $0x3d8] sm:$0xff]  ;;  %v160_v23 = vld [vmem:[%s3811_s0 + $0x450] sm:$0xff]  ;;  %v159_v27 = vld [vmem:[%s3811_s0 + $0x448] sm:$0xff] }
  0x94   :  { %1112 = vmatmul.mubr.bf16.gmra.mrb[56].mxu1 %v346_v41  ;;  %v97_v41 = vld [vmem:[%s3811_s0 + $0x258] sm:$0xff]  ;;  %v306_v24 = vpack.c.bf16 %v145_v21, %v138_v20  ;;  %v167_v28 = vld [vmem:[%s3811_s0 + $0x488] sm:$0xff]  ;;  %v174_v29 = vld [vmem:[%s3811_s0 + $0x4c0] sm:$0xff] }
  0x95   :  { %1119 = vmatprep.mubr.bf16.mxu1 %v354_v42  ;;  %v104_v42 = vld [vmem:[%s3811_s0 + $0x290] sm:$0xff]  ;;  %v2651_v32 = vld [vmem:[%s3814_s3] sm:$0xff]   ;;  %v181_v35 = vld [vmem:[%s3811_s0 + $0x4f8] sm:$0xff] }
  0x96   :  { %v286_v46 = vpack.c.bf16 %v104_v42, %v97_v41  ;;  %v166_v33 = vld [vmem:[%s3811_s0 + $0x480] sm:$0xff]  ;;  %v188_v36 = vld [vmem:[%s3811_s0 + $0x530] sm:$0xff]  ;;  %2551 = vmatprep.subr.bf16.mxu1 %v2651_v32  ;;  %v187_v42 = vld [vmem:[%s3811_s0 + $0x528] sm:$0xff] }
  0x97   :  { %v328_v39 = vpack.c.bf16 %v188_v36, %v181_v35  ;;  %v2653_v40 = vld [vmem:[%s3814_s3 + $0x10] sm:$0xff]   ;;  %v202_v44 = vld [vmem:[%s3811_s0 + $0x5a0] sm:$0xff]  ;;  %v201_v0 = vld [vmem:[%s3811_s0 + $0x598] sm:$0xff] }
  0x98   :  { %v180_v41 = vld [vmem:[%s3811_s0 + $0x4f0] sm:$0xff]  ;;  %v194_v63 = vld [vmem:[%s3811_s0 + $0x560] sm:$0xff] }
  0x99   :  { %v216_v4 = vld [vmem:[%s3811_s0 + $0x610] sm:$0xff] }
  0x9a   :  { %959 = vmatmul.mubr.bf16.gmra.mrb[60].mxu0 %v351_v47  ;;  %v168_v47 = vld [vmem:[%s3811_s0 + $0x490] sm:$0xff] }
  0x9b   :  { %1160 = vmatprep.mubr.bf16.mxu0 %v251_v50  ;;  %v322_v50 = vpack.c.bf16 %v175_v48, %v168_v47  ;;  %v327_v48 = vpack.c.bf16 %v187_v42, %v180_v41  ;;  %v2657_v20 = vld [vmem:[%s3814_s3 + $0x30] sm:$0xff]  }
  0x9c   :  { %1120 = vmatmul.mubr.bf16.gmra.mrb[60].mxu1 %v353_v53  ;;  %v111_v53 = vld [vmem:[%s3811_s0 + $0x2c8] sm:$0xff] }
  0x9d   :  { %2519 = vmatprep.mubr.msk.bf16.mxu1 %vm757_vm0, %v252_v54  ;;  %v118_v54 = vld [vmem:[%s3811_s0 + $0x300] sm:$0xff] }
  0x9e   :  { %v293_v58 = vpack.c.bf16 %v118_v54, %v111_v53 }
  0xa2   :  { %1161 = vmatmul.mubr.bf16.vlgmr.msra.gmra.mrb[64].mxu0 %v250_v59  ;;  %v196_v59 = vld [vmem:[%s3811_s0 + $0x570] sm:$0xff] }
  0xa3   :  { %1168 = vmatprep.mubr.bf16.mxu0 %v258_v62  ;;  %v336_v62 = vpack.c.bf16 %v203_v60, %v196_v59  ;;  %v2655_v60 = vld [vmem:[%s3814_s3 + $0x20] sm:$0xff]  }
  0xa4   :  { %2520 = vmatmul.mubr.msk.bf16.vlgmr.msra.gmra.mrb[64].mxu1 %vm757_vm0, %v259_v1  ;;  %v125_v1 = vld [vmem:[%s3811_s0 + $0x338] sm:$0xff] }
  0xa5   :  { %2523 = vmatprep.mubr.msk.bf16.mxu1 %vm757_vm0, %v266_v2  ;;  %v132_v2 = vld [vmem:[%s3811_s0 + $0x370] sm:$0xff]  ;;  %2552 = vmatpush3.bf16.msra.mxu1 %v2651_v32 }
  0xa6   :  { %v300_v6 = vpack.c.bf16 %v132_v2, %v125_v1 }
  0xaa   :  { %1169 = vmatmul.mubr.bf16.gmra.mrb[68].mxu0 %v257_v7  ;;  %v224_v7 = vld [vmem:[%s3811_s0 + $0x650] sm:$0xff] }
  0xab   :  { %1176 = vmatprep.mubr.bf16.mxu0 %v265_v10  ;;  %v350_v10 = vpack.c.bf16 %v231_v8, %v224_v7  ;;  %v334_v8 = vpack.c.bf16 %v201_v0, %v194_v63 }
  0xac   :  { %2524 = vmatmul.mubr.msk.bf16.gmra.mrb[68].mxu1 %vm757_vm0, %v273_v13  ;;  %v139_v13 = vld [vmem:[%s3811_s0 + $0x3a8] sm:$0xff] }
  0xad   :  { %2527 = vmatprep.mubr.msk.bf16.mxu1 %vm757_vm0, %v280_v14  ;;  %v146_v14 = vld [vmem:[%s3811_s0 + $0x3e0] sm:$0xff] }
  0xae   :  { %v307_v18 = vpack.c.bf16 %v146_v14, %v139_v13 }
  0xb2   :  { %1177 = vmatmul.mubr.bf16.gmra.mrb[72].mxu0 %v264_v19  ;;  %v357_v19 = vpack.c.bf16 %v245_v17, %v238_v16 }
  0xb3   :  { %1184 = vmatprep.mubr.bf16.mxu0 %v272_v22  ;;  %v153_v22 = vld [vmem:[%s3811_s0 + $0x418] sm:$0xff] }
  0xb4   :  { %2528 = vmatmul.mubr.msk.bf16.gmra.mrb[72].mxu1 %vm757_vm0, %v287_v25  ;;  %v314_v25 = vpack.c.bf16 %v160_v23, %v153_v22  ;;  %v208_v23 = vld [vmem:[%s3811_s0 + $0x5d0] sm:$0xff] }
  0xb5   :  { %2531 = vmatprep.mubr.msk.bf16.mxu1 %vm757_vm0, %v294_v26  ;;  %v152_v26 = vld [vmem:[%s3811_s0 + $0x410] sm:$0xff] }
  0xb6   :  { %v313_v30 = vpack.c.bf16 %v159_v27, %v152_v26  ;;  %v223_v27 = vld [vmem:[%s3811_s0 + $0x648] sm:$0xff] }
  0xba   :  { %1185 = vmatmul.mubr.bf16.gmra.mrb[76].mxu0 %v271_v31  ;;  %v321_v31 = vpack.c.bf16 %v174_v29, %v167_v28  ;;  %v230_v28 = vld [vmem:[%s3811_s0 + $0x680] sm:$0xff] }
  0xbb   :  { %1192 = vmatprep.mubr.bf16.mxu0 %v279_v34  ;;  %v173_v34 = vld [vmem:[%s3811_s0 + $0x4b8] sm:$0xff]  ;;  %v349_v36 = vpack.c.bf16 %v230_v28, %v223_v27 }
  0xbc   :  { %2532 = vmatmul.mubr.msk.bf16.gmra.mrb[76].mxu1 %vm757_vm0, %v301_v37  ;;  %v320_v37 = vpack.c.bf16 %v173_v34, %v166_v33  ;;  %v2658_v33 = vld [vmem:[%s3814_s3 + $0x38] sm:$0xff]  }
  0xbd   :  { %2535 = vmatprep.mubr.msk.bf16.mxu1 %vm757_vm0, %v308_v38  ;;  %v2652_v38 = vld [vmem:[%s3814_s3 + $0x8] sm:$0xff]  }
  0xbe   :  { %2553 = vmatprep.subr.bf16.mxu1 %v2652_v38 }
  0xbf   :  { %2554 = vmatpush3.bf16.msra.mxu1 %v2652_v38 }
  0xc0   :  { %2555 = vmatprep.subr.bf16.mxu1 %v2653_v40 }
  0xc2   :  { %1193 = vmatmul.mubr.bf16.gmra.mrb[80].mxu0 %v278_v43  ;;  %v195_v43 = vld [vmem:[%s3811_s0 + $0x568] sm:$0xff] }
  0xc3   :  { %1200 = vmatprep.mubr.bf16.mxu0 %v286_v46  ;;  %2556 = vmatpush3.bf16.msra.mxu1 %v2653_v40  ;;  %v3521_v46 = vld [vmem:[%s3813_s2] ss:$0 sm:$0xff]  ;;  %v335_v52 = vpack.c.bf16 %v202_v44, %v195_v43 }
  0xc4   :  { %2536 = vmatmul.mubr.msk.bf16.gmra.mrb[80].mxu1 %vm757_vm0, %v315_v49  ;;  %v2654_v49 = vld [vmem:[%s3814_s3 + $0x18] sm:$0xff]  }
  0xc5   :  { %2539 = vmatprep.mubr.msk.bf16.mxu1 %vm757_vm0, %v322_v50  ;;  %2557 = vmatprep.subr.bf16.mxu1 %v2654_v49 }
  0xc7   :  { %2558 = vmatpush3.bf16.msra.mxu1 %v2654_v49 }
  0xc8   :  { %2559 = vmatprep.subr.bf16.mxu1 %v2655_v60 }
  0xca   :  { %1201 = vmatmul.mubr.bf16.gmra.mrb[84].mxu0 %v285_v55 }
  0xcb   :  { %1208 = vmatprep.mubr.bf16.mxu0 %v293_v58  ;;  %2560 = vmatpush3.bf16.msra.mxu1 %v2655_v60 }
  0xcc   :  { %2540 = vmatmul.mubr.msk.bf16.gmra.mrb[84].mxu1 %vm757_vm0, %v329_v61 }
  0xcd   :  { %2543 = vmatprep.mubr.msk.bf16.mxu1 %vm757_vm0, %v336_v62 }
  0xd2   :  { %1209 = vmatmul.mubr.bf16.gmra.mrb[88].mxu0 %v292_v3  ;;  %v209_v3 = vld [vmem:[%s3811_s0 + $0x5d8] sm:$0xff] }
  0xd3   :  { %1216 = vmatprep.mubr.bf16.mxu0 %v300_v6  ;;  %v342_v12 = vpack.c.bf16 %v216_v4, %v209_v3 }
  0xd4   :  { %2544 = vmatmul.mubr.msk.bf16.gmra.mrb[88].mxu1 %vm757_vm0, %v343_v9  ;;  %v2656_v9 = vld [vmem:[%s3814_s3 + $0x28] sm:$0xff]  }
  0xd5   :  { %2547 = vmatprep.mubr.msk.bf16.mxu1 %vm757_vm0, %v350_v10  ;;  %2561 = vmatprep.subr.bf16.mxu1 %v2656_v9 }
  0xd6   :  { %2562 = vmatpush3.bf16.msra.mxu1 %v2656_v9 }
  0xd7   :  { %2563 = vmatprep.subr.bf16.mxu1 %v2657_v20 }
  0xda   :  { %1217 = vmatmul.mubr.bf16.gmra.mrb[92].mxu0 %v299_v15  ;;  %2564 = vmatpush3.bf16.msra.mxu1 %v2657_v20 }
  0xdb   :  { %1224 = vmatprep.mubr.bf16.mxu0 %v307_v18  ;;  %2565 = vmatprep.subr.bf16.mxu1 %v2658_v33 }
  0xdc   :  { %2548 = vmatmul.mubr.msk.bf16.gmra.mrb[92].mxu1 %vm757_vm0, %v357_v19 }
  0xde   :  { %2566 = vmatpush3.bf16.msra.mxu1 %v2658_v33 }
  0xe2   :  { %1225 = vmatmul.mubr.bf16.gmra.mrb[96].mxu0 %v306_v24  ;;  %v215_v24 = vld [vmem:[%s3811_s0 + $0x608] sm:$0xff] }
  0xe3   :  { %1232 = vmatprep.mubr.bf16.mxu0 %v314_v25  ;;  %v341_v32 = vpack.c.bf16 %v215_v24, %v208_v23 }
  0xea   :  { %1233 = vmatmul.mubr.bf16.gmra.mrb[100].mxu0 %v313_v30 }
  0xeb   :  { %1240 = vmatprep.mubr.bf16.mxu0 %v321_v31 }
  0xf2   :  { %1241 = vmatmul.mubr.bf16.gmra.mrb[104].mxu0 %v320_v37 }
  0xf3   :  { %1248 = vmatprep.mubr.bf16.mxu0 %v328_v39 }
  0xf5   :  { %v2156_v45 = vpop.f32.mrb[0].mxu0 }
  0xf6   :  { %v2157_v47 = vpop.f32.mrb[1].mxu0 }
  0xf7   :  { %v2158_v50 = vadd.f32 %v2157_v47, %v2156_v45  ;;  %v2159_v51 = vpop.f32.mrb[2].mxu0  ;;  %v2268_v53 = vpop.f32.mrb[0].mxu1  ;;  %v222_v47 = vld [vmem:[%s3811_s0 + $0x640] sm:$0xff] }
  0xf8   :  { %v2160_v54 = vpop.f32.mrb[3].mxu0  ;;  %v2269_v57 = vpop.f32.mrb[1].mxu1 }
  0xf9   :  { %v841_v55 = vadd.f32 %v2158_v50, %v3521_v46  ;;  %v2161_v56 = vadd.f32 %v2160_v54, %v2159_v51  ;;  %v2270_v58 = vadd.f32 %v2269_v57, %v2268_v53  ;;  %v2271_v59 = vpop.f32.mrb[2].mxu1  ;;  %v237_v51 = vld [vmem:[%s3811_s0 + $0x6b8] sm:$0xff] }
  0xfa   :  { %1249 = vmatmul.mubr.bf16.gmra.mrb[108].mxu0 %v327_v48  ;;  %v2272_v62 = vpop.f32.mrb[3].mxu1  ;;  %v229_v48 = vld [vmem:[%s3811_s0 + $0x678] sm:$0xff] }
  0xfb   :  { %v844_v61 = vadd.f32 %v2161_v56, %v3521_v46  ;;  %1256 = vmatprep.mubr.bf16.mxu0 %v335_v52  ;;  %v3537_v1 = vadd.f32 %v2270_v58, %v841_v55  ;;  %v2273_v2 = vadd.f32 %v2272_v62, %v2271_v59  ;;  %v244_v52 = vld [vmem:[%s3811_s0 + $0x6f0] sm:$0xff]  ;;  %v348_v56 = vpack.c.bf16 %v229_v48, %v222_v47 }
  0xfc   :  { %v356_v59 = vpack.c.bf16 %v244_v52, %v237_v51 }
  0xfd   :  { %v2162_v5 = vpop.f32.mrb[4].mxu0  ;;  %v3545_v6 = vadd.f32 %v2273_v2, %v844_v61 }
  0xfe   :  { %v2163_v7 = vpop.f32.mrb[5].mxu0 }
  0xff   :  { %v2164_v10 = vadd.f32 %v2163_v7, %v2162_v5  ;;  %v2165_v11 = vpop.f32.mrb[6].mxu0  ;;  %v2274_v13 = vpop.f32.mrb[4].mxu1  ;;  %v236_v7 = vld [vmem:[%s3811_s0 + $0x6b0] sm:$0xff] }
 0x100   :  { %v2166_v14 = vpop.f32.mrb[7].mxu0  ;;  %v2275_v17 = vpop.f32.mrb[5].mxu1 }
 0x101   :  { %v849_v15 = vadd.f32 %v2164_v10, %v3521_v46  ;;  %v2167_v16 = vadd.f32 %v2166_v14, %v2165_v11  ;;  %v2276_v18 = vadd.f32 %v2275_v17, %v2274_v13  ;;  %v2277_v19 = vpop.f32.mrb[6].mxu1 }
 0x102   :  { %1257 = vmatmul.mubr.bf16.gmra.mrb[112].mxu0 %v334_v8  ;;  %v2278_v22 = vpop.f32.mrb[7].mxu1  ;;  %v243_v8 = vld [vmem:[%s3811_s0 + $0x6e8] sm:$0xff] }
 0x103   :  { %v852_v21 = vadd.f32 %v2167_v16, %v3521_v46  ;;  %1264 = vmatprep.mubr.bf16.mxu0 %v342_v12  ;;  %v3561_v25 = vadd.f32 %v2276_v18, %v849_v15  ;;  %v2279_v26 = vadd.f32 %v2278_v22, %v2277_v19  ;;  %v355_v14 = vpack.c.bf16 %v243_v8, %v236_v7 }
 0x105   :  { %v2168_v29 = vpop.f32.mrb[8].mxu0  ;;  %v3569_v30 = vadd.f32 %v2279_v26, %v852_v21 }
 0x106   :  { %v2169_v31 = vpop.f32.mrb[9].mxu0 }
 0x107   :  { %v2170_v34 = vadd.f32 %v2169_v31, %v2168_v29  ;;  %v2171_v35 = vpop.f32.mrb[10].mxu0  ;;  %v2280_v37 = vpop.f32.mrb[8].mxu1 }
 0x108   :  { %v2172_v38 = vpop.f32.mrb[11].mxu0  ;;  %v2281_v41 = vpop.f32.mrb[9].mxu1 }
 0x109   :  { %v857_v39 = vadd.f32 %v2170_v34, %v3521_v46  ;;  %v2173_v40 = vadd.f32 %v2172_v38, %v2171_v35  ;;  %v2282_v42 = vadd.f32 %v2281_v41, %v2280_v37  ;;  %v2283_v43 = vpop.f32.mrb[10].mxu1 }
 0x10a   :  { %1265 = vmatmul.mubr.bf16.gmra.mrb[116].mxu0 %v341_v32  ;;  %v2284_v45 = vpop.f32.mrb[11].mxu1 }
 0x10b   :  { %v860_v44 = vadd.f32 %v2173_v40, %v3521_v46  ;;  %1272 = vmatprep.mubr.bf16.mxu0 %v349_v36  ;;  %v3582_v49 = vadd.f32 %v2282_v42, %v857_v39  ;;  %v2285_v50 = vadd.f32 %v2284_v45, %v2283_v43 }
 0x10d   :  { %v2174_v53 = vpop.f32.mrb[12].mxu0  ;;  %v3590_v54 = vadd.f32 %v2285_v50, %v860_v44 }
 0x10e   :  { %v2175_v55 = vpop.f32.mrb[13].mxu0 }
 0x10f   :  { %v2176_v57 = vadd.f32 %v2175_v55, %v2174_v53  ;;  %v2177_v58 = vpop.f32.mrb[14].mxu0  ;;  %v2286_v60 = vpop.f32.mrb[12].mxu1 }
 0x110   :  { %v2178_v61 = vpop.f32.mrb[15].mxu0  ;;  %v2287_v0 = vpop.f32.mrb[13].mxu1 }
 0x111   :  { %v865_v62 = vadd.f32 %v2176_v57, %v3521_v46  ;;  %v2179_v63 = vadd.f32 %v2178_v61, %v2177_v58  ;;  %v2288_v2 = vadd.f32 %v2287_v0, %v2286_v60  ;;  %v2289_v3 = vpop.f32.mrb[14].mxu1 }
 0x112   :  { %1273 = vmatmul.mubr.bf16.gmra.mrb[120].mxu0 %v348_v56  ;;  %v2290_v5 = vpop.f32.mrb[15].mxu1 }
 0x113   :  { %v868_v4 = vadd.f32 %v2179_v63, %v3521_v46  ;;  %1280 = vmatprep.mubr.bf16.mxu0 %v356_v59  ;;  %v3600_v9 = vadd.f32 %v2288_v2, %v865_v62  ;;  %v2291_v10 = vadd.f32 %v2290_v5, %v2289_v3 }
 0x115   :  { %v2180_v11 = vpop.f32.mrb[16].mxu0  ;;  %v3602_v12 = vadd.f32 %v2291_v10, %v868_v4 }
 0x116   :  { %v2181_v13 = vpop.f32.mrb[17].mxu0 }
 0x117   :  { %v2182_v15 = vadd.f32 %v2181_v13, %v2180_v11  ;;  %v2183_v16 = vpop.f32.mrb[18].mxu0  ;;  %v2292_v17 = vpop.f32.mrb[16].mxu1 }
 0x118   :  { %v2184_v18 = vpop.f32.mrb[19].mxu0  ;;  %v2293_v21 = vpop.f32.mrb[17].mxu1 }
 0x119   :  { %v873_v19 = vadd.f32 %v2182_v15, %v3521_v46  ;;  %v2185_v20 = vadd.f32 %v2184_v18, %v2183_v16  ;;  %v2294_v22 = vadd.f32 %v2293_v21, %v2292_v17  ;;  %v2295_v23 = vpop.f32.mrb[18].mxu1 }
 0x11a   :  { %1281 = vmatmul.mubr.bf16.gmra.mrb[124].mxu0 %v355_v14  ;;  %v2296_v26 = vpop.f32.mrb[19].mxu1 }
 0x11b   :  { %v876_v24 = vadd.f32 %v2185_v20, %v3521_v46  ;;  %v3606_v27 = vadd.f32 %v2294_v22, %v873_v19  ;;  %v2297_v28 = vadd.f32 %v2296_v26, %v2295_v23 }
 0x11d   :  { %v2186_v29 = vpop.f32.mrb[20].mxu0  ;;  %v3608_v31 = vadd.f32 %v2297_v28, %v876_v24 }
 0x11e   :  { %v2187_v32 = vpop.f32.mrb[21].mxu0 }
 0x11f   :  { %v2188_v33 = vadd.f32 %v2187_v32, %v2186_v29  ;;  %v2189_v34 = vpop.f32.mrb[22].mxu0  ;;  %v2298_v35 = vpop.f32.mrb[20].mxu1 }
 0x120   :  { %v2190_v36 = vpop.f32.mrb[23].mxu0  ;;  %v2299_v39 = vpop.f32.mrb[21].mxu1 }
 0x121   :  { %v881_v37 = vadd.f32 %v2188_v33, %v3521_v46  ;;  %v2191_v38 = vadd.f32 %v2190_v36, %v2189_v34  ;;  %v2300_v40 = vadd.f32 %v2299_v39, %v2298_v35  ;;  %v2301_v41 = vpop.f32.mrb[22].mxu1 }
 0x122   :  { %v2302_v43 = vpop.f32.mrb[23].mxu1 }
 0x123   :  { %v884_v42 = vadd.f32 %v2191_v38, %v3521_v46  ;;  %v3612_v44 = vadd.f32 %v2300_v40, %v881_v37  ;;  %v2303_v45 = vadd.f32 %v2302_v43, %v2301_v41 }
 0x125   :  { %v2192_v47 = vpop.f32.mrb[24].mxu0  ;;  %v3614_v48 = vadd.f32 %v2303_v45, %v884_v42 }
 0x126   :  { %v2193_v50 = vpop.f32.mrb[25].mxu0 }
 0x127   :  { %v2194_v51 = vadd.f32 %v2193_v50, %v2192_v47  ;;  %v2195_v52 = vpop.f32.mrb[26].mxu0  ;;  %v2304_v53 = vpop.f32.mrb[24].mxu1 }
 0x128   :  { %v2196_v55 = vpop.f32.mrb[27].mxu0  ;;  %v2305_v58 = vpop.f32.mrb[25].mxu1 }
 0x129   :  { %v889_v56 = vadd.f32 %v2194_v51, %v3521_v46  ;;  %v2197_v57 = vadd.f32 %v2196_v55, %v2195_v52  ;;  %v2306_v59 = vadd.f32 %v2305_v58, %v2304_v53  ;;  %v2307_v60 = vpop.f32.mrb[26].mxu1 }
 0x12a   :  { %v2308_v62 = vpop.f32.mrb[27].mxu1 }
 0x12b   :  { %v892_v61 = vadd.f32 %v2197_v57, %v3521_v46  ;;  %v3618_v63 = vadd.f32 %v2306_v59, %v889_v56  ;;  %v2309_v0 = vadd.f32 %v2308_v62, %v2307_v60 }
 0x12d   :  { %v2198_v2 = vpop.f32.mrb[28].mxu0  ;;  %v3620_v3 = vadd.f32 %v2309_v0, %v892_v61 }
 0x12e   :  { %v2199_v4 = vpop.f32.mrb[29].mxu0 }
 0x12f   :  { %v2200_v5 = vadd.f32 %v2199_v4, %v2198_v2  ;;  %v2201_v7 = vpop.f32.mrb[30].mxu0  ;;  %v2310_v8 = vpop.f32.mrb[28].mxu1 }
 0x130   :  { %v2202_v10 = vpop.f32.mrb[31].mxu0  ;;  %v2311_v14 = vpop.f32.mrb[29].mxu1 }
 0x131   :  { %v897_v11 = vadd.f32 %v2200_v5, %v3521_v46  ;;  %v2203_v13 = vadd.f32 %v2202_v10, %v2201_v7  ;;  %v2312_v15 = vadd.f32 %v2311_v14, %v2310_v8  ;;  %v2313_v16 = vpop.f32.mrb[30].mxu1 }
 0x132   :  { %v2314_v18 = vpop.f32.mrb[31].mxu1 }
 0x133   :  { %v900_v17 = vadd.f32 %v2203_v13, %v3521_v46  ;;  %v3624_v19 = vadd.f32 %v2312_v15, %v897_v11  ;;  %v2315_v20 = vadd.f32 %v2314_v18, %v2313_v16 }
 0x135   :  { %v2204_v21 = vpop.f32.mrb[32].mxu0  ;;  %v3626_v22 = vadd.f32 %v2315_v20, %v900_v17 }
 0x136   :  { %v2205_v23 = vpop.f32.mrb[33].mxu0 }
 0x137   :  { %v2206_v24 = vadd.f32 %v2205_v23, %v2204_v21  ;;  %v2207_v26 = vpop.f32.mrb[34].mxu0  ;;  %v2316_v28 = vpop.f32.mrb[32].mxu1 }
 0x138   :  { %v2208_v29 = vpop.f32.mrb[35].mxu0  ;;  %v2317_v34 = vpop.f32.mrb[33].mxu1 }
 0x139   :  { %v905_v32 = vadd.f32 %v2206_v24, %v3521_v46  ;;  %v2209_v33 = vadd.f32 %v2208_v29, %v2207_v26  ;;  %v2318_v35 = vadd.f32 %v2317_v34, %v2316_v28  ;;  %v2319_v36 = vpop.f32.mrb[34].mxu1 }
 0x13a   :  { %v2320_v38 = vpop.f32.mrb[35].mxu1 }
 0x13b   :  { %v908_v37 = vadd.f32 %v2209_v33, %v3521_v46  ;;  %v3630_v39 = vadd.f32 %v2318_v35, %v905_v32  ;;  %v2321_v40 = vadd.f32 %v2320_v38, %v2319_v36 }
 0x13d   :  { %v2210_v41 = vpop.f32.mrb[36].mxu0  ;;  %v3632_v42 = vadd.f32 %v2321_v40, %v908_v37 }
 0x13e   :  { %v2211_v43 = vpop.f32.mrb[37].mxu0 }
 0x13f   :  { %v2212_v45 = vadd.f32 %v2211_v43, %v2210_v41  ;;  %v2213_v47 = vpop.f32.mrb[38].mxu0  ;;  %v2322_v50 = vpop.f32.mrb[36].mxu1 }
 0x140   :  { %v2214_v51 = vpop.f32.mrb[39].mxu0  ;;  %v2323_v55 = vpop.f32.mrb[37].mxu1 }
 0x141   :  { %v913_v52 = vadd.f32 %v2212_v45, %v3521_v46  ;;  %v2215_v53 = vadd.f32 %v2214_v51, %v2213_v47  ;;  %v2324_v56 = vadd.f32 %v2323_v55, %v2322_v50  ;;  %v2325_v57 = vpop.f32.mrb[38].mxu1 }
 0x142   :  { %v2326_v59 = vpop.f32.mrb[39].mxu1 }
 0x143   :  { %v916_v58 = vadd.f32 %v2215_v53, %v3521_v46  ;;  %v3636_v60 = vadd.f32 %v2324_v56, %v913_v52  ;;  %v2327_v61 = vadd.f32 %v2326_v59, %v2325_v57 }
 0x145   :  { %v2216_v62 = vpop.f32.mrb[40].mxu0  ;;  %v3638_v0 = vadd.f32 %v2327_v61, %v916_v58 }
 0x146   :  { %v2217_v2 = vpop.f32.mrb[41].mxu0 }
 0x147   :  { %v2218_v4 = vadd.f32 %v2217_v2, %v2216_v62  ;;  %v2219_v5 = vpop.f32.mrb[42].mxu0  ;;  %v2328_v7 = vpop.f32.mrb[40].mxu1 }
 0x148   :  { %v2220_v8 = vpop.f32.mrb[43].mxu0  ;;  %v2329_v13 = vpop.f32.mrb[41].mxu1 }
 0x149   :  { %v921_v10 = vadd.f32 %v2218_v4, %v3521_v46  ;;  %v2221_v11 = vadd.f32 %v2220_v8, %v2219_v5  ;;  %v2330_v14 = vadd.f32 %v2329_v13, %v2328_v7  ;;  %v2331_v15 = vpop.f32.mrb[42].mxu1 }
 0x14a   :  { %v2332_v17 = vpop.f32.mrb[43].mxu1 }
 0x14b   :  { %v924_v16 = vadd.f32 %v2221_v11, %v3521_v46  ;;  %v3642_v18 = vadd.f32 %v2330_v14, %v921_v10  ;;  %v2333_v20 = vadd.f32 %v2332_v17, %v2331_v15 }
 0x14d   :  { %v2222_v21 = vpop.f32.mrb[44].mxu0  ;;  %v3644_v23 = vadd.f32 %v2333_v20, %v924_v16 }
 0x14e   :  { %v2223_v24 = vpop.f32.mrb[45].mxu0 }
 0x14f   :  { %v2224_v26 = vadd.f32 %v2223_v24, %v2222_v21  ;;  %v2225_v28 = vpop.f32.mrb[46].mxu0  ;;  %v2334_v29 = vpop.f32.mrb[44].mxu1 }
 0x150   :  { %v2226_v32 = vpop.f32.mrb[47].mxu0  ;;  %v2335_v35 = vpop.f32.mrb[45].mxu1 }
 0x151   :  { %v929_v33 = vadd.f32 %v2224_v26, %v3521_v46  ;;  %v2227_v34 = vadd.f32 %v2226_v32, %v2225_v28  ;;  %v2336_v36 = vadd.f32 %v2335_v35, %v2334_v29  ;;  %v2337_v37 = vpop.f32.mrb[46].mxu1 }
 0x152   :  { %v2338_v40 = vpop.f32.mrb[47].mxu1 }
 0x153   :  { %v932_v38 = vadd.f32 %v2227_v34, %v3521_v46  ;;  %v3648_v41 = vadd.f32 %v2336_v36, %v929_v33  ;;  %v2339_v43 = vadd.f32 %v2338_v40, %v2337_v37 }
 0x155   :  { %v2228_v45 = vpop.f32.mrb[48].mxu0  ;;  %v3650_v47 = vadd.f32 %v2339_v43, %v932_v38 }
 0x156   :  { %v2229_v50 = vpop.f32.mrb[49].mxu0 }
 0x157   :  { %v2230_v51 = vadd.f32 %v2229_v50, %v2228_v45  ;;  %v2231_v52 = vpop.f32.mrb[50].mxu0  ;;  %v2340_v53 = vpop.f32.mrb[48].mxu1 }
 0x158   :  { %v2232_v55 = vpop.f32.mrb[51].mxu0  ;;  %v2341_v58 = vpop.f32.mrb[49].mxu1 }
 0x159   :  { %v937_v56 = vadd.f32 %v2230_v51, %v3521_v46  ;;  %v2233_v57 = vadd.f32 %v2232_v55, %v2231_v52  ;;  %v2342_v59 = vadd.f32 %v2341_v58, %v2340_v53  ;;  %v2343_v61 = vpop.f32.mrb[50].mxu1 }
 0x15a   :  { %v2344_v2 = vpop.f32.mrb[51].mxu1 }
 0x15b   :  { %v940_v62 = vadd.f32 %v2233_v57, %v3521_v46  ;;  %v3654_v4 = vadd.f32 %v2342_v59, %v937_v56  ;;  %v2345_v5 = vadd.f32 %v2344_v2, %v2343_v61 }
 0x15d   :  { %v2234_v7 = vpop.f32.mrb[52].mxu0  ;;  %v3656_v8 = vadd.f32 %v2345_v5, %v940_v62 }
 0x15e   :  { %v2235_v10 = vpop.f32.mrb[53].mxu0 }
 0x15f   :  { %v2236_v11 = vadd.f32 %v2235_v10, %v2234_v7  ;;  %v2237_v13 = vpop.f32.mrb[54].mxu0  ;;  %v2346_v14 = vpop.f32.mrb[52].mxu1 }
 0x160   :  { %v2238_v15 = vpop.f32.mrb[55].mxu0  ;;  %v2347_v20 = vpop.f32.mrb[53].mxu1 }
 0x161   :  { %v945_v16 = vadd.f32 %v2236_v11, %v3521_v46  ;;  %v2239_v17 = vadd.f32 %v2238_v15, %v2237_v13  ;;  %v2348_v21 = vadd.f32 %v2347_v20, %v2346_v14  ;;  %v2349_v24 = vpop.f32.mrb[54].mxu1 }
 0x162   :  { %v2350_v28 = vpop.f32.mrb[55].mxu1 }
 0x163   :  { %v948_v26 = vadd.f32 %v2239_v17, %v3521_v46  ;;  %v3660_v29 = vadd.f32 %v2348_v21, %v945_v16  ;;  %v2351_v32 = vadd.f32 %v2350_v28, %v2349_v24 }
 0x165   :  { %v2240_v33 = vpop.f32.mrb[56].mxu0  ;;  %v3662_v34 = vadd.f32 %v2351_v32, %v948_v26 }
 0x166   :  { %v2241_v35 = vpop.f32.mrb[57].mxu0 }
 0x167   :  { %v2242_v36 = vadd.f32 %v2241_v35, %v2240_v33  ;;  %v2243_v37 = vpop.f32.mrb[58].mxu0  ;;  %v2352_v38 = vpop.f32.mrb[56].mxu1 }
 0x168   :  { %v2244_v40 = vpop.f32.mrb[59].mxu0  ;;  %v2353_v50 = vpop.f32.mrb[57].mxu1 }
 0x169   :  { %v953_v43 = vadd.f32 %v2242_v36, %v3521_v46  ;;  %v2245_v45 = vadd.f32 %v2244_v40, %v2243_v37  ;;  %v2354_v51 = vadd.f32 %v2353_v50, %v2352_v38  ;;  %v2355_v52 = vpop.f32.mrb[58].mxu1 }
 0x16a   :  { %v2356_v55 = vpop.f32.mrb[59].mxu1 }
 0x16b   :  { %v956_v53 = vadd.f32 %v2245_v45, %v3521_v46  ;;  %v3666_v56 = vadd.f32 %v2354_v51, %v953_v43  ;;  %v2357_v57 = vadd.f32 %v2356_v55, %v2355_v52 }
 0x16d   :  { %v2246_v58 = vpop.f32.mrb[60].mxu0  ;;  %v3668_v59 = vadd.f32 %v2357_v57, %v956_v53 }
 0x16e   :  { %v2247_v61 = vpop.f32.mrb[61].mxu0 }
 0x16f   :  { %v2248_v62 = vadd.f32 %v2247_v61, %v2246_v58  ;;  %v2249_v2 = vpop.f32.mrb[62].mxu0  ;;  %v2358_v5 = vpop.f32.mrb[60].mxu1 }
 0x170   :  { %v2250_v7 = vpop.f32.mrb[63].mxu0  ;;  %v2359_v13 = vpop.f32.mrb[61].mxu1 }
 0x171   :  { %v961_v10 = vadd.f32 %v2248_v62, %v3521_v46  ;;  %v2251_v11 = vadd.f32 %v2250_v7, %v2249_v2  ;;  %v2360_v14 = vadd.f32 %v2359_v13, %v2358_v5  ;;  %v2361_v15 = vpop.f32.mrb[62].mxu1 }
 0x172   :  { %v2362_v17 = vpop.f32.mrb[63].mxu1 }
 0x173   :  { %v964_v16 = vadd.f32 %v2251_v11, %v3521_v46  ;;  %v3672_v20 = vadd.f32 %v2360_v14, %v961_v10  ;;  %v2363_v21 = vadd.f32 %v2362_v17, %v2361_v15 }
 0x175   :  { %v2380_v24 = vpop.f32.mrb[64].mxu0  ;;  %v3674_v26 = vadd.f32 %v2363_v21, %v964_v16 }
 0x176   :  { %v2381_v28 = vpop.f32.mrb[65].mxu0 }
 0x177   :  { %v2382_v32 = vadd.f32 %v2381_v28, %v2380_v24  ;;  %v2383_v33 = vpop.f32.mrb[66].mxu0  ;;  %v2521_v36 = vpop.f32.mrb[64].mxu1 }
 0x178   :  { %v2384_v35 = vpop.f32.mrb[67].mxu0  ;;  %v1323_v40 = vpop.f32.mrb[65].mxu1 }
 0x179   :  { %v2385_v37 = vadd.f32 %v2384_v35, %v2383_v33  ;;  %v1163_v38 = vadd.f32 %v2382_v32, %v3537_v1  ;;  %v2522_v43 = vpop.f32.mrb[66].mxu1 }
 0x17a   :  { %v1326_v50 = vpop.f32.mrb[67].mxu1 }
 0x17b   :  { %v1324_v45 = vadd.f32 %v1323_v40, %v1163_v38  ;;  %v1166_v46 = vadd.f32 %v2385_v37, %v3545_v6 }
 0x17d   :  { %v1327_v51 = vadd.f32 %v1326_v50, %v1166_v46  ;;  %v2386_v52 = vpop.f32.mrb[68].mxu0  ;;  %v1450_v55 = vmax.f32 %v1324_v45, 0.0 }
 0x17e   :  { %v2387_v53 = vpop.f32.mrb[69].mxu0 }
 0x17f   :  { %v1451_v57 = vmax.f32 %v1327_v51, 0.0  ;;  %v2388_v58 = vadd.f32 %v2387_v53, %v2386_v52  ;;  %v2389_v61 = vpop.f32.mrb[70].mxu0  ;;  %v2525_v2 = vpop.f32.mrb[68].mxu1 }
 0x180   :  { %v2390_v62 = vpop.f32.mrb[71].mxu0  ;;  %v1339_v1 = vpop.f32.mrb[69].mxu1 }
 0x181   :  { %v1482_v5 = vpack.c.bf16 %v1451_v57, %v1450_v55  ;;  %v1171_v7 = vadd.f32 %v2388_v58, %v3561_v25  ;;  %v2391_v10 = vadd.f32 %v2390_v62, %v2389_v61  ;;  %v2526_v11 = vpop.f32.mrb[70].mxu1 }
 0x182   :  { %v1342_v6 = vpop.f32.mrb[71].mxu1 }
 0x183   :  { %v1332_v13 = vadd.f32 %v2521_v36, %v1171_v7  ;;  %v1174_v14 = vadd.f32 %v2391_v10, %v3569_v30  ;;  %2567 = vmatprep.mubr.bf16.mxu1 %v1482_v5 }
 0x185   :  { %v1335_v15 = vadd.f32 %v2522_v43, %v1174_v14  ;;  %v2392_v16 = vpop.f32.mrb[72].mxu0  ;;  %v1452_v21 = vmax.f32 %v1332_v13, 0.0 }
 0x186   :  { %v2393_v17 = vpop.f32.mrb[73].mxu0 }
 0x187   :  { %v1453_v24 = vmax.f32 %v1335_v15, 0.0  ;;  %v2394_v28 = vadd.f32 %v2393_v17, %v2392_v16  ;;  %v2395_v32 = vpop.f32.mrb[74].mxu0  ;;  %v2529_v35 = vpop.f32.mrb[72].mxu1 }
 0x188   :  { %v2396_v33 = vpop.f32.mrb[75].mxu0  ;;  %v1355_v40 = vpop.f32.mrb[73].mxu1 }
 0x189   :  { %v1483_v37 = vpack.c.bf16 %v1453_v24, %v1452_v21  ;;  %v2397_v38 = vadd.f32 %v2396_v33, %v2395_v32  ;;  %v1179_v25 = vadd.f32 %v2394_v28, %v3582_v49  ;;  %v2530_v45 = vpop.f32.mrb[74].mxu1 }
 0x18a   :  { %v1358_v46 = vpop.f32.mrb[75].mxu1 }
 0x18b   :  { %v1340_v36 = vadd.f32 %v1339_v1, %v1179_v25  ;;  %2568 = vmatmul.mubr.bf16.vlgmr.msra.gmra.mrb[96].mxu1 %v1483_v37  ;;  %v1182_v30 = vadd.f32 %v2397_v38, %v3590_v54 }
 0x18d   :  { %v1343_v43 = vadd.f32 %v1342_v6, %v1182_v30  ;;  %v2398_v50 = vpop.f32.mrb[76].mxu0  ;;  %v1454_v52 = vmax.f32 %v1340_v36, 0.0 }
 0x18e   :  { %v2399_v51 = vpop.f32.mrb[77].mxu0 }
 0x18f   :  { %v1455_v53 = vmax.f32 %v1343_v43, 0.0  ;;  %v2400_v55 = vadd.f32 %v2399_v51, %v2398_v50  ;;  %v2401_v57 = vpop.f32.mrb[78].mxu0  ;;  %v3682_v61 = vpop.f32.mrb[76].mxu1 }
 0x190   :  { %v2402_v58 = vpop.f32.mrb[79].mxu0  ;;  %v1371_v7 = vpop.f32.mrb[77].mxu1 }
 0x191   :  { %v1484_v62 = vpack.c.bf16 %v1455_v53, %v1454_v52  ;;  %v1187_v49 = vadd.f32 %v2400_v55, %v3600_v9  ;;  %v2403_v5 = vadd.f32 %v2402_v58, %v2401_v57  ;;  %v3685_v10 = vpop.f32.mrb[78].mxu1 }
 0x192   :  { %v1374_v13 = vpop.f32.mrb[79].mxu1 }
 0x193   :  { %v1348_v1 = vadd.f32 %v2525_v2, %v1187_v49  ;;  %v1190_v54 = vadd.f32 %v2403_v5, %v3602_v12  ;;  %2571 = vmatprep.mubr.bf16.mxu1 %v1484_v62 }
 0x195   :  { %v1351_v14 = vadd.f32 %v2526_v11, %v1190_v54  ;;  %v2404_v6 = vpop.f32.mrb[80].mxu0  ;;  %v1456_v16 = vmax.f32 %v1348_v1, 0.0 }
 0x196   :  { %v2405_v15 = vpop.f32.mrb[81].mxu0 }
 0x197   :  { %v1457_v17 = vmax.f32 %v1351_v14, 0.0  ;;  %v2406_v21 = vadd.f32 %v2405_v15, %v2404_v6  ;;  %v2407_v24 = vpop.f32.mrb[82].mxu0  ;;  %v3688_v32 = vpop.f32.mrb[80].mxu1 }
 0x198   :  { %v2408_v28 = vpop.f32.mrb[83].mxu0  ;;  %v3691_v38 = vpop.f32.mrb[81].mxu1 }
 0x199   :  { %v2409_v9 = vadd.f32 %v2408_v28, %v2407_v24  ;;  %v1195_v33 = vadd.f32 %v2406_v21, %v3606_v27  ;;  %v1485_v37 = vpack.c.bf16 %v1457_v17, %v1456_v16  ;;  %v3693_v2 = vpop.f32.mrb[82].mxu1 }
 0x19a   :  { %v3696_v25 = vpop.f32.mrb[83].mxu1 }
 0x19b   :  { %v1356_v12 = vadd.f32 %v1355_v40, %v1195_v33  ;;  %2572 = vmatmul.mubr.bf16.gmra.mrb[100].mxu1 %v1485_v37  ;;  %v1198_v11 = vadd.f32 %v2409_v9, %v3608_v31 }
 0x19d   :  { %v1359_v36 = vadd.f32 %v1358_v46, %v1198_v11  ;;  %v2410_v30 = vpop.f32.mrb[84].mxu0  ;;  %v1458_v50 = vmax.f32 %v1356_v12, 0.0 }
 0x19e   :  { %v2411_v43 = vpop.f32.mrb[85].mxu0 }
 0x19f   :  { %v1459_v51 = vmax.f32 %v1359_v36, 0.0  ;;  %v2412_v52 = vadd.f32 %v2411_v43, %v2410_v30  ;;  %v2413_v53 = vpop.f32.mrb[86].mxu0  ;;  %v3698_v27 = vpop.f32.mrb[84].mxu1 }
 0x1a0   :  { %v2414_v55 = vpop.f32.mrb[87].mxu0  ;;  %v3701_v40 = vpop.f32.mrb[85].mxu1 }
 0x1a1   :  { %v1486_v57 = vpack.c.bf16 %v1459_v51, %v1458_v50  ;;  %v1203_v58 = vadd.f32 %v2412_v52, %v3612_v44  ;;  %v2415_v62 = vadd.f32 %v2414_v55, %v2413_v53  ;;  %v3703_v49 = vpop.f32.mrb[86].mxu1 }
 0x1a2   :  { %v3706_v5 = vpop.f32.mrb[87].mxu1 }
 0x1a3   :  { %v1364_v31 = vadd.f32 %v2529_v35, %v1203_v58  ;;  %v1206_v46 = vadd.f32 %v2415_v62, %v3614_v48  ;;  %2575 = vmatprep.mubr.bf16.mxu1 %v1486_v57 }
 0x1a5   :  { %v1367_v1 = vadd.f32 %v2530_v45, %v1206_v46  ;;  %v2416_v54 = vpop.f32.mrb[88].mxu0  ;;  %v1460_v6 = vmax.f32 %v1364_v31, 0.0 }
 0x1a6   :  { %v2417_v14 = vpop.f32.mrb[89].mxu0 }
 0x1a7   :  { %v1461_v15 = vmax.f32 %v1367_v1, 0.0  ;;  %v2418_v16 = vadd.f32 %v2417_v14, %v2416_v54  ;;  %v2419_v17 = vpop.f32.mrb[90].mxu0  ;;  %v3708_v44 = vpop.f32.mrb[88].mxu1 }
 0x1a8   :  { %v2420_v21 = vpop.f32.mrb[91].mxu0  ;;  %v3711_v35 = vpop.f32.mrb[89].mxu1 }
 0x1a9   :  { %v2421_v24 = vadd.f32 %v2420_v21, %v2419_v17  ;;  %v1211_v28 = vadd.f32 %v2418_v16, %v3618_v63  ;;  %v1487_v9 = vpack.c.bf16 %v1461_v15, %v1460_v6  ;;  %v3713_v48 = vpop.f32.mrb[90].mxu1 }
 0x1aa   :  { %v3716_v37 = vpop.f32.mrb[91].mxu1 }
 0x1ab   :  { %v1372_v33 = vadd.f32 %v1371_v7, %v1211_v28  ;;  %2576 = vmatmul.mubr.bf16.gmra.mrb[104].mxu1 %v1487_v9  ;;  %v1214_v45 = vadd.f32 %v2421_v24, %v3620_v3 }
 0x1ad   :  { %v1375_v12 = vadd.f32 %v1374_v13, %v1214_v45  ;;  %v2422_v11 = vpop.f32.mrb[92].mxu0  ;;  %v1462_v30 = vmax.f32 %v1372_v33, 0.0 }
 0x1ae   :  { %v2423_v36 = vpop.f32.mrb[93].mxu0 }
 0x1af   :  { %v1463_v43 = vmax.f32 %v1375_v12, 0.0  ;;  %v2424_v50 = vadd.f32 %v2423_v36, %v2422_v11  ;;  %v2425_v51 = vpop.f32.mrb[94].mxu0  ;;  %v3718_v63 = vpop.f32.mrb[92].mxu1 }
 0x1b0   :  { %v2426_v52 = vpop.f32.mrb[95].mxu0  ;;  %v3721_v7 = vpop.f32.mrb[93].mxu1 }
 0x1b1   :  { %v1488_v53 = vpack.c.bf16 %v1463_v43, %v1462_v30  ;;  %v1219_v55 = vadd.f32 %v2424_v50, %v3624_v19  ;;  %v2427_v57 = vadd.f32 %v2426_v52, %v2425_v51  ;;  %v3723_v58 = vpop.f32.mrb[94].mxu1 }
 0x1b2   :  { %v3727_v62 = vpop.f32.mrb[95].mxu1 }
 0x1b3   :  { %v1380_v3 = vadd.f32 %v3682_v61, %v1219_v55  ;;  %v1222_v13 = vadd.f32 %v2427_v57, %v3626_v22  ;;  %2579 = vmatprep.mubr.bf16.mxu1 %v1488_v53 }
 0x1b5   :  { %v1383_v31 = vadd.f32 %v3685_v10, %v1222_v13  ;;  %v2428_v46 = vpop.f32.mrb[96].mxu0  ;;  %v1464_v54 = vmax.f32 %v1380_v3, 0.0 }
 0x1b6   :  { %v2429_v1 = vpop.f32.mrb[97].mxu0 }
 0x1b7   :  { %v1465_v14 = vmax.f32 %v1383_v31, 0.0  ;;  %v2430_v6 = vadd.f32 %v2429_v1, %v2428_v46  ;;  %v2431_v19 = vpop.f32.mrb[98].mxu0 }
 0x1b8   :  { %v2432_v15 = vpop.f32.mrb[99].mxu0 }
 0x1b9   :  { %v2433_v16 = vadd.f32 %v2432_v15, %v2431_v19  ;;  %v1227_v17 = vadd.f32 %v2430_v6, %v3630_v39  ;;  %v1489_v21 = vpack.c.bf16 %v1465_v14, %v1464_v54 }
 0x1bb   :  { %v1388_v61 = vadd.f32 %v3691_v38, %v1227_v17  ;;  %2580 = vmatmul.mubr.bf16.gmra.mrb[108].mxu1 %v1489_v21  ;;  %v1230_v22 = vadd.f32 %v2433_v16, %v3632_v42 }
 0x1bd   :  { %v1391_v24 = vadd.f32 %v3696_v25, %v1230_v22  ;;  %v2434_v28 = vpop.f32.mrb[100].mxu0  ;;  %v1466_v9 = vmax.f32 %v1388_v61, 0.0 }
 0x1be   :  { %v2435_v10 = vpop.f32.mrb[101].mxu0 }
 0x1bf   :  { %v1467_v33 = vmax.f32 %v1391_v24, 0.0  ;;  %v2436_v45 = vadd.f32 %v2435_v10, %v2434_v28  ;;  %v2437_v12 = vpop.f32.mrb[102].mxu0 }
 0x1c0   :  { %v2438_v11 = vpop.f32.mrb[103].mxu0 }
 0x1c1   :  { %v1490_v36 = vpack.c.bf16 %v1467_v33, %v1466_v9  ;;  %v1235_v30 = vadd.f32 %v2436_v45, %v3636_v60  ;;  %v2439_v43 = vadd.f32 %v2438_v11, %v2437_v12 }
 0x1c3   :  { %v1396_v39 = vadd.f32 %v3688_v32, %v1235_v30  ;;  %v1238_v38 = vadd.f32 %v2439_v43, %v3638_v0  ;;  %2583 = vmatprep.mubr.bf16.mxu1 %v1490_v36 }
 0x1c5   :  { %v1399_v42 = vadd.f32 %v3693_v2, %v1238_v38  ;;  %v2440_v50 = vpop.f32.mrb[104].mxu0  ;;  %v1468_v51 = vmax.f32 %v1396_v39, 0.0 }
 0x1c6   :  { %v2441_v25 = vpop.f32.mrb[105].mxu0 }
 0x1c7   :  { %v1469_v52 = vmax.f32 %v1399_v42, 0.0  ;;  %v2442_v53 = vadd.f32 %v2441_v25, %v2440_v50  ;;  %v2443_v55 = vpop.f32.mrb[106].mxu0 }
 0x1c8   :  { %v2444_v57 = vpop.f32.mrb[107].mxu0 }
 0x1c9   :  { %v2445_v3 = vadd.f32 %v2444_v57, %v2443_v55  ;;  %v1243_v13 = vadd.f32 %v2442_v53, %v3642_v18  ;;  %v1491_v31 = vpack.c.bf16 %v1469_v52, %v1468_v51 }
 0x1cb   :  { %v1404_v60 = vadd.f32 %v3701_v40, %v1243_v13  ;;  %2584 = vmatmul.mubr.bf16.gmra.mrb[112].mxu1 %v1491_v31  ;;  %v1246_v32 = vadd.f32 %v2445_v3, %v3644_v23 }
 0x1cd   :  { %v1407_v0 = vadd.f32 %v3706_v5, %v1246_v32  ;;  %v2446_v46 = vpop.f32.mrb[108].mxu0  ;;  %v1470_v1 = vmax.f32 %v1404_v60, 0.0 }
 0x1ce   :  { %v2447_v2 = vpop.f32.mrb[109].mxu0 }
 0x1cf   :  { %v1471_v54 = vmax.f32 %v1407_v0, 0.0  ;;  %v2448_v14 = vadd.f32 %v2447_v2, %v2446_v46  ;;  %v2449_v6 = vpop.f32.mrb[110].mxu0 }
 0x1d0   :  { %v2450_v19 = vpop.f32.mrb[111].mxu0 }
 0x1d1   :  { %v1492_v15 = vpack.c.bf16 %v1471_v54, %v1470_v1  ;;  %v1251_v16 = vadd.f32 %v2448_v14, %v3648_v41  ;;  %v2451_v17 = vadd.f32 %v2450_v19, %v2449_v6 }
 0x1d3   :  { %v1412_v18 = vadd.f32 %v3698_v27, %v1251_v16  ;;  %v1254_v40 = vadd.f32 %v2451_v17, %v3650_v47  ;;  %2587 = vmatprep.mubr.bf16.mxu1 %v1492_v15  ;;  %v3765_v17 = vld [vmem:[%s3815_s4] ss:$0 sm:$0xff]  ;;  %s2683_s4 = smov [#allocation2]  }
 0x1d4   :  { %s1895_s17 = sshll.u32 %s2683_s4, 4  ;;  %s1896_s17 = int_to_ptr.vmem [resolvable:$true] %s1895_s17 }
 0x1d5   :  { %v1415_v23 = vadd.f32 %v3703_v49, %v1254_v40  ;;  %v2452_v21 = vpop.f32.mrb[112].mxu0  ;;  %v1472_v61 = vmax.f32 %v1412_v18, 0.0  ;;  %s2659_s18 = scalar_lea.vmem %s1896_s17, 2048  ;;  %p2664_p1 = scmp.lt.s32.totalorder %s1896_s17, %s1896_s17 }
 0x1d6   :  { %v2453_v5 = vpop.f32.mrb[113].mxu0  ;;  %p2660_p0 = scmp.ne.s32.totalorder %s1896_s17, %s2659_s18  ;;  %p2665_p2 = scmp.lt.s32.totalorder %s2659_s18, %s2659_s18 }
 0x1d7   :  { %v1473_v22 = vmax.f32 %v1415_v23, 0.0  ;;  %v2454_v24 = vadd.f32 %v2453_v5, %v2452_v21  ;;  %v2455_v28 = vpop.f32.mrb[114].mxu0 }
 0x1d8   :  { %v2456_v10 = vpop.f32.mrb[115].mxu0  ;;  %p2666_p3 = por %p2665_p2, %p2664_p1 }
 0x1d9   :  { %v2457_v9 = vadd.f32 %v2456_v10, %v2455_v28  ;;  %v1259_v33 = vadd.f32 %v2454_v24, %v3654_v4  ;;  %v1493_v45 = vpack.c.bf16 %v1473_v22, %v1472_v61 }
 0x1da   :  { %p2667_p4 = pnand %p2666_p3, %p2660_p0 }
 0x1db   :  { %v1420_v41 = vadd.f32 %v3711_v35, %v1259_v33  ;;  %2588 = vmatmul.mubr.bf16.gmra.mrb[116].mxu1 %v1493_v45  ;;  %v1262_v27 = vadd.f32 %v2457_v9, %v3656_v8 }
 0x1dd   :  { %v1423_v47 = vadd.f32 %v3716_v37, %v1262_v27  ;;  %v2458_v12 = vpop.f32.mrb[116].mxu0  ;;  %v1474_v11 = vmax.f32 %v1420_v41, 0.0 }
 0x1de   :  { %v2459_v49 = vpop.f32.mrb[117].mxu0 }
 0x1df   :  { %v1475_v36 = vmax.f32 %v1423_v47, 0.0  ;;  %v2460_v30 = vadd.f32 %v2459_v49, %v2458_v12  ;;  %v2461_v43 = vpop.f32.mrb[118].mxu0 }
 0x1e0   :  { %v2462_v39 = vpop.f32.mrb[119].mxu0 }
 0x1e1   :  { %v1494_v38 = vpack.c.bf16 %v1475_v36, %v1474_v11  ;;  %v1267_v42 = vadd.f32 %v2460_v30, %v3660_v29  ;;  %v2463_v50 = vadd.f32 %v2462_v39, %v2461_v43 }
 0x1e3   :  { %v1428_v4 = vadd.f32 %v3708_v44, %v1267_v42  ;;  %v1270_v35 = vadd.f32 %v2463_v50, %v3662_v34  ;;  %2591 = vmatprep.mubr.bf16.mxu1 %v1494_v38 }
 0x1e5   :  { %v1431_v8 = vadd.f32 %v3713_v48, %v1270_v35  ;;  %v2464_v25 = vpop.f32.mrb[120].mxu0  ;;  %v1476_v51 = vmax.f32 %v1428_v4, 0.0 }
 0x1e6   :  { %v2465_v37 = vpop.f32.mrb[121].mxu0 }
 0x1e7   :  { %v1477_v52 = vmax.f32 %v1431_v8, 0.0  ;;  %v2466_v53 = vadd.f32 %v2465_v37, %v2464_v25  ;;  %v2467_v55 = vpop.f32.mrb[122].mxu0 }
 0x1e8   :  { %v2468_v57 = vpop.f32.mrb[123].mxu0 }
 0x1e9   :  { %v2469_v3 = vadd.f32 %v2468_v57, %v2467_v55  ;;  %v1275_v13 = vadd.f32 %v2466_v53, %v3666_v56  ;;  %v1495_v31 = vpack.c.bf16 %v1477_v52, %v1476_v51 }
 0x1eb   :  { %v1436_v29 = vadd.f32 %v3721_v7, %v1275_v13  ;;  %2592 = vmatmul.mubr.bf16.gmra.mrb[120].mxu1 %v1495_v31  ;;  %v1278_v44 = vadd.f32 %v2469_v3, %v3668_v59 }
 0x1ed   :  { %v1439_v34 = vadd.f32 %v3727_v62, %v1278_v44  ;;  %v2470_v60 = vpop.f32.mrb[124].mxu0  ;;  %v1478_v32 = vmax.f32 %v1436_v29, 0.0 }
 0x1ee   :  { %v2471_v48 = vpop.f32.mrb[125].mxu0 }
 0x1ef   :  { %v1479_v0 = vmax.f32 %v1439_v34, 0.0  ;;  %v2472_v46 = vadd.f32 %v2471_v48, %v2470_v60  ;;  %v2473_v2 = vpop.f32.mrb[126].mxu0 }
 0x1f0   :  { %v2474_v1 = vpop.f32.mrb[127].mxu0 }
 0x1f1   :  { %v1496_v54 = vpack.c.bf16 %v1479_v0, %v1478_v32  ;;  %v1283_v14 = vadd.f32 %v2472_v46, %v3672_v20  ;;  %v2475_v6 = vadd.f32 %v2474_v1, %v2473_v2 }
 0x1f3   :  { %v1444_v56 = vadd.f32 %v3718_v63, %v1283_v14  ;;  %v1286_v7 = vadd.f32 %v2475_v6, %v3674_v26  ;;  %2595 = vmatprep.mubr.bf16.mxu1 %v1496_v54 }
 0x1f5   :  { %v1447_v59 = vadd.f32 %v3723_v58, %v1286_v7  ;;  %v1480_v19 = vmax.f32 %v1444_v56, 0.0 }
 0x1f7   :  { %v1481_v62 = vmax.f32 %v1447_v59, 0.0 }
 0x1f9   :  { %v1497_v15 = vpack.c.bf16 %v1481_v62, %v1480_v19 }
 0x1fb   :  { %2596 = vmatmul.mubr.bf16.gmra.mrb[124].mxu1 %v1497_v15 }
 0x25e   :  { %v2569_v16 = vpop.f32.mrb[96].mxu1 }
 0x25f   :  { %v1603_v18 = vpop.f32.mrb[97].mxu1  ;;  %v1612_v40 = vadd.f32 %v2569_v16, %v3765_v17 }
 0x260   :  { %v2570_v20 = vpop.f32.mrb[98].mxu1  ;;  %v1604_v23 = vadd.f32 %v3765_v17, %v1603_v18 }
 0x261   :  { %v1615_v63 = vadd.f32 %v2570_v20, %v3765_v17  ;;  %v1606_v26 = vpop.f32.mrb[99].mxu1 }
 0x262   :  { %v1607_v58 = vadd.f32 %v3765_v17, %v1606_v26 }
 0x263   :  { %v2053_v21 = vpack.c.bf16 %v1615_v63, %v1612_v40 }
 0x264   :  { %v2048_v5 = vpack.c.bf16 %v1607_v58, %v1604_v23 }
 0x265   :  { %2125 = vst [vmem:[#allocation2 + $0x8] sm:$0xff] %v2053_v21  }
 0x266   :  { %2049 = vst [vmem:[#allocation2] sm:$0xff] %v2048_v5  }
 0x26e   :  { %v2573_v61 = vpop.f32.mrb[100].mxu1 }
 0x26f   :  { %v1619_v22 = vpop.f32.mrb[101].mxu1  ;;  %v1628_v28 = vadd.f32 %v2573_v61, %v3765_v17 }
 0x270   :  { %v2574_v24 = vpop.f32.mrb[102].mxu1  ;;  %v1620_v33 = vadd.f32 %v3765_v17, %v1619_v22 }
 0x271   :  { %v1631_v10 = vadd.f32 %v2574_v24, %v3765_v17  ;;  %v1622_v9 = vpop.f32.mrb[103].mxu1 }
 0x272   :  { %v1623_v45 = vadd.f32 %v3765_v17, %v1622_v9 }
 0x273   :  { %v2063_v41 = vpack.c.bf16 %v1631_v10, %v1628_v28 }
 0x274   :  { %v2058_v27 = vpack.c.bf16 %v1623_v45, %v1620_v33 }
 0x275   :  { %2127 = vst [vmem:[#allocation2 + $0x18] sm:$0xff] %v2063_v41  }
 0x276   :  { %2126 = vst [vmem:[#allocation2 + $0x10] sm:$0xff] %v2058_v27  }
 0x27e   :  { %v2577_v47 = vpop.f32.mrb[104].mxu1 }
 0x27f   :  { %v1635_v12 = vpop.f32.mrb[105].mxu1  ;;  %v1644_v11 = vadd.f32 %v2577_v47, %v3765_v17 }
 0x280   :  { %v2578_v49 = vpop.f32.mrb[106].mxu1  ;;  %v1636_v43 = vadd.f32 %v3765_v17, %v1635_v12 }
 0x281   :  { %v1647_v36 = vadd.f32 %v2578_v49, %v3765_v17  ;;  %v1638_v30 = vpop.f32.mrb[107].mxu1 }
 0x282   :  { %v1639_v39 = vadd.f32 %v3765_v17, %v1638_v30 }
 0x283   :  { %v2073_v38 = vpack.c.bf16 %v1647_v36, %v1644_v11 }
 0x284   :  { %v2068_v42 = vpack.c.bf16 %v1639_v39, %v1636_v43 }
 0x285   :  { %2129 = vst [vmem:[#allocation2 + $0x28] sm:$0xff] %v2073_v38  }
 0x286   :  { %2128 = vst [vmem:[#allocation2 + $0x20] sm:$0xff] %v2068_v42  }
 0x28e   :  { %v2581_v50 = vpop.f32.mrb[108].mxu1 }
 0x28f   :  { %v1651_v4 = vpop.f32.mrb[109].mxu1  ;;  %v1660_v8 = vadd.f32 %v2581_v50, %v3765_v17 }
 0x290   :  { %v2582_v35 = vpop.f32.mrb[110].mxu1  ;;  %v1652_v51 = vadd.f32 %v3765_v17, %v1651_v4 }
 0x291   :  { %v1663_v25 = vadd.f32 %v2582_v35, %v3765_v17  ;;  %v1654_v37 = vpop.f32.mrb[111].mxu1 }
 0x292   :  { %v1655_v52 = vadd.f32 %v3765_v17, %v1654_v37 }
 0x293   :  { %v2083_v53 = vpack.c.bf16 %v1663_v25, %v1660_v8 }
 0x294   :  { %v2078_v55 = vpack.c.bf16 %v1655_v52, %v1652_v51 }
 0x295   :  { %2131 = vst [vmem:[#allocation2 + $0x38] sm:$0xff] %v2083_v53  }
 0x296   :  { %2130 = vst [vmem:[#allocation2 + $0x30] sm:$0xff] %v2078_v55  }
 0x29e   :  { %v2585_v57 = vpop.f32.mrb[112].mxu1 }
 0x29f   :  { %v1667_v3 = vpop.f32.mrb[113].mxu1  ;;  %v1676_v31 = vadd.f32 %v2585_v57, %v3765_v17 }
 0x2a0   :  { %v2586_v13 = vpop.f32.mrb[114].mxu1  ;;  %v1668_v34 = vadd.f32 %v3765_v17, %v1667_v3 }
 0x2a1   :  { %v1679_v29 = vadd.f32 %v2586_v13, %v3765_v17  ;;  %v1670_v44 = vpop.f32.mrb[115].mxu1 }
 0x2a2   :  { %v1671_v60 = vadd.f32 %v3765_v17, %v1670_v44 }
 0x2a3   :  { %v2093_v48 = vpack.c.bf16 %v1679_v29, %v1676_v31 }
 0x2a4   :  { %v2088_v32 = vpack.c.bf16 %v1671_v60, %v1668_v34 }
 0x2a5   :  { %2133 = vst [vmem:[#allocation2 + $0x48] sm:$0xff] %v2093_v48  }
 0x2a6   :  { %2132 = vst [vmem:[#allocation2 + $0x40] sm:$0xff] %v2088_v32  }
 0x2ae   :  { %v2589_v0 = vpop.f32.mrb[116].mxu1 }
 0x2af   :  { %v1683_v46 = vpop.f32.mrb[117].mxu1  ;;  %v1692_v1 = vadd.f32 %v2589_v0, %v3765_v17 }
 0x2b0   :  { %v2590_v2 = vpop.f32.mrb[118].mxu1  ;;  %v1684_v6 = vadd.f32 %v3765_v17, %v1683_v46 }
 0x2b1   :  { %v1695_v54 = vadd.f32 %v2590_v2, %v3765_v17  ;;  %v1686_v14 = vpop.f32.mrb[119].mxu1 }
 0x2b2   :  { %v1687_v56 = vadd.f32 %v3765_v17, %v1686_v14 }
 0x2b3   :  { %v2103_v7 = vpack.c.bf16 %v1695_v54, %v1692_v1 }
 0x2b4   :  { %v2098_v59 = vpack.c.bf16 %v1687_v56, %v1684_v6 }
 0x2b5   :  { %2135 = vst [vmem:[#allocation2 + $0x58] sm:$0xff] %v2103_v7  }
 0x2b6   :  { %2134 = vst [vmem:[#allocation2 + $0x50] sm:$0xff] %v2098_v59  }
 0x2be   :  { %v2593_v19 = vpop.f32.mrb[120].mxu1 }
 0x2bf   :  { %v1699_v62 = vpop.f32.mrb[121].mxu1  ;;  %v1708_v16 = vadd.f32 %v2593_v19, %v3765_v17 }
 0x2c0   :  { %v2594_v15 = vpop.f32.mrb[122].mxu1  ;;  %v1700_v40 = vadd.f32 %v3765_v17, %v1699_v62 }
 0x2c1   :  { %v1711_v18 = vadd.f32 %v2594_v15, %v3765_v17  ;;  %v1702_v20 = vpop.f32.mrb[123].mxu1 }
 0x2c2   :  { %v1703_v63 = vadd.f32 %v3765_v17, %v1702_v20 }
 0x2c3   :  { %v2113_v26 = vpack.c.bf16 %v1711_v18, %v1708_v16 }
 0x2c4   :  { %v2108_v23 = vpack.c.bf16 %v1703_v63, %v1700_v40 }
 0x2c5   :  { %2137 = vst [vmem:[#allocation2 + $0x68] sm:$0xff] %v2113_v26  }
 0x2c6   :  { %2136 = vst [vmem:[#allocation2 + $0x60] sm:$0xff] %v2108_v23  }
 0x2ce   :  { %v2597_v58 = vpop.f32.mrb[124].mxu1 }
 0x2cf   :  { %v1715_v21 = vpop.f32.mrb[125].mxu1  ;;  %v1724_v61 = vadd.f32 %v2597_v58, %v3765_v17 }
 0x2d0   :  { %v2598_v5 = vpop.f32.mrb[126].mxu1  ;;  %v1716_v28 = vadd.f32 %v3765_v17, %v1715_v21 }
 0x2d1   :  { %v1727_v22 = vadd.f32 %v2598_v5, %v3765_v17  ;;  %v1718_v24 = vpop.f32.mrb[127].mxu1 }
 0x2d2   :  { %v1719_v10 = vadd.f32 %v3765_v17, %v1718_v24 }
 0x2d3   :  { %v2123_v9 = vpack.c.bf16 %v1727_v22, %v1724_v61 }
 0x2d4   :  { %v2118_v33 = vpack.c.bf16 %v1719_v10, %v1716_v28 }
 0x2d5   :  { %2139 = vst [vmem:[#allocation2 + $0x78] sm:$0xff] %v2123_v9  }
 0x2d6   :  { %2138 = vst [vmem:[#allocation2 + $0x70] sm:$0xff] %v2118_v33  }
 0x2d7   :  { %2670 = shalt.err (!%p2667_p4)
}
 0x2d8   :  { %s2671_s21 = scalar_lea.hbm %s3816_s5, 2048 }
 0x2d9   :  { %p2672_p5 = scmp.ne.s32.totalorder %s3816_s5, %s2671_s21  ;;  %p2675_p6 = scmp.lt.u32.totalorder %s2671_s21, %s3816_s5 }
 0x2db   :  { %p2677_p7 = pnand %p2675_p6, %p2672_p5 }
 0x2dd   :  { %2680 = shalt.err (!%p2677_p7)
}
 0x2de   :  { %s2684_s26 = smov 64   ;;  %s2685_s27 = smov 4  }
 0x2df   :  { %1901 = dma.vmem_to_hbm [thread:$0]  %s1896_s17, 2048, %s3816_s5, [#allocation3], %s2684_s26, %s2684_s26, %s2685_s27  }
 0x2e0   :  { %2681 = dma.done.wait [#allocation3], 2048  }
 0x2e1   :  { %2682 = vsyncadd [#allocation3], 4294965248 }
 0x2e2   :  { %1905 = vsyncpa [#allocation3], 1 }

// kernel: tpu_custom_call.1
= control target key start
LH: loop header
LB: loop body
LE: loop exit
PB: predicated region body
PF: predicated region fallthrough
CT: control target
= control target key end

     0   :  { %s3811_s0 = inlined_call_operand.vmem [shape: f32[256,784], index: 0, kind: input, shape index: {}]   ;;  %s3812_s1 = inlined_call_operand.vmem [shape: bf16[784,128], index: 1, kind: input, shape index: {}]   ;;  %s3813_s2 = inlined_call_operand.vmem [shape: f32[1,128], index: 2, kind: input, shape index: {}]   ;;  %s3814_s3 = inlined_call_operand.vmem [shape: bf16[128,128], index: 3, kind: input, shape index: {}]   ;;  %s3815_s4 = inlined_call_operand.vmem [shape: f32[1,128], index: 4, kind: input, shape index: {}]   ;;  %s3816_s5 = inlined_call_operand.hbm [shape: bf16[256,128], index: 5, kind: output, shape index: {}]  }
   0x1   :  { %v2602_v0 = vld [vmem:[%s3812_s1 + $0x40] sm:$0xff]   ;;  %v2606_v4 = vld [vmem:[%s3812_s1 + $0x48] sm:$0xff]   ;;  %v2610_v8 = vld [vmem:[%s3812_s1 + $0x50] sm:$0xff]  }
   0x2   :  { %v2603_v1 = vld [vmem:[%s3812_s1] sm:$0xff]   ;;  %2140 = vmatprep.subr.bf16.mxu0 %v2602_v0  ;;  %v2607_v5 = vld [vmem:[%s3812_s1 + $0x8] sm:$0xff]   ;;  %v2611_v9 = vld [vmem:[%s3812_s1 + $0x10] sm:$0xff]  }
   0x3   :  { %v2604_v2 = vld [vmem:[%s3812_s1 + $0xc0] sm:$0xff]   ;;  %2141 = vmatpush3.bf16.msra.mxu0 %v2603_v1  ;;  %v2608_v6 = vld [vmem:[%s3812_s1 + $0xc8] sm:$0xff]   ;;  %v2612_v10 = vld [vmem:[%s3812_s1 + $0xd0] sm:$0xff]  }
   0x4   :  { %v2605_v3 = vld [vmem:[%s3812_s1 + $0x80] sm:$0xff]   ;;  %2252 = vmatprep.subr.bf16.mxu1 %v2604_v2  ;;  %2142 = vmatprep.subr.bf16.mxu0 %v2606_v4  ;;  %v2609_v7 = vld [vmem:[%s3812_s1 + $0x88] sm:$0xff]   ;;  %v2613_v11 = vld [vmem:[%s3812_s1 + $0x90] sm:$0xff]  }
   0x5   :  { %2253 = vmatpush3.bf16.msra.mxu1 %v2605_v3  ;;  %v2614_v12 = vld [vmem:[%s3812_s1 + $0x58] sm:$0xff]   ;;  %v2618_v16 = vld [vmem:[%s3812_s1 + $0x60] sm:$0xff]   ;;  %v2622_v20 = vld [vmem:[%s3812_s1 + $0x68] sm:$0xff]  }
   0x6   :  { %2254 = vmatprep.subr.bf16.mxu1 %v2608_v6  ;;  %v2615_v13 = vld [vmem:[%s3812_s1 + $0x18] sm:$0xff]   ;;  %v2619_v17 = vld [vmem:[%s3812_s1 + $0x20] sm:$0xff]   ;;  %v2623_v21 = vld [vmem:[%s3812_s1 + $0x28] sm:$0xff]  }
   0x7   :  { %2143 = vmatpush3.bf16.msra.mxu0 %v2607_v5  ;;  %v2616_v14 = vld [vmem:[%s3812_s1 + $0xd8] sm:$0xff]   ;;  %v2620_v18 = vld [vmem:[%s3812_s1 + $0xe0] sm:$0xff]   ;;  %v2624_v22 = vld [vmem:[%s3812_s1 + $0xe8] sm:$0xff]  }
   0x8   :  { %2144 = vmatprep.subr.bf16.mxu0 %v2610_v8  ;;  %v2617_v15 = vld [vmem:[%s3812_s1 + $0x98] sm:$0xff]   ;;  %v2621_v19 = vld [vmem:[%s3812_s1 + $0xa0] sm:$0xff]   ;;  %v2625_v23 = vld [vmem:[%s3812_s1 + $0xa8] sm:$0xff]  }
   0x9   :  { %2255 = vmatpush3.bf16.msra.mxu1 %v2609_v7  ;;  %v2626_v24 = vld [vmem:[%s3812_s1 + $0x70] sm:$0xff]   ;;  %v2630_v28 = vld [vmem:[%s3812_s1 + $0x78] sm:$0xff]   ;;  %v23_v31 = vld [vmem:[%s3811_s0 + $0x8] sm:$0xff] }
   0xa   :  { %2256 = vmatprep.subr.bf16.mxu1 %v2612_v10  ;;  %v2627_v25 = vld [vmem:[%s3812_s1 + $0x30] sm:$0xff]   ;;  %v2631_v29 = vld [vmem:[%s3812_s1 + $0x38] sm:$0xff]   ;;  %v30_v32 = vld [vmem:[%s3811_s0 + $0x40] sm:$0xff] }
   0xb   :  { %2145 = vmatpush3.bf16.msra.mxu0 %v2611_v9  ;;  %v2628_v26 = vld [vmem:[%s3812_s1 + $0xf0] sm:$0xff]   ;;  %v2632_v30 = vld [vmem:[%s3812_s1 + $0xf8] sm:$0xff]   ;;  %v247_v33 = vpack.c.bf16 %v30_v32, %v23_v31  ;;  %v22_v35 = vld [vmem:[%s3811_s0] sm:$0xff] }
   0xc   :  { %2146 = vmatprep.subr.bf16.mxu0 %v2614_v12  ;;  %v2629_v27 = vld [vmem:[%s3812_s1 + $0xb0] sm:$0xff]   ;;  %v2633_v34 = vld [vmem:[%s3812_s1 + $0xb8] sm:$0xff]   ;;  %v2634_v38 = vld [vmem:[%s3812_s1 + $0x140] sm:$0xff]  }
   0xd   :  { %2257 = vmatpush3.bf16.msra.mxu1 %v2613_v11  ;;  %v29_v36 = vld [vmem:[%s3811_s0 + $0x38] sm:$0xff]  ;;  %838 = vmatprep.mubr.bf16.mxu0 %v247_v33  ;;  %v32_v40 = vld [vmem:[%s3811_s0 + $0x50] sm:$0xff]  ;;  %v2635_v42 = vld [vmem:[%s3812_s1 + $0x100] sm:$0xff]  }
   0xe   :  { %2258 = vmatprep.subr.bf16.mxu1 %v2616_v14  ;;  %v246_v37 = vpack.c.bf16 %v29_v36, %v22_v35  ;;  %v25_v39 = vld [vmem:[%s3811_s0 + $0x18] sm:$0xff]  ;;  %v24_v43 = vld [vmem:[%s3811_s0 + $0x10] sm:$0xff]  ;;  %v31_v44 = vld [vmem:[%s3811_s0 + $0x48] sm:$0xff] }
   0xf   :  { %2147 = vmatpush3.bf16.msra.mxu0 %v2615_v13  ;;  %v249_v41 = vpack.c.bf16 %v32_v40, %v25_v39  ;;  %v37_v45 = vld [vmem:[%s3811_s0 + $0x78] sm:$0xff]  ;;  %v248_v46 = vpack.c.bf16 %v31_v44, %v24_v43  ;;  %v44_v47 = vld [vmem:[%s3811_s0 + $0xb0] sm:$0xff]  ;;  %v43_v49 = vld [vmem:[%s3811_s0 + $0xa8] sm:$0xff] }
  0x10   :  { %2148 = vmatprep.subr.bf16.mxu0 %v2618_v16  ;;  %v36_v48 = vld [vmem:[%s3811_s0 + $0x70] sm:$0xff]  ;;  %v254_v50 = vpack.c.bf16 %v44_v47, %v37_v45  ;;  %v39_v51 = vld [vmem:[%s3811_s0 + $0x88] sm:$0xff]  ;;  %v46_v52 = vld [vmem:[%s3811_s0 + $0xc0] sm:$0xff] }
  0x11   :  { %2259 = vmatpush3.bf16.msra.mxu1 %v2617_v15  ;;  %999 = vmatprep.mubr.bf16.mxu1 %v249_v41  ;;  %v256_v53 = vpack.c.bf16 %v46_v52, %v39_v51  ;;  %v51_v54 = vld [vmem:[%s3811_s0 + $0xe8] sm:$0xff]  ;;  %v58_v55 = vld [vmem:[%s3811_s0 + $0x120] sm:$0xff]  ;;  %v253_v56 = vpack.c.bf16 %v43_v49, %v36_v48  ;;  %v45_v58 = vld [vmem:[%s3811_s0 + $0xb8] sm:$0xff] }
  0x12   :  { %2260 = vmatprep.subr.bf16.mxu1 %v2620_v18  ;;  %v38_v57 = vld [vmem:[%s3811_s0 + $0x80] sm:$0xff]  ;;  %v261_v59 = vpack.c.bf16 %v58_v55, %v51_v54  ;;  %v2636_v60 = vld [vmem:[%s3812_s1 + $0x148] sm:$0xff]   ;;  %v53_v61 = vld [vmem:[%s3811_s0 + $0xf8] sm:$0xff] }
  0x13   :  { %2149 = vmatpush3.bf16.msra.mxu0 %v2619_v17  ;;  %v60_v62 = vld [vmem:[%s3811_s0 + $0x130] sm:$0xff]  ;;  %v255_v63 = vpack.c.bf16 %v45_v58, %v38_v57  ;;  %v2637_v0 = vld [vmem:[%s3812_s1 + $0x108] sm:$0xff]   ;;  %v50_v2 = vld [vmem:[%s3811_s0 + $0xe0] sm:$0xff] }
  0x14   :  { %2150 = vmatprep.subr.bf16.mxu0 %v2622_v20  ;;  %v263_v1 = vpack.c.bf16 %v60_v62, %v53_v61  ;;  %v57_v3 = vld [vmem:[%s3811_s0 + $0x118] sm:$0xff]  ;;  %v72_v5 = vld [vmem:[%s3811_s0 + $0x190] sm:$0xff]  ;;  %v59_v7 = vld [vmem:[%s3811_s0 + $0x128] sm:$0xff] }
  0x15   :  { %2261 = vmatpush3.bf16.msra.mxu1 %v2621_v19  ;;  %v65_v4 = vld [vmem:[%s3811_s0 + $0x158] sm:$0xff]  ;;  %v52_v6 = vld [vmem:[%s3811_s0 + $0xf0] sm:$0xff]  ;;  %v260_v8 = vpack.c.bf16 %v57_v3, %v50_v2  ;;  %v67_v11 = vld [vmem:[%s3811_s0 + $0x168] sm:$0xff] }
  0x16   :  { %2262 = vmatprep.subr.bf16.mxu1 %v2624_v22  ;;  %v2638_v9 = vld [vmem:[%s3812_s1 + $0x150] sm:$0xff]   ;;  %v268_v10 = vpack.c.bf16 %v72_v5, %v65_v4  ;;  %v74_v12 = vld [vmem:[%s3811_s0 + $0x1a0] sm:$0xff]  ;;  %v262_v14 = vpack.c.bf16 %v59_v7, %v52_v6  ;;  %v71_v17 = vld [vmem:[%s3811_s0 + $0x188] sm:$0xff] }
  0x17   :  { %2151 = vmatpush3.bf16.msra.mxu0 %v2623_v21  ;;  %v2639_v13 = vld [vmem:[%s3812_s1 + $0x110] sm:$0xff]   ;;  %v270_v15 = vpack.c.bf16 %v74_v12, %v67_v11  ;;  %v66_v18 = vld [vmem:[%s3811_s0 + $0x160] sm:$0xff]  ;;  %v79_v19 = vld [vmem:[%s3811_s0 + $0x1c8] sm:$0xff] }
  0x18   :  { %2152 = vmatprep.subr.bf16.mxu0 %v2626_v24  ;;  %v64_v16 = vld [vmem:[%s3811_s0 + $0x150] sm:$0xff]  ;;  %v86_v20 = vld [vmem:[%s3811_s0 + $0x200] sm:$0xff]  ;;  %v73_v21 = vld [vmem:[%s3811_s0 + $0x198] sm:$0xff] }
  0x19   :  { %2263 = vmatpush3.bf16.msra.mxu1 %v2625_v23  ;;  %v267_v22 = vpack.c.bf16 %v71_v17, %v64_v16  ;;  %v81_v23 = vld [vmem:[%s3811_s0 + $0x1d8] sm:$0xff]  ;;  %v88_v24 = vld [vmem:[%s3811_s0 + $0x210] sm:$0xff]  ;;  %v2642_v35 = vld [vmem:[%s3812_s1 + $0x160] sm:$0xff]  }
  0x1a   :  { %2264 = vmatprep.subr.bf16.mxu1 %v2628_v26  ;;  %v275_v26 = vpack.c.bf16 %v86_v20, %v79_v19  ;;  %v85_v31 = vld [vmem:[%s3811_s0 + $0x1f8] sm:$0xff]  ;;  %v100_v33 = vld [vmem:[%s3811_s0 + $0x270] sm:$0xff]  ;;  %v95_v39 = vld [vmem:[%s3811_s0 + $0x248] sm:$0xff] }
  0x1b   :  { %2153 = vmatpush3.bf16.msra.mxu0 %v2627_v25  ;;  %v2640_v25 = vld [vmem:[%s3812_s1 + $0x158] sm:$0xff]   ;;  %v102_v40 = vld [vmem:[%s3811_s0 + $0x280] sm:$0xff]  ;;  %v92_v45 = vld [vmem:[%s3811_s0 + $0x230] sm:$0xff] }
  0x1c   :  { %2154 = vmatprep.subr.bf16.mxu0 %v2630_v28  ;;  %v269_v28 = vpack.c.bf16 %v73_v21, %v66_v18  ;;  %v93_v32 = vld [vmem:[%s3811_s0 + $0x238] sm:$0xff]  ;;  %v2643_v41 = vld [vmem:[%s3812_s1 + $0x120] sm:$0xff]   ;;  %v284_v44 = vpack.c.bf16 %v102_v40, %v95_v39  ;;  %v107_v48 = vld [vmem:[%s3811_s0 + $0x2a8] sm:$0xff] }
  0x1d   :  { %2265 = vmatpush3.bf16.msra.mxu1 %v2629_v27  ;;  %v2641_v27 = vld [vmem:[%s3812_s1 + $0x118] sm:$0xff]   ;;  %v94_v47 = vld [vmem:[%s3811_s0 + $0x240] sm:$0xff]  ;;  %v116_v55 = vld [vmem:[%s3811_s0 + $0x2f0] sm:$0xff] }
  0x1e   :  { %2266 = vmatprep.subr.bf16.mxu1 %v2632_v30  ;;  %v78_v30 = vld [vmem:[%s3811_s0 + $0x1c0] sm:$0xff]  ;;  %v101_v52 = vld [vmem:[%s3811_s0 + $0x278] sm:$0xff]  ;;  %v128_v62 = vld [vmem:[%s3811_s0 + $0x350] sm:$0xff] }
  0x1f   :  { %2155 = vmatpush3.bf16.msra.mxu0 %v2631_v29  ;;  %v277_v29 = vpack.c.bf16 %v88_v24, %v81_v23  ;;  %v274_v36 = vpack.c.bf16 %v85_v31, %v78_v30  ;;  %v114_v49 = vld [vmem:[%s3811_s0 + $0x2e0] sm:$0xff]  ;;  %v283_v57 = vpack.c.bf16 %v101_v52, %v94_v47  ;;  %v121_v61 = vld [vmem:[%s3811_s0 + $0x318] sm:$0xff]  ;;  %v2648_v3 = vld [vmem:[%s3812_s1 + $0x130] sm:$0xff]  }
  0x20   :  { %2364 = vmatprep.subr.bf16.mxu0 %v2634_v38  ;;  %v282_v38 = vpack.c.bf16 %v100_v33, %v93_v32  ;;  %v289_v54 = vpack.c.bf16 %v114_v49, %v107_v48  ;;  %v296_v4 = vpack.c.bf16 %v128_v62, %v121_v61  ;;  %v123_v5 = vld [vmem:[%s3811_s0 + $0x328] sm:$0xff]  ;;  %v130_v6 = vld [vmem:[%s3811_s0 + $0x360] sm:$0xff]  ;;  %v129_v16 = vld [vmem:[%s3811_s0 + $0x358] sm:$0xff] }
  0x21   :  { %2267 = vmatpush3.bf16.msra.mxu1 %v2633_v34  ;;  %v80_v34 = vld [vmem:[%s3811_s0 + $0x1d0] sm:$0xff]  ;;  %v135_v11 = vld [vmem:[%s3811_s0 + $0x388] sm:$0xff]  ;;  %v142_v12 = vld [vmem:[%s3811_s0 + $0x3c0] sm:$0xff] }
  0x22   :  { %839 = vmatmul.mubr.bf16.vlgmr.msra.gmra.mrb[0].mxu0 %v246_v37  ;;  %v87_v37 = vld [vmem:[%s3811_s0 + $0x208] sm:$0xff]  ;;  %v2650_v17 = vld [vmem:[%s3812_s1 + $0x138] sm:$0xff]   ;;  %v303_v18 = vpack.c.bf16 %v142_v12, %v135_v11  ;;  %v144_v20 = vld [vmem:[%s3811_s0 + $0x3d0] sm:$0xff] }
  0x23   :  { %2365 = vmatpush3.bf16.msra.mxu0 %v2635_v42  ;;  %846 = vmatprep.mubr.bf16.mxu0 %v254_v50  ;;  %v2644_v42 = vld [vmem:[%s3812_s1 + $0x180] sm:$0xff]   ;;  %v276_v43 = vpack.c.bf16 %v87_v37, %v80_v34  ;;  %v2645_v50 = vld [vmem:[%s3812_s1 + $0x168] sm:$0xff]   ;;  %v137_v19 = vld [vmem:[%s3811_s0 + $0x398] sm:$0xff] }
  0x24   :  { %1000 = vmatmul.mubr.bf16.vlgmr.msra.gmra.mrb[0].mxu1 %v248_v46  ;;  %2366 = vmatprep.subr.bf16.mxu0 %v2636_v60  ;;  %v99_v46 = vld [vmem:[%s3811_s0 + $0x268] sm:$0xff]  ;;  %v113_v60 = vld [vmem:[%s3811_s0 + $0x2d8] sm:$0xff]  ;;  %v134_v23 = vld [vmem:[%s3811_s0 + $0x380] sm:$0xff] }
  0x25   :  { %1007 = vmatprep.mubr.bf16.mxu1 %v256_v53  ;;  %2517 = vmatprep.subr.bf16.mxu1 %v2644_v42  ;;  %v281_v51 = vpack.c.bf16 %v99_v46, %v92_v45  ;;  %v109_v53 = vld [vmem:[%s3811_s0 + $0x2b8] sm:$0xff]  ;;  %v151_v31 = vld [vmem:[%s3811_s0 + $0x408] sm:$0xff]  ;;  %v158_v32 = vld [vmem:[%s3811_s0 + $0x440] sm:$0xff] }
  0x26   :  { %2518 = vmatpush3.bf16.msra.mxu1 %v2644_v42  ;;  %v291_v58 = vpack.c.bf16 %v116_v55, %v109_v53  ;;  %v141_v24 = vld [vmem:[%s3811_s0 + $0x3b8] sm:$0xff]  ;;  %v312_v34 = vpack.c.bf16 %v158_v32, %v151_v31  ;;  %v163_v37 = vld [vmem:[%s3811_s0 + $0x468] sm:$0xff]  ;;  %v150_v40 = vld [vmem:[%s3811_s0 + $0x400] sm:$0xff] }
  0x27   :  { %2367 = vmatpush3.bf16.msra.mxu0 %v2637_v0  ;;  %v115_v0 = vld [vmem:[%s3811_s0 + $0x2e8] sm:$0xff]  ;;  %v162_v47 = vld [vmem:[%s3811_s0 + $0x460] sm:$0xff]  ;;  %v169_v48 = vld [vmem:[%s3811_s0 + $0x498] sm:$0xff] }
  0x28   :  { %2368 = vmatprep.subr.bf16.mxu0 %v2638_v9  ;;  %v298_v9 = vpack.c.bf16 %v130_v6, %v123_v5  ;;  %v177_v49 = vld [vmem:[%s3811_s0 + $0x4d8] sm:$0xff]  ;;  %v316_v52 = vpack.c.bf16 %v169_v48, %v162_v47  ;;  %v171_v53 = vld [vmem:[%s3811_s0 + $0x4a8] sm:$0xff]  ;;  %v186_v55 = vld [vmem:[%s3811_s0 + $0x520] sm:$0xff] }
  0x29   :  { %v191_v61 = vld [vmem:[%s3811_s0 + $0x548] sm:$0xff]  ;;  %v198_v62 = vld [vmem:[%s3811_s0 + $0x580] sm:$0xff] }
  0x2a   :  { %847 = vmatmul.mubr.bf16.gmra.mrb[4].mxu0 %v253_v56  ;;  %v2646_v56 = vld [vmem:[%s3812_s1 + $0x128] sm:$0xff]  }
  0x2b   :  { %854 = vmatprep.mubr.bf16.mxu0 %v261_v59  ;;  %2369 = vmatpush3.bf16.msra.mxu0 %v2639_v13  ;;  %v106_v59 = vld [vmem:[%s3811_s0 + $0x2a0] sm:$0xff]  ;;  %v2649_v13 = vld [vmem:[%s3812_s1 + $0x178] sm:$0xff]  }
  0x2c   :  { %1008 = vmatmul.mubr.bf16.gmra.mrb[4].mxu1 %v255_v63  ;;  %2370 = vmatprep.subr.bf16.mxu0 %v2640_v25  ;;  %v108_v63 = vld [vmem:[%s3811_s0 + $0x2b0] sm:$0xff]  ;;  %v288_v2 = vpack.c.bf16 %v113_v60, %v106_v59  ;;  %v149_v25 = vld [vmem:[%s3811_s0 + $0x3f8] sm:$0xff]  ;;  %v183_v60 = vld [vmem:[%s3811_s0 + $0x508] sm:$0xff] }
  0x2d   :  { %1015 = vmatprep.mubr.bf16.mxu1 %v263_v1  ;;  %v2647_v1 = vld [vmem:[%s3812_s1 + $0x170] sm:$0xff]   ;;  %v290_v7 = vpack.c.bf16 %v115_v0, %v108_v63  ;;  %v178_v0 = vld [vmem:[%s3811_s0 + $0x4e0] sm:$0xff] }
  0x2e   :  { %v176_v59 = vld [vmem:[%s3811_s0 + $0x4d0] sm:$0xff] }
  0x2f   :  { %2371 = vmatpush3.bf16.msra.mxu0 %v2641_v27  ;;  %v302_v27 = vpack.c.bf16 %v141_v24, %v134_v23  ;;  %v323_v63 = vpack.c.bf16 %v183_v60, %v176_v59 }
  0x30   :  { %2372 = vmatprep.subr.bf16.mxu0 %v2642_v35  ;;  %v148_v35 = vld [vmem:[%s3811_s0 + $0x3f0] sm:$0xff] }
  0x32   :  { %855 = vmatmul.mubr.bf16.gmra.mrb[8].mxu0 %v260_v8  ;;  %v120_v8 = vld [vmem:[%s3811_s0 + $0x310] sm:$0xff] }
  0x33   :  { %862 = vmatprep.mubr.bf16.mxu0 %v268_v10  ;;  %2373 = vmatpush3.bf16.msra.mxu0 %v2643_v41  ;;  %v127_v10 = vld [vmem:[%s3811_s0 + $0x348] sm:$0xff]  ;;  %v157_v41 = vld [vmem:[%s3811_s0 + $0x438] sm:$0xff] }
  0x34   :  { %1016 = vmatmul.mubr.bf16.gmra.mrb[8].mxu1 %v262_v14  ;;  %2374 = vmatprep.subr.bf16.mxu0 %v2645_v50  ;;  %v295_v14 = vpack.c.bf16 %v127_v10, %v120_v8  ;;  %v311_v45 = vpack.c.bf16 %v157_v41, %v150_v40  ;;  %v184_v50 = vld [vmem:[%s3811_s0 + $0x510] sm:$0xff] }
  0x35   :  { %1023 = vmatprep.mubr.bf16.mxu1 %v270_v15  ;;  %v122_v15 = vld [vmem:[%s3811_s0 + $0x320] sm:$0xff] }
  0x36   :  { %v297_v21 = vpack.c.bf16 %v129_v16, %v122_v15 }
  0x37   :  { %2375 = vmatpush3.bf16.msra.mxu0 %v2646_v56  ;;  %v324_v56 = vpack.c.bf16 %v184_v50, %v177_v49 }
  0x38   :  { %2376 = vmatprep.subr.bf16.mxu0 %v2647_v1  ;;  %v185_v1 = vld [vmem:[%s3811_s0 + $0x518] sm:$0xff] }
  0x3a   :  { %863 = vmatmul.mubr.bf16.gmra.mrb[12].mxu0 %v267_v22  ;;  %v305_v22 = vpack.c.bf16 %v144_v20, %v137_v19 }
  0x3b   :  { %870 = vmatprep.mubr.bf16.mxu0 %v275_v26  ;;  %2377 = vmatpush3.bf16.msra.mxu0 %v2648_v3  ;;  %v156_v26 = vld [vmem:[%s3811_s0 + $0x430] sm:$0xff] }
  0x3c   :  { %1024 = vmatmul.mubr.bf16.gmra.mrb[12].mxu1 %v269_v28  ;;  %2378 = vmatprep.subr.bf16.mxu0 %v2649_v13  ;;  %v136_v28 = vld [vmem:[%s3811_s0 + $0x390] sm:$0xff]  ;;  %v310_v30 = vpack.c.bf16 %v156_v26, %v149_v25 }
  0x3d   :  { %1031 = vmatprep.mubr.bf16.mxu1 %v277_v29  ;;  %v143_v29 = vld [vmem:[%s3811_s0 + $0x3c8] sm:$0xff] }
  0x3e   :  { %v304_v33 = vpack.c.bf16 %v143_v29, %v136_v28 }
  0x3f   :  { %2379 = vmatpush3.bf16.msra.mxu0 %v2650_v17 }
  0x42   :  { %871 = vmatmul.mubr.bf16.gmra.mrb[16].mxu0 %v274_v36  ;;  %v155_v36 = vld [vmem:[%s3811_s0 + $0x428] sm:$0xff] }
  0x43   :  { %878 = vmatprep.mubr.bf16.mxu0 %v282_v38  ;;  %v170_v38 = vld [vmem:[%s3811_s0 + $0x4a0] sm:$0xff]  ;;  %v309_v39 = vpack.c.bf16 %v155_v36, %v148_v35 }
  0x44   :  { %1032 = vmatmul.mubr.bf16.gmra.mrb[16].mxu1 %v276_v43  ;;  %v317_v42 = vpack.c.bf16 %v170_v38, %v163_v37  ;;  %v165_v43 = vld [vmem:[%s3811_s0 + $0x478] sm:$0xff] }
  0x45   :  { %1039 = vmatprep.mubr.bf16.mxu1 %v284_v44  ;;  %v172_v44 = vld [vmem:[%s3811_s0 + $0x4b0] sm:$0xff] }
  0x46   :  { %v319_v46 = vpack.c.bf16 %v172_v44, %v165_v43 }
  0x4a   :  { %879 = vmatmul.mubr.bf16.gmra.mrb[20].mxu0 %v281_v51  ;;  %v164_v51 = vld [vmem:[%s3811_s0 + $0x470] sm:$0xff] }
  0x4b   :  { %886 = vmatprep.mubr.bf16.mxu0 %v289_v54  ;;  %v179_v54 = vld [vmem:[%s3811_s0 + $0x4e8] sm:$0xff] }
  0x4c   :  { %1040 = vmatmul.mubr.bf16.gmra.mrb[20].mxu1 %v283_v57  ;;  %v318_v57 = vpack.c.bf16 %v171_v53, %v164_v51 }
  0x4d   :  { %1047 = vmatprep.mubr.bf16.mxu1 %v291_v58  ;;  %v326_v58 = vpack.c.bf16 %v186_v55, %v179_v54 }
  0x52   :  { %887 = vmatmul.mubr.bf16.gmra.mrb[24].mxu0 %v288_v2 }
  0x53   :  { %894 = vmatprep.mubr.bf16.mxu0 %v296_v4 }
  0x54   :  { %1048 = vmatmul.mubr.bf16.gmra.mrb[24].mxu1 %v290_v7 }
  0x55   :  { %1055 = vmatprep.mubr.bf16.mxu1 %v298_v9 }
  0x5a   :  { %895 = vmatmul.mubr.bf16.gmra.mrb[28].mxu0 %v295_v14 }
  0x5b   :  { %902 = vmatprep.mubr.bf16.mxu0 %v303_v18 }
  0x5c   :  { %1056 = vmatmul.mubr.bf16.gmra.mrb[28].mxu1 %v297_v21 }
  0x5d   :  { %1063 = vmatprep.mubr.bf16.mxu1 %v305_v22 }
  0x62   :  { %903 = vmatmul.mubr.bf16.gmra.mrb[32].mxu0 %v302_v27 }
  0x63   :  { %910 = vmatprep.mubr.bf16.mxu0 %v310_v30 }
  0x64   :  { %1064 = vmatmul.mubr.bf16.gmra.mrb[32].mxu1 %v304_v33 }
  0x65   :  { %1071 = vmatprep.mubr.bf16.mxu1 %v312_v34 }
  0x6a   :  { %911 = vmatmul.mubr.bf16.gmra.mrb[36].mxu0 %v309_v39 }
  0x6b   :  { %918 = vmatprep.mubr.bf16.mxu0 %v317_v42 }
  0x6c   :  { %1072 = vmatmul.mubr.bf16.gmra.mrb[36].mxu1 %v311_v45 }
  0x6d   :  { %1079 = vmatprep.mubr.bf16.mxu1 %v319_v46 }
  0x72   :  { %919 = vmatmul.mubr.bf16.gmra.mrb[40].mxu0 %v316_v52 }
  0x73   :  { %926 = vmatprep.mubr.bf16.mxu0 %v324_v56 }
  0x74   :  { %1080 = vmatmul.mubr.bf16.gmra.mrb[40].mxu1 %v318_v57 }
  0x75   :  { %1087 = vmatprep.mubr.bf16.mxu1 %v326_v58 }
  0x76   :  { %10 = vsyncpa [#allocation3], 0  ;;  %v331_v2 = vpack.c.bf16 %v198_v62, %v191_v61  ;;  %v193_v3 = vld [vmem:[%s3811_s0 + $0x558] sm:$0xff]  ;;  %v200_v4 = vld [vmem:[%s3811_s0 + $0x590] sm:$0xff]  ;;  %v325_v5 = vpack.c.bf16 %v185_v1, %v178_v0  ;;  %vm757_vm0 = vcmask 130048  }
  0x77   :  { %v333_v6 = vpack.c.bf16 %v200_v4, %v193_v3  ;;  %v190_v7 = vld [vmem:[%s3811_s0 + $0x540] sm:$0xff]  ;;  %v197_v8 = vld [vmem:[%s3811_s0 + $0x578] sm:$0xff]  ;;  %v212_v10 = vld [vmem:[%s3811_s0 + $0x5f0] sm:$0xff] }
  0x78   :  { %v205_v9 = vld [vmem:[%s3811_s0 + $0x5b8] sm:$0xff]  ;;  %v330_v11 = vpack.c.bf16 %v197_v8, %v190_v7  ;;  %v192_v12 = vld [vmem:[%s3811_s0 + $0x550] sm:$0xff]  ;;  %v199_v13 = vld [vmem:[%s3811_s0 + $0x588] sm:$0xff] }
  0x79   :  { %v338_v14 = vpack.c.bf16 %v212_v10, %v205_v9  ;;  %v207_v15 = vld [vmem:[%s3811_s0 + $0x5c8] sm:$0xff]  ;;  %v214_v16 = vld [vmem:[%s3811_s0 + $0x600] sm:$0xff]  ;;  %v332_v17 = vpack.c.bf16 %v199_v13, %v192_v12  ;;  %v204_v19 = vld [vmem:[%s3811_s0 + $0x5b0] sm:$0xff] }
  0x7a   :  { %927 = vmatmul.mubr.bf16.gmra.mrb[44].mxu0 %v323_v63  ;;  %v340_v18 = vpack.c.bf16 %v214_v16, %v207_v15  ;;  %v211_v20 = vld [vmem:[%s3811_s0 + $0x5e8] sm:$0xff]  ;;  %v226_v22 = vld [vmem:[%s3811_s0 + $0x660] sm:$0xff]  ;;  %v213_v25 = vld [vmem:[%s3811_s0 + $0x5f8] sm:$0xff] }
  0x7b   :  { %934 = vmatprep.mubr.bf16.mxu0 %v331_v2  ;;  %v219_v21 = vld [vmem:[%s3811_s0 + $0x628] sm:$0xff]  ;;  %v337_v23 = vpack.c.bf16 %v211_v20, %v204_v19  ;;  %v206_v24 = vld [vmem:[%s3811_s0 + $0x5c0] sm:$0xff]  ;;  %v221_v27 = vld [vmem:[%s3811_s0 + $0x638] sm:$0xff] }
  0x7c   :  { %1088 = vmatmul.mubr.bf16.gmra.mrb[44].mxu1 %v325_v5  ;;  %v345_v26 = vpack.c.bf16 %v226_v22, %v219_v21  ;;  %v228_v28 = vld [vmem:[%s3811_s0 + $0x670] sm:$0xff]  ;;  %v339_v29 = vpack.c.bf16 %v213_v25, %v206_v24  ;;  %v218_v31 = vld [vmem:[%s3811_s0 + $0x620] sm:$0xff]  ;;  %v225_v32 = vld [vmem:[%s3811_s0 + $0x658] sm:$0xff] }
  0x7d   :  { %1095 = vmatprep.mubr.bf16.mxu1 %v333_v6  ;;  %v347_v30 = vpack.c.bf16 %v228_v28, %v221_v27  ;;  %v233_v33 = vld [vmem:[%s3811_s0 + $0x698] sm:$0xff]  ;;  %v240_v34 = vld [vmem:[%s3811_s0 + $0x6d0] sm:$0xff]  ;;  %v344_v35 = vpack.c.bf16 %v225_v32, %v218_v31  ;;  %v227_v37 = vld [vmem:[%s3811_s0 + $0x668] sm:$0xff] }
  0x7e   :  { %v220_v36 = vld [vmem:[%s3811_s0 + $0x630] sm:$0xff]  ;;  %v352_v38 = vpack.c.bf16 %v240_v34, %v233_v33  ;;  %v235_v39 = vld [vmem:[%s3811_s0 + $0x6a8] sm:$0xff]  ;;  %v242_v40 = vld [vmem:[%s3811_s0 + $0x6e0] sm:$0xff] }
  0x7f   :  { %v346_v41 = vpack.c.bf16 %v227_v37, %v220_v36  ;;  %v354_v42 = vpack.c.bf16 %v242_v40, %v235_v39  ;;  %v232_v43 = vld [vmem:[%s3811_s0 + $0x690] sm:$0xff]  ;;  %v239_v44 = vld [vmem:[%s3811_s0 + $0x6c8] sm:$0xff]  ;;  %v34_v46 = vld [vmem:[%s3811_s0 + $0x60] sm:$0xff] }
  0x80   :  { %v27_v45 = vld [vmem:[%s3811_s0 + $0x28] sm:$0xff]  ;;  %v351_v47 = vpack.c.bf16 %v239_v44, %v232_v43  ;;  %v234_v48 = vld [vmem:[%s3811_s0 + $0x6a0] sm:$0xff]  ;;  %v241_v49 = vld [vmem:[%s3811_s0 + $0x6d8] sm:$0xff] }
  0x81   :  { %v251_v50 = vpack.c.bf16 %v34_v46, %v27_v45  ;;  %v28_v51 = vld [vmem:[%s3811_s0 + $0x30] sm:$0xff]  ;;  %v35_v52 = vld [vmem:[%s3811_s0 + $0x68] sm:$0xff]  ;;  %v353_v53 = vpack.c.bf16 %v241_v49, %v234_v48  ;;  %v26_v55 = vld [vmem:[%s3811_s0 + $0x20] sm:$0xff] }
  0x82   :  { %935 = vmatmul.mubr.bf16.gmra.mrb[48].mxu0 %v330_v11  ;;  %v252_v54 = vpack.c.bf16 %v35_v52, %v28_v51  ;;  %v33_v56 = vld [vmem:[%s3811_s0 + $0x58] sm:$0xff]  ;;  %v48_v58 = vld [vmem:[%s3811_s0 + $0xd0] sm:$0xff]  ;;  %v42_v60 = vld [vmem:[%s3811_s0 + $0xa0] sm:$0xff] }
  0x83   :  { %942 = vmatprep.mubr.bf16.mxu0 %v338_v14  ;;  %v41_v57 = vld [vmem:[%s3811_s0 + $0x98] sm:$0xff]  ;;  %v250_v59 = vpack.c.bf16 %v33_v56, %v26_v55  ;;  %v56_v63 = vld [vmem:[%s3811_s0 + $0x110] sm:$0xff]  ;;  %v63_v0 = vld [vmem:[%s3811_s0 + $0x148] sm:$0xff] }
  0x84   :  { %1096 = vmatmul.mubr.bf16.gmra.mrb[48].mxu1 %v332_v17  ;;  %v49_v61 = vld [vmem:[%s3811_s0 + $0xd8] sm:$0xff]  ;;  %v258_v62 = vpack.c.bf16 %v48_v58, %v41_v57  ;;  %v266_v2 = vpack.c.bf16 %v63_v0, %v56_v63  ;;  %v40_v3 = vld [vmem:[%s3811_s0 + $0x90] sm:$0xff]  ;;  %v47_v4 = vld [vmem:[%s3811_s0 + $0xc8] sm:$0xff] }
  0x85   :  { %1103 = vmatprep.mubr.bf16.mxu1 %v340_v18  ;;  %v259_v1 = vpack.c.bf16 %v49_v61, %v42_v60  ;;  %v55_v5 = vld [vmem:[%s3811_s0 + $0x108] sm:$0xff]  ;;  %v62_v6 = vld [vmem:[%s3811_s0 + $0x140] sm:$0xff]  ;;  %v257_v7 = vpack.c.bf16 %v47_v4, %v40_v3  ;;  %v77_v9 = vld [vmem:[%s3811_s0 + $0x1b8] sm:$0xff] }
  0x86   :  { %v70_v8 = vld [vmem:[%s3811_s0 + $0x180] sm:$0xff]  ;;  %v265_v10 = vpack.c.bf16 %v62_v6, %v55_v5  ;;  %v84_v11 = vld [vmem:[%s3811_s0 + $0x1f0] sm:$0xff]  ;;  %v91_v12 = vld [vmem:[%s3811_s0 + $0x228] sm:$0xff] }
  0x87   :  { %v273_v13 = vpack.c.bf16 %v77_v9, %v70_v8  ;;  %v280_v14 = vpack.c.bf16 %v91_v12, %v84_v11  ;;  %v54_v15 = vld [vmem:[%s3811_s0 + $0x100] sm:$0xff]  ;;  %v61_v16 = vld [vmem:[%s3811_s0 + $0x138] sm:$0xff]  ;;  %v76_v18 = vld [vmem:[%s3811_s0 + $0x1b0] sm:$0xff] }
  0x88   :  { %v69_v17 = vld [vmem:[%s3811_s0 + $0x178] sm:$0xff]  ;;  %v264_v19 = vpack.c.bf16 %v61_v16, %v54_v15  ;;  %v98_v20 = vld [vmem:[%s3811_s0 + $0x260] sm:$0xff]  ;;  %v119_v24 = vld [vmem:[%s3811_s0 + $0x308] sm:$0xff] }
  0x89   :  { %v105_v21 = vld [vmem:[%s3811_s0 + $0x298] sm:$0xff]  ;;  %v272_v22 = vpack.c.bf16 %v76_v18, %v69_v17  ;;  %v68_v27 = vld [vmem:[%s3811_s0 + $0x170] sm:$0xff]  ;;  %v75_v28 = vld [vmem:[%s3811_s0 + $0x1a8] sm:$0xff] }
  0x8a   :  { %943 = vmatmul.mubr.bf16.gmra.mrb[52].mxu0 %v337_v23  ;;  %v112_v23 = vld [vmem:[%s3811_s0 + $0x2d0] sm:$0xff]  ;;  %v287_v25 = vpack.c.bf16 %v105_v21, %v98_v20  ;;  %v271_v31 = vpack.c.bf16 %v75_v28, %v68_v27  ;;  %v126_v32 = vld [vmem:[%s3811_s0 + $0x340] sm:$0xff]  ;;  %v133_v33 = vld [vmem:[%s3811_s0 + $0x378] sm:$0xff] }
  0x8b   :  { %950 = vmatprep.mubr.bf16.mxu0 %v345_v26  ;;  %v294_v26 = vpack.c.bf16 %v119_v24, %v112_v23  ;;  %v147_v36 = vld [vmem:[%s3811_s0 + $0x3e8] sm:$0xff]  ;;  %v301_v37 = vpack.c.bf16 %v133_v33, %v126_v32  ;;  %v82_v39 = vld [vmem:[%s3811_s0 + $0x1e0] sm:$0xff]  ;;  %v89_v40 = vld [vmem:[%s3811_s0 + $0x218] sm:$0xff] }
  0x8c   :  { %1104 = vmatmul.mubr.bf16.gmra.mrb[52].mxu1 %v339_v29  ;;  %v83_v29 = vld [vmem:[%s3811_s0 + $0x1e8] sm:$0xff]  ;;  %v278_v43 = vpack.c.bf16 %v89_v40, %v82_v39  ;;  %v154_v44 = vld [vmem:[%s3811_s0 + $0x420] sm:$0xff]  ;;  %v161_v45 = vld [vmem:[%s3811_s0 + $0x458] sm:$0xff] }
  0x8d   :  { %1111 = vmatprep.mubr.bf16.mxu1 %v347_v30  ;;  %v90_v30 = vld [vmem:[%s3811_s0 + $0x220] sm:$0xff]  ;;  %v175_v48 = vld [vmem:[%s3811_s0 + $0x4c8] sm:$0xff]  ;;  %v315_v49 = vpack.c.bf16 %v161_v45, %v154_v44  ;;  %v96_v51 = vld [vmem:[%s3811_s0 + $0x250] sm:$0xff] }
  0x8e   :  { %v279_v34 = vpack.c.bf16 %v90_v30, %v83_v29  ;;  %v103_v52 = vld [vmem:[%s3811_s0 + $0x288] sm:$0xff]  ;;  %v182_v56 = vld [vmem:[%s3811_s0 + $0x500] sm:$0xff]  ;;  %v189_v57 = vld [vmem:[%s3811_s0 + $0x538] sm:$0xff] }
  0x8f   :  { %v285_v55 = vpack.c.bf16 %v103_v52, %v96_v51  ;;  %v203_v60 = vld [vmem:[%s3811_s0 + $0x5a8] sm:$0xff]  ;;  %v329_v61 = vpack.c.bf16 %v189_v57, %v182_v56  ;;  %v110_v63 = vld [vmem:[%s3811_s0 + $0x2c0] sm:$0xff]  ;;  %v117_v0 = vld [vmem:[%s3811_s0 + $0x2f8] sm:$0xff] }
  0x90   :  { %v292_v3 = vpack.c.bf16 %v117_v0, %v110_v63  ;;  %v210_v4 = vld [vmem:[%s3811_s0 + $0x5e0] sm:$0xff]  ;;  %v217_v5 = vld [vmem:[%s3811_s0 + $0x618] sm:$0xff]  ;;  %v231_v8 = vld [vmem:[%s3811_s0 + $0x688] sm:$0xff] }
  0x91   :  { %v343_v9 = vpack.c.bf16 %v217_v5, %v210_v4  ;;  %v124_v11 = vld [vmem:[%s3811_s0 + $0x330] sm:$0xff]  ;;  %v131_v12 = vld [vmem:[%s3811_s0 + $0x368] sm:$0xff]  ;;  %v238_v16 = vld [vmem:[%s3811_s0 + $0x6c0] sm:$0xff] }
  0x92   :  { %951 = vmatmul.mubr.bf16.gmra.mrb[56].mxu0 %v344_v35  ;;  %v140_v35 = vld [vmem:[%s3811_s0 + $0x3b0] sm:$0xff]  ;;  %v299_v15 = vpack.c.bf16 %v131_v12, %v124_v11  ;;  %v245_v17 = vld [vmem:[%s3811_s0 + $0x6f8] sm:$0xff]  ;;  %v138_v20 = vld [vmem:[%s3811_s0 + $0x3a0] sm:$0xff] }
  0x93   :  { %958 = vmatprep.mubr.bf16.mxu0 %v352_v38  ;;  %v308_v38 = vpack.c.bf16 %v147_v36, %v140_v35  ;;  %v145_v21 = vld [vmem:[%s3811_s0 + $0x3d8] sm:$0xff]  ;;  %v160_v23 = vld [vmem:[%s3811_s0 + $0x450] sm:$0xff]  ;;  %v159_v27 = vld [vmem:[%s3811_s0 + $0x448] sm:$0xff] }
  0x94   :  { %1112 = vmatmul.mubr.bf16.gmra.mrb[56].mxu1 %v346_v41  ;;  %v97_v41 = vld [vmem:[%s3811_s0 + $0x258] sm:$0xff]  ;;  %v306_v24 = vpack.c.bf16 %v145_v21, %v138_v20  ;;  %v167_v28 = vld [vmem:[%s3811_s0 + $0x488] sm:$0xff]  ;;  %v174_v29 = vld [vmem:[%s3811_s0 + $0x4c0] sm:$0xff] }
  0x95   :  { %1119 = vmatprep.mubr.bf16.mxu1 %v354_v42  ;;  %v104_v42 = vld [vmem:[%s3811_s0 + $0x290] sm:$0xff]  ;;  %v2651_v32 = vld [vmem:[%s3814_s3] sm:$0xff]   ;;  %v181_v35 = vld [vmem:[%s3811_s0 + $0x4f8] sm:$0xff] }
  0x96   :  { %v286_v46 = vpack.c.bf16 %v104_v42, %v97_v41  ;;  %v166_v33 = vld [vmem:[%s3811_s0 + $0x480] sm:$0xff]  ;;  %v188_v36 = vld [vmem:[%s3811_s0 + $0x530] sm:$0xff]  ;;  %2551 = vmatprep.subr.bf16.mxu1 %v2651_v32  ;;  %v187_v42 = vld [vmem:[%s3811_s0 + $0x528] sm:$0xff] }
  0x97   :  { %v328_v39 = vpack.c.bf16 %v188_v36, %v181_v35  ;;  %v2653_v40 = vld [vmem:[%s3814_s3 + $0x10] sm:$0xff]   ;;  %v202_v44 = vld [vmem:[%s3811_s0 + $0x5a0] sm:$0xff]  ;;  %v201_v0 = vld [vmem:[%s3811_s0 + $0x598] sm:$0xff] }
  0x98   :  { %v180_v41 = vld [vmem:[%s3811_s0 + $0x4f0] sm:$0xff]  ;;  %v194_v63 = vld [vmem:[%s3811_s0 + $0x560] sm:$0xff] }
  0x99   :  { %v216_v4 = vld [vmem:[%s3811_s0 + $0x610] sm:$0xff] }
  0x9a   :  { %959 = vmatmul.mubr.bf16.gmra.mrb[60].mxu0 %v351_v47  ;;  %v168_v47 = vld [vmem:[%s3811_s0 + $0x490] sm:$0xff] }
  0x9b   :  { %1160 = vmatprep.mubr.bf16.mxu0 %v251_v50  ;;  %v322_v50 = vpack.c.bf16 %v175_v48, %v168_v47  ;;  %v327_v48 = vpack.c.bf16 %v187_v42, %v180_v41  ;;  %v2657_v20 = vld [vmem:[%s3814_s3 + $0x30] sm:$0xff]  }
  0x9c   :  { %1120 = vmatmul.mubr.bf16.gmra.mrb[60].mxu1 %v353_v53  ;;  %v111_v53 = vld [vmem:[%s3811_s0 + $0x2c8] sm:$0xff] }
  0x9d   :  { %2519 = vmatprep.mubr.msk.bf16.mxu1 %vm757_vm0, %v252_v54  ;;  %v118_v54 = vld [vmem:[%s3811_s0 + $0x300] sm:$0xff] }
  0x9e   :  { %v293_v58 = vpack.c.bf16 %v118_v54, %v111_v53 }
  0xa2   :  { %1161 = vmatmul.mubr.bf16.vlgmr.msra.gmra.mrb[64].mxu0 %v250_v59  ;;  %v196_v59 = vld [vmem:[%s3811_s0 + $0x570] sm:$0xff] }
  0xa3   :  { %1168 = vmatprep.mubr.bf16.mxu0 %v258_v62  ;;  %v336_v62 = vpack.c.bf16 %v203_v60, %v196_v59  ;;  %v2655_v60 = vld [vmem:[%s3814_s3 + $0x20] sm:$0xff]  }
  0xa4   :  { %2520 = vmatmul.mubr.msk.bf16.vlgmr.msra.gmra.mrb[64].mxu1 %vm757_vm0, %v259_v1  ;;  %v125_v1 = vld [vmem:[%s3811_s0 + $0x338] sm:$0xff] }
  0xa5   :  { %2523 = vmatprep.mubr.msk.bf16.mxu1 %vm757_vm0, %v266_v2  ;;  %v132_v2 = vld [vmem:[%s3811_s0 + $0x370] sm:$0xff]  ;;  %2552 = vmatpush3.bf16.msra.mxu1 %v2651_v32 }
  0xa6   :  { %v300_v6 = vpack.c.bf16 %v132_v2, %v125_v1 }
  0xaa   :  { %1169 = vmatmul.mubr.bf16.gmra.mrb[68].mxu0 %v257_v7  ;;  %v224_v7 = vld [vmem:[%s3811_s0 + $0x650] sm:$0xff] }
  0xab   :  { %1176 = vmatprep.mubr.bf16.mxu0 %v265_v10  ;;  %v350_v10 = vpack.c.bf16 %v231_v8, %v224_v7  ;;  %v334_v8 = vpack.c.bf16 %v201_v0, %v194_v63 }
  0xac   :  { %2524 = vmatmul.mubr.msk.bf16.gmra.mrb[68].mxu1 %vm757_vm0, %v273_v13  ;;  %v139_v13 = vld [vmem:[%s3811_s0 + $0x3a8] sm:$0xff] }
  0xad   :  { %2527 = vmatprep.mubr.msk.bf16.mxu1 %vm757_vm0, %v280_v14  ;;  %v146_v14 = vld [vmem:[%s3811_s0 + $0x3e0] sm:$0xff] }
  0xae   :  { %v307_v18 = vpack.c.bf16 %v146_v14, %v139_v13 }
  0xb2   :  { %1177 = vmatmul.mubr.bf16.gmra.mrb[72].mxu0 %v264_v19  ;;  %v357_v19 = vpack.c.bf16 %v245_v17, %v238_v16 }
  0xb3   :  { %1184 = vmatprep.mubr.bf16.mxu0 %v272_v22  ;;  %v153_v22 = vld [vmem:[%s3811_s0 + $0x418] sm:$0xff] }
  0xb4   :  { %2528 = vmatmul.mubr.msk.bf16.gmra.mrb[72].mxu1 %vm757_vm0, %v287_v25  ;;  %v314_v25 = vpack.c.bf16 %v160_v23, %v153_v22  ;;  %v208_v23 = vld [vmem:[%s3811_s0 + $0x5d0] sm:$0xff] }
  0xb5   :  { %2531 = vmatprep.mubr.msk.bf16.mxu1 %vm757_vm0, %v294_v26  ;;  %v152_v26 = vld [vmem:[%s3811_s0 + $0x410] sm:$0xff] }
  0xb6   :  { %v313_v30 = vpack.c.bf16 %v159_v27, %v152_v26  ;;  %v223_v27 = vld [vmem:[%s3811_s0 + $0x648] sm:$0xff] }
  0xba   :  { %1185 = vmatmul.mubr.bf16.gmra.mrb[76].mxu0 %v271_v31  ;;  %v321_v31 = vpack.c.bf16 %v174_v29, %v167_v28  ;;  %v230_v28 = vld [vmem:[%s3811_s0 + $0x680] sm:$0xff] }
  0xbb   :  { %1192 = vmatprep.mubr.bf16.mxu0 %v279_v34  ;;  %v173_v34 = vld [vmem:[%s3811_s0 + $0x4b8] sm:$0xff]  ;;  %v349_v36 = vpack.c.bf16 %v230_v28, %v223_v27 }
  0xbc   :  { %2532 = vmatmul.mubr.msk.bf16.gmra.mrb[76].mxu1 %vm757_vm0, %v301_v37  ;;  %v320_v37 = vpack.c.bf16 %v173_v34, %v166_v33  ;;  %v2658_v33 = vld [vmem:[%s3814_s3 + $0x38] sm:$0xff]  }
  0xbd   :  { %2535 = vmatprep.mubr.msk.bf16.mxu1 %vm757_vm0, %v308_v38  ;;  %v2652_v38 = vld [vmem:[%s3814_s3 + $0x8] sm:$0xff]  }
  0xbe   :  { %2553 = vmatprep.subr.bf16.mxu1 %v2652_v38 }
  0xbf   :  { %2554 = vmatpush3.bf16.msra.mxu1 %v2652_v38 }
  0xc0   :  { %2555 = vmatprep.subr.bf16.mxu1 %v2653_v40 }
  0xc2   :  { %1193 = vmatmul.mubr.bf16.gmra.mrb[80].mxu0 %v278_v43  ;;  %v195_v43 = vld [vmem:[%s3811_s0 + $0x568] sm:$0xff] }
  0xc3   :  { %1200 = vmatprep.mubr.bf16.mxu0 %v286_v46  ;;  %2556 = vmatpush3.bf16.msra.mxu1 %v2653_v40  ;;  %v3521_v46 = vld [vmem:[%s3813_s2] ss:$0 sm:$0xff]  ;;  %v335_v52 = vpack.c.bf16 %v202_v44, %v195_v43 }
  0xc4   :  { %2536 = vmatmul.mubr.msk.bf16.gmra.mrb[80].mxu1 %vm757_vm0, %v315_v49  ;;  %v2654_v49 = vld [vmem:[%s3814_s3 + $0x18] sm:$0xff]  }
  0xc5   :  { %2539 = vmatprep.mubr.msk.bf16.mxu1 %vm757_vm0, %v322_v50  ;;  %2557 = vmatprep.subr.bf16.mxu1 %v2654_v49 }
  0xc7   :  { %2558 = vmatpush3.bf16.msra.mxu1 %v2654_v49 }
  0xc8   :  { %2559 = vmatprep.subr.bf16.mxu1 %v2655_v60 }
  0xca   :  { %1201 = vmatmul.mubr.bf16.gmra.mrb[84].mxu0 %v285_v55 }
  0xcb   :  { %1208 = vmatprep.mubr.bf16.mxu0 %v293_v58  ;;  %2560 = vmatpush3.bf16.msra.mxu1 %v2655_v60 }
  0xcc   :  { %2540 = vmatmul.mubr.msk.bf16.gmra.mrb[84].mxu1 %vm757_vm0, %v329_v61 }
  0xcd   :  { %2543 = vmatprep.mubr.msk.bf16.mxu1 %vm757_vm0, %v336_v62 }
  0xd2   :  { %1209 = vmatmul.mubr.bf16.gmra.mrb[88].mxu0 %v292_v3  ;;  %v209_v3 = vld [vmem:[%s3811_s0 + $0x5d8] sm:$0xff] }
  0xd3   :  { %1216 = vmatprep.mubr.bf16.mxu0 %v300_v6  ;;  %v342_v12 = vpack.c.bf16 %v216_v4, %v209_v3 }
  0xd4   :  { %2544 = vmatmul.mubr.msk.bf16.gmra.mrb[88].mxu1 %vm757_vm0, %v343_v9  ;;  %v2656_v9 = vld [vmem:[%s3814_s3 + $0x28] sm:$0xff]  }
  0xd5   :  { %2547 = vmatprep.mubr.msk.bf16.mxu1 %vm757_vm0, %v350_v10  ;;  %2561 = vmatprep.subr.bf16.mxu1 %v2656_v9 }
  0xd6   :  { %2562 = vmatpush3.bf16.msra.mxu1 %v2656_v9 }
  0xd7   :  { %2563 = vmatprep.subr.bf16.mxu1 %v2657_v20 }
  0xda   :  { %1217 = vmatmul.mubr.bf16.gmra.mrb[92].mxu0 %v299_v15  ;;  %2564 = vmatpush3.bf16.msra.mxu1 %v2657_v20 }
  0xdb   :  { %1224 = vmatprep.mubr.bf16.mxu0 %v307_v18  ;;  %2565 = vmatprep.subr.bf16.mxu1 %v2658_v33 }
  0xdc   :  { %2548 = vmatmul.mubr.msk.bf16.gmra.mrb[92].mxu1 %vm757_vm0, %v357_v19 }
  0xde   :  { %2566 = vmatpush3.bf16.msra.mxu1 %v2658_v33 }
  0xe2   :  { %1225 = vmatmul.mubr.bf16.gmra.mrb[96].mxu0 %v306_v24  ;;  %v215_v24 = vld [vmem:[%s3811_s0 + $0x608] sm:$0xff] }
  0xe3   :  { %1232 = vmatprep.mubr.bf16.mxu0 %v314_v25  ;;  %v341_v32 = vpack.c.bf16 %v215_v24, %v208_v23 }
  0xea   :  { %1233 = vmatmul.mubr.bf16.gmra.mrb[100].mxu0 %v313_v30 }
  0xeb   :  { %1240 = vmatprep.mubr.bf16.mxu0 %v321_v31 }
  0xf2   :  { %1241 = vmatmul.mubr.bf16.gmra.mrb[104].mxu0 %v320_v37 }
  0xf3   :  { %1248 = vmatprep.mubr.bf16.mxu0 %v328_v39 }
  0xf5   :  { %v2156_v45 = vpop.f32.mrb[0].mxu0 }
  0xf6   :  { %v2157_v47 = vpop.f32.mrb[1].mxu0 }
  0xf7   :  { %v2158_v50 = vadd.f32 %v2157_v47, %v2156_v45  ;;  %v2159_v51 = vpop.f32.mrb[2].mxu0  ;;  %v2268_v53 = vpop.f32.mrb[0].mxu1  ;;  %v222_v47 = vld [vmem:[%s3811_s0 + $0x640] sm:$0xff] }
  0xf8   :  { %v2160_v54 = vpop.f32.mrb[3].mxu0  ;;  %v2269_v57 = vpop.f32.mrb[1].mxu1 }
  0xf9   :  { %v841_v55 = vadd.f32 %v2158_v50, %v3521_v46  ;;  %v2161_v56 = vadd.f32 %v2160_v54, %v2159_v51  ;;  %v2270_v58 = vadd.f32 %v2269_v57, %v2268_v53  ;;  %v2271_v59 = vpop.f32.mrb[2].mxu1  ;;  %v237_v51 = vld [vmem:[%s3811_s0 + $0x6b8] sm:$0xff] }
  0xfa   :  { %1249 = vmatmul.mubr.bf16.gmra.mrb[108].mxu0 %v327_v48  ;;  %v2272_v62 = vpop.f32.mrb[3].mxu1  ;;  %v229_v48 = vld [vmem:[%s3811_s0 + $0x678] sm:$0xff] }
  0xfb   :  { %v844_v61 = vadd.f32 %v2161_v56, %v3521_v46  ;;  %1256 = vmatprep.mubr.bf16.mxu0 %v335_v52  ;;  %v3537_v1 = vadd.f32 %v2270_v58, %v841_v55  ;;  %v2273_v2 = vadd.f32 %v2272_v62, %v2271_v59  ;;  %v244_v52 = vld [vmem:[%s3811_s0 + $0x6f0] sm:$0xff]  ;;  %v348_v56 = vpack.c.bf16 %v229_v48, %v222_v47 }
  0xfc   :  { %v356_v59 = vpack.c.bf16 %v244_v52, %v237_v51 }
  0xfd   :  { %v2162_v5 = vpop.f32.mrb[4].mxu0  ;;  %v3545_v6 = vadd.f32 %v2273_v2, %v844_v61 }
  0xfe   :  { %v2163_v7 = vpop.f32.mrb[5].mxu0 }
  0xff   :  { %v2164_v10 = vadd.f32 %v2163_v7, %v2162_v5  ;;  %v2165_v11 = vpop.f32.mrb[6].mxu0  ;;  %v2274_v13 = vpop.f32.mrb[4].mxu1  ;;  %v236_v7 = vld [vmem:[%s3811_s0 + $0x6b0] sm:$0xff] }
 0x100   :  { %v2166_v14 = vpop.f32.mrb[7].mxu0  ;;  %v2275_v17 = vpop.f32.mrb[5].mxu1 }
 0x101   :  { %v849_v15 = vadd.f32 %v2164_v10, %v3521_v46  ;;  %v2167_v16 = vadd.f32 %v2166_v14, %v2165_v11  ;;  %v2276_v18 = vadd.f32 %v2275_v17, %v2274_v13  ;;  %v2277_v19 = vpop.f32.mrb[6].mxu1 }
 0x102   :  { %1257 = vmatmul.mubr.bf16.gmra.mrb[112].mxu0 %v334_v8  ;;  %v2278_v22 = vpop.f32.mrb[7].mxu1  ;;  %v243_v8 = vld [vmem:[%s3811_s0 + $0x6e8] sm:$0xff] }
 0x103   :  { %v852_v21 = vadd.f32 %v2167_v16, %v3521_v46  ;;  %1264 = vmatprep.mubr.bf16.mxu0 %v342_v12  ;;  %v3561_v25 = vadd.f32 %v2276_v18, %v849_v15  ;;  %v2279_v26 = vadd.f32 %v2278_v22, %v2277_v19  ;;  %v355_v14 = vpack.c.bf16 %v243_v8, %v236_v7 }
 0x105   :  { %v2168_v29 = vpop.f32.mrb[8].mxu0  ;;  %v3569_v30 = vadd.f32 %v2279_v26, %v852_v21 }
 0x106   :  { %v2169_v31 = vpop.f32.mrb[9].mxu0 }
 0x107   :  { %v2170_v34 = vadd.f32 %v2169_v31, %v2168_v29  ;;  %v2171_v35 = vpop.f32.mrb[10].mxu0  ;;  %v2280_v37 = vpop.f32.mrb[8].mxu1 }
 0x108   :  { %v2172_v38 = vpop.f32.mrb[11].mxu0  ;;  %v2281_v41 = vpop.f32.mrb[9].mxu1 }
 0x109   :  { %v857_v39 = vadd.f32 %v2170_v34, %v3521_v46  ;;  %v2173_v40 = vadd.f32 %v2172_v38, %v2171_v35  ;;  %v2282_v42 = vadd.f32 %v2281_v41, %v2280_v37  ;;  %v2283_v43 = vpop.f32.mrb[10].mxu1 }
 0x10a   :  { %1265 = vmatmul.mubr.bf16.gmra.mrb[116].mxu0 %v341_v32  ;;  %v2284_v45 = vpop.f32.mrb[11].mxu1 }
 0x10b   :  { %v860_v44 = vadd.f32 %v2173_v40, %v3521_v46  ;;  %1272 = vmatprep.mubr.bf16.mxu0 %v349_v36  ;;  %v3582_v49 = vadd.f32 %v2282_v42, %v857_v39  ;;  %v2285_v50 = vadd.f32 %v2284_v45, %v2283_v43 }
 0x10d   :  { %v2174_v53 = vpop.f32.mrb[12].mxu0  ;;  %v3590_v54 = vadd.f32 %v2285_v50, %v860_v44 }
 0x10e   :  { %v2175_v55 = vpop.f32.mrb[13].mxu0 }
 0x10f   :  { %v2176_v57 = vadd.f32 %v2175_v55, %v2174_v53  ;;  %v2177_v58 = vpop.f32.mrb[14].mxu0  ;;  %v2286_v60 = vpop.f32.mrb[12].mxu1 }
 0x110   :  { %v2178_v61 = vpop.f32.mrb[15].mxu0  ;;  %v2287_v0 = vpop.f32.mrb[13].mxu1 }
 0x111   :  { %v865_v62 = vadd.f32 %v2176_v57, %v3521_v46  ;;  %v2179_v63 = vadd.f32 %v2178_v61, %v2177_v58  ;;  %v2288_v2 = vadd.f32 %v2287_v0, %v2286_v60  ;;  %v2289_v3 = vpop.f32.mrb[14].mxu1 }
 0x112   :  { %1273 = vmatmul.mubr.bf16.gmra.mrb[120].mxu0 %v348_v56  ;;  %v2290_v5 = vpop.f32.mrb[15].mxu1 }
 0x113   :  { %v868_v4 = vadd.f32 %v2179_v63, %v3521_v46  ;;  %1280 = vmatprep.mubr.bf16.mxu0 %v356_v59  ;;  %v3600_v9 = vadd.f32 %v2288_v2, %v865_v62  ;;  %v2291_v10 = vadd.f32 %v2290_v5, %v2289_v3 }
 0x115   :  { %v2180_v11 = vpop.f32.mrb[16].mxu0  ;;  %v3602_v12 = vadd.f32 %v2291_v10, %v868_v4 }
 0x116   :  { %v2181_v13 = vpop.f32.mrb[17].mxu0 }
 0x117   :  { %v2182_v15 = vadd.f32 %v2181_v13, %v2180_v11  ;;  %v2183_v16 = vpop.f32.mrb[18].mxu0  ;;  %v2292_v17 = vpop.f32.mrb[16].mxu1 }
 0x118   :  { %v2184_v18 = vpop.f32.mrb[19].mxu0  ;;  %v2293_v21 = vpop.f32.mrb[17].mxu1 }
 0x119   :  { %v873_v19 = vadd.f32 %v2182_v15, %v3521_v46  ;;  %v2185_v20 = vadd.f32 %v2184_v18, %v2183_v16  ;;  %v2294_v22 = vadd.f32 %v2293_v21, %v2292_v17  ;;  %v2295_v23 = vpop.f32.mrb[18].mxu1 }
 0x11a   :  { %1281 = vmatmul.mubr.bf16.gmra.mrb[124].mxu0 %v355_v14  ;;  %v2296_v26 = vpop.f32.mrb[19].mxu1 }
 0x11b   :  { %v876_v24 = vadd.f32 %v2185_v20, %v3521_v46  ;;  %v3606_v27 = vadd.f32 %v2294_v22, %v873_v19  ;;  %v2297_v28 = vadd.f32 %v2296_v26, %v2295_v23 }
 0x11d   :  { %v2186_v29 = vpop.f32.mrb[20].mxu0  ;;  %v3608_v31 = vadd.f32 %v2297_v28, %v876_v24 }
 0x11e   :  { %v2187_v32 = vpop.f32.mrb[21].mxu0 }
 0x11f   :  { %v2188_v33 = vadd.f32 %v2187_v32, %v2186_v29  ;;  %v2189_v34 = vpop.f32.mrb[22].mxu0  ;;  %v2298_v35 = vpop.f32.mrb[20].mxu1 }
 0x120   :  { %v2190_v36 = vpop.f32.mrb[23].mxu0  ;;  %v2299_v39 = vpop.f32.mrb[21].mxu1 }
 0x121   :  { %v881_v37 = vadd.f32 %v2188_v33, %v3521_v46  ;;  %v2191_v38 = vadd.f32 %v2190_v36, %v2189_v34  ;;  %v2300_v40 = vadd.f32 %v2299_v39, %v2298_v35  ;;  %v2301_v41 = vpop.f32.mrb[22].mxu1 }
 0x122   :  { %v2302_v43 = vpop.f32.mrb[23].mxu1 }
 0x123   :  { %v884_v42 = vadd.f32 %v2191_v38, %v3521_v46  ;;  %v3612_v44 = vadd.f32 %v2300_v40, %v881_v37  ;;  %v2303_v45 = vadd.f32 %v2302_v43, %v2301_v41 }
 0x125   :  { %v2192_v47 = vpop.f32.mrb[24].mxu0  ;;  %v3614_v48 = vadd.f32 %v2303_v45, %v884_v42 }
 0x126   :  { %v2193_v50 = vpop.f32.mrb[25].mxu0 }
 0x127   :  { %v2194_v51 = vadd.f32 %v2193_v50, %v2192_v47  ;;  %v2195_v52 = vpop.f32.mrb[26].mxu0  ;;  %v2304_v53 = vpop.f32.mrb[24].mxu1 }
 0x128   :  { %v2196_v55 = vpop.f32.mrb[27].mxu0  ;;  %v2305_v58 = vpop.f32.mrb[25].mxu1 }
 0x129   :  { %v889_v56 = vadd.f32 %v2194_v51, %v3521_v46  ;;  %v2197_v57 = vadd.f32 %v2196_v55, %v2195_v52  ;;  %v2306_v59 = vadd.f32 %v2305_v58, %v2304_v53  ;;  %v2307_v60 = vpop.f32.mrb[26].mxu1 }
 0x12a   :  { %v2308_v62 = vpop.f32.mrb[27].mxu1 }
 0x12b   :  { %v892_v61 = vadd.f32 %v2197_v57, %v3521_v46  ;;  %v3618_v63 = vadd.f32 %v2306_v59, %v889_v56  ;;  %v2309_v0 = vadd.f32 %v2308_v62, %v2307_v60 }
 0x12d   :  { %v2198_v2 = vpop.f32.mrb[28].mxu0  ;;  %v3620_v3 = vadd.f32 %v2309_v0, %v892_v61 }
 0x12e   :  { %v2199_v4 = vpop.f32.mrb[29].mxu0 }
 0x12f   :  { %v2200_v5 = vadd.f32 %v2199_v4, %v2198_v2  ;;  %v2201_v7 = vpop.f32.mrb[30].mxu0  ;;  %v2310_v8 = vpop.f32.mrb[28].mxu1 }
 0x130   :  { %v2202_v10 = vpop.f32.mrb[31].mxu0  ;;  %v2311_v14 = vpop.f32.mrb[29].mxu1 }
 0x131   :  { %v897_v11 = vadd.f32 %v2200_v5, %v3521_v46  ;;  %v2203_v13 = vadd.f32 %v2202_v10, %v2201_v7  ;;  %v2312_v15 = vadd.f32 %v2311_v14, %v2310_v8  ;;  %v2313_v16 = vpop.f32.mrb[30].mxu1 }
 0x132   :  { %v2314_v18 = vpop.f32.mrb[31].mxu1 }
 0x133   :  { %v900_v17 = vadd.f32 %v2203_v13, %v3521_v46  ;;  %v3624_v19 = vadd.f32 %v2312_v15, %v897_v11  ;;  %v2315_v20 = vadd.f32 %v2314_v18, %v2313_v16 }
 0x135   :  { %v2204_v21 = vpop.f32.mrb[32].mxu0  ;;  %v3626_v22 = vadd.f32 %v2315_v20, %v900_v17 }
 0x136   :  { %v2205_v23 = vpop.f32.mrb[33].mxu0 }
 0x137   :  { %v2206_v24 = vadd.f32 %v2205_v23, %v2204_v21  ;;  %v2207_v26 = vpop.f32.mrb[34].mxu0  ;;  %v2316_v28 = vpop.f32.mrb[32].mxu1 }
 0x138   :  { %v2208_v29 = vpop.f32.mrb[35].mxu0  ;;  %v2317_v34 = vpop.f32.mrb[33].mxu1 }
 0x139   :  { %v905_v32 = vadd.f32 %v2206_v24, %v3521_v46  ;;  %v2209_v33 = vadd.f32 %v2208_v29, %v2207_v26  ;;  %v2318_v35 = vadd.f32 %v2317_v34, %v2316_v28  ;;  %v2319_v36 = vpop.f32.mrb[34].mxu1 }
 0x13a   :  { %v2320_v38 = vpop.f32.mrb[35].mxu1 }
 0x13b   :  { %v908_v37 = vadd.f32 %v2209_v33, %v3521_v46  ;;  %v3630_v39 = vadd.f32 %v2318_v35, %v905_v32  ;;  %v2321_v40 = vadd.f32 %v2320_v38, %v2319_v36 }
 0x13d   :  { %v2210_v41 = vpop.f32.mrb[36].mxu0  ;;  %v3632_v42 = vadd.f32 %v2321_v40, %v908_v37 }
 0x13e   :  { %v2211_v43 = vpop.f32.mrb[37].mxu0 }
 0x13f   :  { %v2212_v45 = vadd.f32 %v2211_v43, %v2210_v41  ;;  %v2213_v47 = vpop.f32.mrb[38].mxu0  ;;  %v2322_v50 = vpop.f32.mrb[36].mxu1 }
 0x140   :  { %v2214_v51 = vpop.f32.mrb[39].mxu0  ;;  %v2323_v55 = vpop.f32.mrb[37].mxu1 }
 0x141   :  { %v913_v52 = vadd.f32 %v2212_v45, %v3521_v46  ;;  %v2215_v53 = vadd.f32 %v2214_v51, %v2213_v47  ;;  %v2324_v56 = vadd.f32 %v2323_v55, %v2322_v50  ;;  %v2325_v57 = vpop.f32.mrb[38].mxu1 }
 0x142   :  { %v2326_v59 = vpop.f32.mrb[39].mxu1 }
 0x143   :  { %v916_v58 = vadd.f32 %v2215_v53, %v3521_v46  ;;  %v3636_v60 = vadd.f32 %v2324_v56, %v913_v52  ;;  %v2327_v61 = vadd.f32 %v2326_v59, %v2325_v57 }
 0x145   :  { %v2216_v62 = vpop.f32.mrb[40].mxu0  ;;  %v3638_v0 = vadd.f32 %v2327_v61, %v916_v58 }
 0x146   :  { %v2217_v2 = vpop.f32.mrb[41].mxu0 }
 0x147   :  { %v2218_v4 = vadd.f32 %v2217_v2, %v2216_v62  ;;  %v2219_v5 = vpop.f32.mrb[42].mxu0  ;;  %v2328_v7 = vpop.f32.mrb[40].mxu1 }
 0x148   :  { %v2220_v8 = vpop.f32.mrb[43].mxu0  ;;  %v2329_v13 = vpop.f32.mrb[41].mxu1 }
 0x149   :  { %v921_v10 = vadd.f32 %v2218_v4, %v3521_v46  ;;  %v2221_v11 = vadd.f32 %v2220_v8, %v2219_v5  ;;  %v2330_v14 = vadd.f32 %v2329_v13, %v2328_v7  ;;  %v2331_v15 = vpop.f32.mrb[42].mxu1 }
 0x14a   :  { %v2332_v17 = vpop.f32.mrb[43].mxu1 }
 0x14b   :  { %v924_v16 = vadd.f32 %v2221_v11, %v3521_v46  ;;  %v3642_v18 = vadd.f32 %v2330_v14, %v921_v10  ;;  %v2333_v20 = vadd.f32 %v2332_v17, %v2331_v15 }
 0x14d   :  { %v2222_v21 = vpop.f32.mrb[44].mxu0  ;;  %v3644_v23 = vadd.f32 %v2333_v20, %v924_v16 }
 0x14e   :  { %v2223_v24 = vpop.f32.mrb[45].mxu0 }
 0x14f   :  { %v2224_v26 = vadd.f32 %v2223_v24, %v2222_v21  ;;  %v2225_v28 = vpop.f32.mrb[46].mxu0  ;;  %v2334_v29 = vpop.f32.mrb[44].mxu1 }
 0x150   :  { %v2226_v32 = vpop.f32.mrb[47].mxu0  ;;  %v2335_v35 = vpop.f32.mrb[45].mxu1 }
 0x151   :  { %v929_v33 = vadd.f32 %v2224_v26, %v3521_v46  ;;  %v2227_v34 = vadd.f32 %v2226_v32, %v2225_v28  ;;  %v2336_v36 = vadd.f32 %v2335_v35, %v2334_v29  ;;  %v2337_v37 = vpop.f32.mrb[46].mxu1 }
 0x152   :  { %v2338_v40 = vpop.f32.mrb[47].mxu1 }
 0x153   :  { %v932_v38 = vadd.f32 %v2227_v34, %v3521_v46  ;;  %v3648_v41 = vadd.f32 %v2336_v36, %v929_v33  ;;  %v2339_v43 = vadd.f32 %v2338_v40, %v2337_v37 }
 0x155   :  { %v2228_v45 = vpop.f32.mrb[48].mxu0  ;;  %v3650_v47 = vadd.f32 %v2339_v43, %v932_v38 }
 0x156   :  { %v2229_v50 = vpop.f32.mrb[49].mxu0 }
 0x157   :  { %v2230_v51 = vadd.f32 %v2229_v50, %v2228_v45  ;;  %v2231_v52 = vpop.f32.mrb[50].mxu0  ;;  %v2340_v53 = vpop.f32.mrb[48].mxu1 }
 0x158   :  { %v2232_v55 = vpop.f32.mrb[51].mxu0  ;;  %v2341_v58 = vpop.f32.mrb[49].mxu1 }
 0x159   :  { %v937_v56 = vadd.f32 %v2230_v51, %v3521_v46  ;;  %v2233_v57 = vadd.f32 %v2232_v55, %v2231_v52  ;;  %v2342_v59 = vadd.f32 %v2341_v58, %v2340_v53  ;;  %v2343_v61 = vpop.f32.mrb[50].mxu1 }
 0x15a   :  { %v2344_v2 = vpop.f32.mrb[51].mxu1 }
 0x15b   :  { %v940_v62 = vadd.f32 %v2233_v57, %v3521_v46  ;;  %v3654_v4 = vadd.f32 %v2342_v59, %v937_v56  ;;  %v2345_v5 = vadd.f32 %v2344_v2, %v2343_v61 }
 0x15d   :  { %v2234_v7 = vpop.f32.mrb[52].mxu0  ;;  %v3656_v8 = vadd.f32 %v2345_v5, %v940_v62 }
 0x15e   :  { %v2235_v10 = vpop.f32.mrb[53].mxu0 }
 0x15f   :  { %v2236_v11 = vadd.f32 %v2235_v10, %v2234_v7  ;;  %v2237_v13 = vpop.f32.mrb[54].mxu0  ;;  %v2346_v14 = vpop.f32.mrb[52].mxu1 }
 0x160   :  { %v2238_v15 = vpop.f32.mrb[55].mxu0  ;;  %v2347_v20 = vpop.f32.mrb[53].mxu1 }
 0x161   :  { %v945_v16 = vadd.f32 %v2236_v11, %v3521_v46  ;;  %v2239_v17 = vadd.f32 %v2238_v15, %v2237_v13  ;;  %v2348_v21 = vadd.f32 %v2347_v20, %v2346_v14  ;;  %v2349_v24 = vpop.f32.mrb[54].mxu1 }
 0x162   :  { %v2350_v28 = vpop.f32.mrb[55].mxu1 }
 0x163   :  { %v948_v26 = vadd.f32 %v2239_v17, %v3521_v46  ;;  %v3660_v29 = vadd.f32 %v2348_v21, %v945_v16  ;;  %v2351_v32 = vadd.f32 %v2350_v28, %v2349_v24 }
 0x165   :  { %v2240_v33 = vpop.f32.mrb[56].mxu0  ;;  %v3662_v34 = vadd.f32 %v2351_v32, %v948_v26 }
 0x166   :  { %v2241_v35 = vpop.f32.mrb[57].mxu0 }
 0x167   :  { %v2242_v36 = vadd.f32 %v2241_v35, %v2240_v33  ;;  %v2243_v37 = vpop.f32.mrb[58].mxu0  ;;  %v2352_v38 = vpop.f32.mrb[56].mxu1 }
 0x168   :  { %v2244_v40 = vpop.f32.mrb[59].mxu0  ;;  %v2353_v50 = vpop.f32.mrb[57].mxu1 }
 0x169   :  { %v953_v43 = vadd.f32 %v2242_v36, %v3521_v46  ;;  %v2245_v45 = vadd.f32 %v2244_v40, %v2243_v37  ;;  %v2354_v51 = vadd.f32 %v2353_v50, %v2352_v38  ;;  %v2355_v52 = vpop.f32.mrb[58].mxu1 }
 0x16a   :  { %v2356_v55 = vpop.f32.mrb[59].mxu1 }
 0x16b   :  { %v956_v53 = vadd.f32 %v2245_v45, %v3521_v46  ;;  %v3666_v56 = vadd.f32 %v2354_v51, %v953_v43  ;;  %v2357_v57 = vadd.f32 %v2356_v55, %v2355_v52 }
 0x16d   :  { %v2246_v58 = vpop.f32.mrb[60].mxu0  ;;  %v3668_v59 = vadd.f32 %v2357_v57, %v956_v53 }
 0x16e   :  { %v2247_v61 = vpop.f32.mrb[61].mxu0 }
 0x16f   :  { %v2248_v62 = vadd.f32 %v2247_v61, %v2246_v58  ;;  %v2249_v2 = vpop.f32.mrb[62].mxu0  ;;  %v2358_v5 = vpop.f32.mrb[60].mxu1 }
 0x170   :  { %v2250_v7 = vpop.f32.mrb[63].mxu0  ;;  %v2359_v13 = vpop.f32.mrb[61].mxu1 }
 0x171   :  { %v961_v10 = vadd.f32 %v2248_v62, %v3521_v46  ;;  %v2251_v11 = vadd.f32 %v2250_v7, %v2249_v2  ;;  %v2360_v14 = vadd.f32 %v2359_v13, %v2358_v5  ;;  %v2361_v15 = vpop.f32.mrb[62].mxu1 }
 0x172   :  { %v2362_v17 = vpop.f32.mrb[63].mxu1 }
 0x173   :  { %v964_v16 = vadd.f32 %v2251_v11, %v3521_v46  ;;  %v3672_v20 = vadd.f32 %v2360_v14, %v961_v10  ;;  %v2363_v21 = vadd.f32 %v2362_v17, %v2361_v15 }
 0x175   :  { %v2380_v24 = vpop.f32.mrb[64].mxu0  ;;  %v3674_v26 = vadd.f32 %v2363_v21, %v964_v16 }
 0x176   :  { %v2381_v28 = vpop.f32.mrb[65].mxu0 }
 0x177   :  { %v2382_v32 = vadd.f32 %v2381_v28, %v2380_v24  ;;  %v2383_v33 = vpop.f32.mrb[66].mxu0  ;;  %v2521_v36 = vpop.f32.mrb[64].mxu1 }
 0x178   :  { %v2384_v35 = vpop.f32.mrb[67].mxu0  ;;  %v1323_v40 = vpop.f32.mrb[65].mxu1 }
 0x179   :  { %v2385_v37 = vadd.f32 %v2384_v35, %v2383_v33  ;;  %v1163_v38 = vadd.f32 %v2382_v32, %v3537_v1  ;;  %v2522_v43 = vpop.f32.mrb[66].mxu1 }
 0x17a   :  { %v1326_v50 = vpop.f32.mrb[67].mxu1 }
 0x17b   :  { %v1324_v45 = vadd.f32 %v1323_v40, %v1163_v38  ;;  %v1166_v46 = vadd.f32 %v2385_v37, %v3545_v6 }
 0x17d   :  { %v1327_v51 = vadd.f32 %v1326_v50, %v1166_v46  ;;  %v2386_v52 = vpop.f32.mrb[68].mxu0  ;;  %v1450_v55 = vmax.f32 %v1324_v45, 0.0 }
 0x17e   :  { %v2387_v53 = vpop.f32.mrb[69].mxu0 }
 0x17f   :  { %v1451_v57 = vmax.f32 %v1327_v51, 0.0  ;;  %v2388_v58 = vadd.f32 %v2387_v53, %v2386_v52  ;;  %v2389_v61 = vpop.f32.mrb[70].mxu0  ;;  %v2525_v2 = vpop.f32.mrb[68].mxu1 }
 0x180   :  { %v2390_v62 = vpop.f32.mrb[71].mxu0  ;;  %v1339_v1 = vpop.f32.mrb[69].mxu1 }
 0x181   :  { %v1482_v5 = vpack.c.bf16 %v1451_v57, %v1450_v55  ;;  %v1171_v7 = vadd.f32 %v2388_v58, %v3561_v25  ;;  %v2391_v10 = vadd.f32 %v2390_v62, %v2389_v61  ;;  %v2526_v11 = vpop.f32.mrb[70].mxu1 }
 0x182   :  { %v1342_v6 = vpop.f32.mrb[71].mxu1 }
 0x183   :  { %v1332_v13 = vadd.f32 %v2521_v36, %v1171_v7  ;;  %v1174_v14 = vadd.f32 %v2391_v10, %v3569_v30  ;;  %2567 = vmatprep.mubr.bf16.mxu1 %v1482_v5 }
 0x185   :  { %v1335_v15 = vadd.f32 %v2522_v43, %v1174_v14  ;;  %v2392_v16 = vpop.f32.mrb[72].mxu0  ;;  %v1452_v21 = vmax.f32 %v1332_v13, 0.0 }
 0x186   :  { %v2393_v17 = vpop.f32.mrb[73].mxu0 }
 0x187   :  { %v1453_v24 = vmax.f32 %v1335_v15, 0.0  ;;  %v2394_v28 = vadd.f32 %v2393_v17, %v2392_v16  ;;  %v2395_v32 = vpop.f32.mrb[74].mxu0  ;;  %v2529_v35 = vpop.f32.mrb[72].mxu1 }
 0x188   :  { %v2396_v33 = vpop.f32.mrb[75].mxu0  ;;  %v1355_v40 = vpop.f32.mrb[73].mxu1 }
 0x189   :  { %v1483_v37 = vpack.c.bf16 %v1453_v24, %v1452_v21  ;;  %v2397_v38 = vadd.f32 %v2396_v33, %v2395_v32  ;;  %v1179_v25 = vadd.f32 %v2394_v28, %v3582_v49  ;;  %v2530_v45 = vpop.f32.mrb[74].mxu1 }
 0x18a   :  { %v1358_v46 = vpop.f32.mrb[75].mxu1 }
 0x18b   :  { %v1340_v36 = vadd.f32 %v1339_v1, %v1179_v25  ;;  %2568 = vmatmul.mubr.bf16.vlgmr.msra.gmra.mrb[96].mxu1 %v1483_v37  ;;  %v1182_v30 = vadd.f32 %v2397_v38, %v3590_v54 }
 0x18d   :  { %v1343_v43 = vadd.f32 %v1342_v6, %v1182_v30  ;;  %v2398_v50 = vpop.f32.mrb[76].mxu0  ;;  %v1454_v52 = vmax.f32 %v1340_v36, 0.0 }
 0x18e   :  { %v2399_v51 = vpop.f32.mrb[77].mxu0 }
 0x18f   :  { %v1455_v53 = vmax.f32 %v1343_v43, 0.0  ;;  %v2400_v55 = vadd.f32 %v2399_v51, %v2398_v50  ;;  %v2401_v57 = vpop.f32.mrb[78].mxu0  ;;  %v3682_v61 = vpop.f32.mrb[76].mxu1 }
 0x190   :  { %v2402_v58 = vpop.f32.mrb[79].mxu0  ;;  %v1371_v7 = vpop.f32.mrb[77].mxu1 }
 0x191   :  { %v1484_v62 = vpack.c.bf16 %v1455_v53, %v1454_v52  ;;  %v1187_v49 = vadd.f32 %v2400_v55, %v3600_v9  ;;  %v2403_v5 = vadd.f32 %v2402_v58, %v2401_v57  ;;  %v3685_v10 = vpop.f32.mrb[78].mxu1 }
 0x192   :  { %v1374_v13 = vpop.f32.mrb[79].mxu1 }
 0x193   :  { %v1348_v1 = vadd.f32 %v2525_v2, %v1187_v49  ;;  %v1190_v54 = vadd.f32 %v2403_v5, %v3602_v12  ;;  %2571 = vmatprep.mubr.bf16.mxu1 %v1484_v62 }
 0x195   :  { %v1351_v14 = vadd.f32 %v2526_v11, %v1190_v54  ;;  %v2404_v6 = vpop.f32.mrb[80].mxu0  ;;  %v1456_v16 = vmax.f32 %v1348_v1, 0.0 }
 0x196   :  { %v2405_v15 = vpop.f32.mrb[81].mxu0 }
 0x197   :  { %v1457_v17 = vmax.f32 %v1351_v14, 0.0  ;;  %v2406_v21 = vadd.f32 %v2405_v15, %v2404_v6  ;;  %v2407_v24 = vpop.f32.mrb[82].mxu0  ;;  %v3688_v32 = vpop.f32.mrb[80].mxu1 }
 0x198   :  { %v2408_v28 = vpop.f32.mrb[83].mxu0  ;;  %v3691_v38 = vpop.f32.mrb[81].mxu1 }
 0x199   :  { %v2409_v9 = vadd.f32 %v2408_v28, %v2407_v24  ;;  %v1195_v33 = vadd.f32 %v2406_v21, %v3606_v27  ;;  %v1485_v37 = vpack.c.bf16 %v1457_v17, %v1456_v16  ;;  %v3693_v2 = vpop.f32.mrb[82].mxu1 }
 0x19a   :  { %v3696_v25 = vpop.f32.mrb[83].mxu1 }
 0x19b   :  { %v1356_v12 = vadd.f32 %v1355_v40, %v1195_v33  ;;  %2572 = vmatmul.mubr.bf16.gmra.mrb[100].mxu1 %v1485_v37  ;;  %v1198_v11 = vadd.f32 %v2409_v9, %v3608_v31 }
 0x19d   :  { %v1359_v36 = vadd.f32 %v1358_v46, %v1198_v11  ;;  %v2410_v30 = vpop.f32.mrb[84].mxu0  ;;  %v1458_v50 = vmax.f32 %v1356_v12, 0.0 }
 0x19e   :  { %v2411_v43 = vpop.f32.mrb[85].mxu0 }
 0x19f   :  { %v1459_v51 = vmax.f32 %v1359_v36, 0.0  ;;  %v2412_v52 = vadd.f32 %v2411_v43, %v2410_v30  ;;  %v2413_v53 = vpop.f32.mrb[86].mxu0  ;;  %v3698_v27 = vpop.f32.mrb[84].mxu1 }
 0x1a0   :  { %v2414_v55 = vpop.f32.mrb[87].mxu0  ;;  %v3701_v40 = vpop.f32.mrb[85].mxu1 }
 0x1a1   :  { %v1486_v57 = vpack.c.bf16 %v1459_v51, %v1458_v50  ;;  %v1203_v58 = vadd.f32 %v2412_v52, %v3612_v44  ;;  %v2415_v62 = vadd.f32 %v2414_v55, %v2413_v53  ;;  %v3703_v49 = vpop.f32.mrb[86].mxu1 }
 0x1a2   :  { %v3706_v5 = vpop.f32.mrb[87].mxu1 }
 0x1a3   :  { %v1364_v31 = vadd.f32 %v2529_v35, %v1203_v58  ;;  %v1206_v46 = vadd.f32 %v2415_v62, %v3614_v48  ;;  %2575 = vmatprep.mubr.bf16.mxu1 %v1486_v57 }
 0x1a5   :  { %v1367_v1 = vadd.f32 %v2530_v45, %v1206_v46  ;;  %v2416_v54 = vpop.f32.mrb[88].mxu0  ;;  %v1460_v6 = vmax.f32 %v1364_v31, 0.0 }
 0x1a6   :  { %v2417_v14 = vpop.f32.mrb[89].mxu0 }
 0x1a7   :  { %v1461_v15 = vmax.f32 %v1367_v1, 0.0  ;;  %v2418_v16 = vadd.f32 %v2417_v14, %v2416_v54  ;;  %v2419_v17 = vpop.f32.mrb[90].mxu0  ;;  %v3708_v44 = vpop.f32.mrb[88].mxu1 }
 0x1a8   :  { %v2420_v21 = vpop.f32.mrb[91].mxu0  ;;  %v3711_v35 = vpop.f32.mrb[89].mxu1 }
 0x1a9   :  { %v2421_v24 = vadd.f32 %v2420_v21, %v2419_v17  ;;  %v1211_v28 = vadd.f32 %v2418_v16, %v3618_v63  ;;  %v1487_v9 = vpack.c.bf16 %v1461_v15, %v1460_v6  ;;  %v3713_v48 = vpop.f32.mrb[90].mxu1 }
 0x1aa   :  { %v3716_v37 = vpop.f32.mrb[91].mxu1 }
 0x1ab   :  { %v1372_v33 = vadd.f32 %v1371_v7, %v1211_v28  ;;  %2576 = vmatmul.mubr.bf16.gmra.mrb[104].mxu1 %v1487_v9  ;;  %v1214_v45 = vadd.f32 %v2421_v24, %v3620_v3 }
 0x1ad   :  { %v1375_v12 = vadd.f32 %v1374_v13, %v1214_v45  ;;  %v2422_v11 = vpop.f32.mrb[92].mxu0  ;;  %v1462_v30 = vmax.f32 %v1372_v33, 0.0 }
 0x1ae   :  { %v2423_v36 = vpop.f32.mrb[93].mxu0 }
 0x1af   :  { %v1463_v43 = vmax.f32 %v1375_v12, 0.0  ;;  %v2424_v50 = vadd.f32 %v2423_v36, %v2422_v11  ;;  %v2425_v51 = vpop.f32.mrb[94].mxu0  ;;  %v3718_v63 = vpop.f32.mrb[92].mxu1 }
 0x1b0   :  { %v2426_v52 = vpop.f32.mrb[95].mxu0  ;;  %v3721_v7 = vpop.f32.mrb[93].mxu1 }
 0x1b1   :  { %v1488_v53 = vpack.c.bf16 %v1463_v43, %v1462_v30  ;;  %v1219_v55 = vadd.f32 %v2424_v50, %v3624_v19  ;;  %v2427_v57 = vadd.f32 %v2426_v52, %v2425_v51  ;;  %v3723_v58 = vpop.f32.mrb[94].mxu1 }
 0x1b2   :  { %v3727_v62 = vpop.f32.mrb[95].mxu1 }
 0x1b3   :  { %v1380_v3 = vadd.f32 %v3682_v61, %v1219_v55  ;;  %v1222_v13 = vadd.f32 %v2427_v57, %v3626_v22  ;;  %2579 = vmatprep.mubr.bf16.mxu1 %v1488_v53 }
 0x1b5   :  { %v1383_v31 = vadd.f32 %v3685_v10, %v1222_v13  ;;  %v2428_v46 = vpop.f32.mrb[96].mxu0  ;;  %v1464_v54 = vmax.f32 %v1380_v3, 0.0 }
 0x1b6   :  { %v2429_v1 = vpop.f32.mrb[97].mxu0 }
 0x1b7   :  { %v1465_v14 = vmax.f32 %v1383_v31, 0.0  ;;  %v2430_v6 = vadd.f32 %v2429_v1, %v2428_v46  ;;  %v2431_v19 = vpop.f32.mrb[98].mxu0 }
 0x1b8   :  { %v2432_v15 = vpop.f32.mrb[99].mxu0 }
 0x1b9   :  { %v2433_v16 = vadd.f32 %v2432_v15, %v2431_v19  ;;  %v1227_v17 = vadd.f32 %v2430_v6, %v3630_v39  ;;  %v1489_v21 = vpack.c.bf16 %v1465_v14, %v1464_v54 }
 0x1bb   :  { %v1388_v61 = vadd.f32 %v3691_v38, %v1227_v17  ;;  %2580 = vmatmul.mubr.bf16.gmra.mrb[108].mxu1 %v1489_v21  ;;  %v1230_v22 = vadd.f32 %v2433_v16, %v3632_v42 }
 0x1bd   :  { %v1391_v24 = vadd.f32 %v3696_v25, %v1230_v22  ;;  %v2434_v28 = vpop.f32.mrb[100].mxu0  ;;  %v1466_v9 = vmax.f32 %v1388_v61, 0.0 }
 0x1be   :  { %v2435_v10 = vpop.f32.mrb[101].mxu0 }
 0x1bf   :  { %v1467_v33 = vmax.f32 %v1391_v24, 0.0  ;;  %v2436_v45 = vadd.f32 %v2435_v10, %v2434_v28  ;;  %v2437_v12 = vpop.f32.mrb[102].mxu0 }
 0x1c0   :  { %v2438_v11 = vpop.f32.mrb[103].mxu0 }
 0x1c1   :  { %v1490_v36 = vpack.c.bf16 %v1467_v33, %v1466_v9  ;;  %v1235_v30 = vadd.f32 %v2436_v45, %v3636_v60  ;;  %v2439_v43 = vadd.f32 %v2438_v11, %v2437_v12 }
 0x1c3   :  { %v1396_v39 = vadd.f32 %v3688_v32, %v1235_v30  ;;  %v1238_v38 = vadd.f32 %v2439_v43, %v3638_v0  ;;  %2583 = vmatprep.mubr.bf16.mxu1 %v1490_v36 }
 0x1c5   :  { %v1399_v42 = vadd.f32 %v3693_v2, %v1238_v38  ;;  %v2440_v50 = vpop.f32.mrb[104].mxu0  ;;  %v1468_v51 = vmax.f32 %v1396_v39, 0.0 }
 0x1c6   :  { %v2441_v25 = vpop.f32.mrb[105].mxu0 }
 0x1c7   :  { %v1469_v52 = vmax.f32 %v1399_v42, 0.0  ;;  %v2442_v53 = vadd.f32 %v2441_v25, %v2440_v50  ;;  %v2443_v55 = vpop.f32.mrb[106].mxu0 }
 0x1c8   :  { %v2444_v57 = vpop.f32.mrb[107].mxu0 }
 0x1c9   :  { %v2445_v3 = vadd.f32 %v2444_v57, %v2443_v55  ;;  %v1243_v13 = vadd.f32 %v2442_v53, %v3642_v18  ;;  %v1491_v31 = vpack.c.bf16 %v1469_v52, %v1468_v51 }
 0x1cb   :  { %v1404_v60 = vadd.f32 %v3701_v40, %v1243_v13  ;;  %2584 = vmatmul.mubr.bf16.gmra.mrb[112].mxu1 %v1491_v31  ;;  %v1246_v32 = vadd.f32 %v2445_v3, %v3644_v23 }
 0x1cd   :  { %v1407_v0 = vadd.f32 %v3706_v5, %v1246_v32  ;;  %v2446_v46 = vpop.f32.mrb[108].mxu0  ;;  %v1470_v1 = vmax.f32 %v1404_v60, 0.0 }
 0x1ce   :  { %v2447_v2 = vpop.f32.mrb[109].mxu0 }
 0x1cf   :  { %v1471_v54 = vmax.f32 %v1407_v0, 0.0  ;;  %v2448_v14 = vadd.f32 %v2447_v2, %v2446_v46  ;;  %v2449_v6 = vpop.f32.mrb[110].mxu0 }
 0x1d0   :  { %v2450_v19 = vpop.f32.mrb[111].mxu0 }
 0x1d1   :  { %v1492_v15 = vpack.c.bf16 %v1471_v54, %v1470_v1  ;;  %v1251_v16 = vadd.f32 %v2448_v14, %v3648_v41  ;;  %v2451_v17 = vadd.f32 %v2450_v19, %v2449_v6 }
 0x1d3   :  { %v1412_v18 = vadd.f32 %v3698_v27, %v1251_v16  ;;  %v1254_v40 = vadd.f32 %v2451_v17, %v3650_v47  ;;  %2587 = vmatprep.mubr.bf16.mxu1 %v1492_v15  ;;  %v3765_v17 = vld [vmem:[%s3815_s4] ss:$0 sm:$0xff]  ;;  %s2683_s4 = smov [#allocation2]  }
 0x1d4   :  { %s1895_s17 = sshll.u32 %s2683_s4, 4  ;;  %s1896_s17 = int_to_ptr.vmem [resolvable:$true] %s1895_s17 }
 0x1d5   :  { %v1415_v23 = vadd.f32 %v3703_v49, %v1254_v40  ;;  %v2452_v21 = vpop.f32.mrb[112].mxu0  ;;  %v1472_v61 = vmax.f32 %v1412_v18, 0.0  ;;  %s2659_s18 = scalar_lea.vmem %s1896_s17, 2048  ;;  %p2664_p1 = scmp.lt.s32.totalorder %s1896_s17, %s1896_s17 }
 0x1d6   :  { %v2453_v5 = vpop.f32.mrb[113].mxu0  ;;  %p2660_p0 = scmp.ne.s32.totalorder %s1896_s17, %s2659_s18  ;;  %p2665_p2 = scmp.lt.s32.totalorder %s2659_s18, %s2659_s18 }
 0x1d7   :  { %v1473_v22 = vmax.f32 %v1415_v23, 0.0  ;;  %v2454_v24 = vadd.f32 %v2453_v5, %v2452_v21  ;;  %v2455_v28 = vpop.f32.mrb[114].mxu0 }
 0x1d8   :  { %v2456_v10 = vpop.f32.mrb[115].mxu0  ;;  %p2666_p3 = por %p2665_p2, %p2664_p1 }
 0x1d9   :  { %v2457_v9 = vadd.f32 %v2456_v10, %v2455_v28  ;;  %v1259_v33 = vadd.f32 %v2454_v24, %v3654_v4  ;;  %v1493_v45 = vpack.c.bf16 %v1473_v22, %v1472_v61 }
 0x1da   :  { %p2667_p4 = pnand %p2666_p3, %p2660_p0 }
 0x1db   :  { %v1420_v41 = vadd.f32 %v3711_v35, %v1259_v33  ;;  %2588 = vmatmul.mubr.bf16.gmra.mrb[116].mxu1 %v1493_v45  ;;  %v1262_v27 = vadd.f32 %v2457_v9, %v3656_v8 }
 0x1dd   :  { %v1423_v47 = vadd.f32 %v3716_v37, %v1262_v27  ;;  %v2458_v12 = vpop.f32.mrb[116].mxu0  ;;  %v1474_v11 = vmax.f32 %v1420_v41, 0.0 }
 0x1de   :  { %v2459_v49 = vpop.f32.mrb[117].mxu0 }
 0x1df   :  { %v1475_v36 = vmax.f32 %v1423_v47, 0.0  ;;  %v2460_v30 = vadd.f32 %v2459_v49, %v2458_v12  ;;  %v2461_v43 = vpop.f32.mrb[118].mxu0 }
 0x1e0   :  { %v2462_v39 = vpop.f32.mrb[119].mxu0 }
 0x1e1   :  { %v1494_v38 = vpack.c.bf16 %v1475_v36, %v1474_v11  ;;  %v1267_v42 = vadd.f32 %v2460_v30, %v3660_v29  ;;  %v2463_v50 = vadd.f32 %v2462_v39, %v2461_v43 }
 0x1e3   :  { %v1428_v4 = vadd.f32 %v3708_v44, %v1267_v42  ;;  %v1270_v35 = vadd.f32 %v2463_v50, %v3662_v34  ;;  %2591 = vmatprep.mubr.bf16.mxu1 %v1494_v38 }
 0x1e5   :  { %v1431_v8 = vadd.f32 %v3713_v48, %v1270_v35  ;;  %v2464_v25 = vpop.f32.mrb[120].mxu0  ;;  %v1476_v51 = vmax.f32 %v1428_v4, 0.0 }
 0x1e6   :  { %v2465_v37 = vpop.f32.mrb[121].mxu0 }
 0x1e7   :  { %v1477_v52 = vmax.f32 %v1431_v8, 0.0  ;;  %v2466_v53 = vadd.f32 %v2465_v37, %v2464_v25  ;;  %v2467_v55 = vpop.f32.mrb[122].mxu0 }
 0x1e8   :  { %v2468_v57 = vpop.f32.mrb[123].mxu0 }
 0x1e9   :  { %v2469_v3 = vadd.f32 %v2468_v57, %v2467_v55  ;;  %v1275_v13 = vadd.f32 %v2466_v53, %v3666_v56  ;;  %v1495_v31 = vpack.c.bf16 %v1477_v52, %v1476_v51 }
 0x1eb   :  { %v1436_v29 = vadd.f32 %v3721_v7, %v1275_v13  ;;  %2592 = vmatmul.mubr.bf16.gmra.mrb[120].mxu1 %v1495_v31  ;;  %v1278_v44 = vadd.f32 %v2469_v3, %v3668_v59 }
 0x1ed   :  { %v1439_v34 = vadd.f32 %v3727_v62, %v1278_v44  ;;  %v2470_v60 = vpop.f32.mrb[124].mxu0  ;;  %v1478_v32 = vmax.f32 %v1436_v29, 0.0 }
 0x1ee   :  { %v2471_v48 = vpop.f32.mrb[125].mxu0 }
 0x1ef   :  { %v1479_v0 = vmax.f32 %v1439_v34, 0.0  ;;  %v2472_v46 = vadd.f32 %v2471_v48, %v2470_v60  ;;  %v2473_v2 = vpop.f32.mrb[126].mxu0 }
 0x1f0   :  { %v2474_v1 = vpop.f32.mrb[127].mxu0 }
 0x1f1   :  { %v1496_v54 = vpack.c.bf16 %v1479_v0, %v1478_v32  ;;  %v1283_v14 = vadd.f32 %v2472_v46, %v3672_v20  ;;  %v2475_v6 = vadd.f32 %v2474_v1, %v2473_v2 }
 0x1f3   :  { %v1444_v56 = vadd.f32 %v3718_v63, %v1283_v14  ;;  %v1286_v7 = vadd.f32 %v2475_v6, %v3674_v26  ;;  %2595 = vmatprep.mubr.bf16.mxu1 %v1496_v54 }
 0x1f5   :  { %v1447_v59 = vadd.f32 %v3723_v58, %v1286_v7  ;;  %v1480_v19 = vmax.f32 %v1444_v56, 0.0 }
 0x1f7   :  { %v1481_v62 = vmax.f32 %v1447_v59, 0.0 }
 0x1f9   :  { %v1497_v15 = vpack.c.bf16 %v1481_v62, %v1480_v19 }
 0x1fb   :  { %2596 = vmatmul.mubr.bf16.gmra.mrb[124].mxu1 %v1497_v15 }
 0x25e   :  { %v2569_v16 = vpop.f32.mrb[96].mxu1 }
 0x25f   :  { %v1603_v18 = vpop.f32.mrb[97].mxu1  ;;  %v1612_v40 = vadd.f32 %v2569_v16, %v3765_v17 }
 0x260   :  { %v2570_v20 = vpop.f32.mrb[98].mxu1  ;;  %v1604_v23 = vadd.f32 %v3765_v17, %v1603_v18 }
 0x261   :  { %v1615_v63 = vadd.f32 %v2570_v20, %v3765_v17  ;;  %v1606_v26 = vpop.f32.mrb[99].mxu1 }
 0x262   :  { %v1607_v58 = vadd.f32 %v3765_v17, %v1606_v26 }
 0x263   :  { %v2053_v21 = vpack.c.bf16 %v1615_v63, %v1612_v40 }
 0x264   :  { %v2048_v5 = vpack.c.bf16 %v1607_v58, %v1604_v23 }
 0x265   :  { %2125 = vst [vmem:[#allocation2 + $0x8] sm:$0xff] %v2053_v21  }
 0x266   :  { %2049 = vst [vmem:[#allocation2] sm:$0xff] %v2048_v5  }
 0x26e   :  { %v2573_v61 = vpop.f32.mrb[100].mxu1 }
 0x26f   :  { %v1619_v22 = vpop.f32.mrb[101].mxu1  ;;  %v1628_v28 = vadd.f32 %v2573_v61, %v3765_v17 }
 0x270   :  { %v2574_v24 = vpop.f32.mrb[102].mxu1  ;;  %v1620_v33 = vadd.f32 %v3765_v17, %v1619_v22 }
 0x271   :  { %v1631_v10 = vadd.f32 %v2574_v24, %v3765_v17  ;;  %v1622_v9 = vpop.f32.mrb[103].mxu1 }
 0x272   :  { %v1623_v45 = vadd.f32 %v3765_v17, %v1622_v9 }
 0x273   :  { %v2063_v41 = vpack.c.bf16 %v1631_v10, %v1628_v28 }
 0x274   :  { %v2058_v27 = vpack.c.bf16 %v1623_v45, %v1620_v33 }
 0x275   :  { %2127 = vst [vmem:[#allocation2 + $0x18] sm:$0xff] %v2063_v41  }
 0x276   :  { %2126 = vst [vmem:[#allocation2 + $0x10] sm:$0xff] %v2058_v27  }
 0x27e   :  { %v2577_v47 = vpop.f32.mrb[104].mxu1 }
 0x27f   :  { %v1635_v12 = vpop.f32.mrb[105].mxu1  ;;  %v1644_v11 = vadd.f32 %v2577_v47, %v3765_v17 }
 0x280   :  { %v2578_v49 = vpop.f32.mrb[106].mxu1  ;;  %v1636_v43 = vadd.f32 %v3765_v17, %v1635_v12 }
 0x281   :  { %v1647_v36 = vadd.f32 %v2578_v49, %v3765_v17  ;;  %v1638_v30 = vpop.f32.mrb[107].mxu1 }
 0x282   :  { %v1639_v39 = vadd.f32 %v3765_v17, %v1638_v30 }
 0x283   :  { %v2073_v38 = vpack.c.bf16 %v1647_v36, %v1644_v11 }
 0x284   :  { %v2068_v42 = vpack.c.bf16 %v1639_v39, %v1636_v43 }
 0x285   :  { %2129 = vst [vmem:[#allocation2 + $0x28] sm:$0xff] %v2073_v38  }
 0x286   :  { %2128 = vst [vmem:[#allocation2 + $0x20] sm:$0xff] %v2068_v42  }
 0x28e   :  { %v2581_v50 = vpop.f32.mrb[108].mxu1 }
 0x28f   :  { %v1651_v4 = vpop.f32.mrb[109].mxu1  ;;  %v1660_v8 = vadd.f32 %v2581_v50, %v3765_v17 }
 0x290   :  { %v2582_v35 = vpop.f32.mrb[110].mxu1  ;;  %v1652_v51 = vadd.f32 %v3765_v17, %v1651_v4 }
 0x291   :  { %v1663_v25 = vadd.f32 %v2582_v35, %v3765_v17  ;;  %v1654_v37 = vpop.f32.mrb[111].mxu1 }
 0x292   :  { %v1655_v52 = vadd.f32 %v3765_v17, %v1654_v37 }
 0x293   :  { %v2083_v53 = vpack.c.bf16 %v1663_v25, %v1660_v8 }
 0x294   :  { %v2078_v55 = vpack.c.bf16 %v1655_v52, %v1652_v51 }
 0x295   :  { %2131 = vst [vmem:[#allocation2 + $0x38] sm:$0xff] %v2083_v53  }
 0x296   :  { %2130 = vst [vmem:[#allocation2 + $0x30] sm:$0xff] %v2078_v55  }
 0x29e   :  { %v2585_v57 = vpop.f32.mrb[112].mxu1 }
 0x29f   :  { %v1667_v3 = vpop.f32.mrb[113].mxu1  ;;  %v1676_v31 = vadd.f32 %v2585_v57, %v3765_v17 }
 0x2a0   :  { %v2586_v13 = vpop.f32.mrb[114].mxu1  ;;  %v1668_v34 = vadd.f32 %v3765_v17, %v1667_v3 }
 0x2a1   :  { %v1679_v29 = vadd.f32 %v2586_v13, %v3765_v17  ;;  %v1670_v44 = vpop.f32.mrb[115].mxu1 }
 0x2a2   :  { %v1671_v60 = vadd.f32 %v3765_v17, %v1670_v44 }
 0x2a3   :  { %v2093_v48 = vpack.c.bf16 %v1679_v29, %v1676_v31 }
 0x2a4   :  { %v2088_v32 = vpack.c.bf16 %v1671_v60, %v1668_v34 }
 0x2a5   :  { %2133 = vst [vmem:[#allocation2 + $0x48] sm:$0xff] %v2093_v48  }
 0x2a6   :  { %2132 = vst [vmem:[#allocation2 + $0x40] sm:$0xff] %v2088_v32  }
 0x2ae   :  { %v2589_v0 = vpop.f32.mrb[116].mxu1 }
 0x2af   :  { %v1683_v46 = vpop.f32.mrb[117].mxu1  ;;  %v1692_v1 = vadd.f32 %v2589_v0, %v3765_v17 }
 0x2b0   :  { %v2590_v2 = vpop.f32.mrb[118].mxu1  ;;  %v1684_v6 = vadd.f32 %v3765_v17, %v1683_v46 }
 0x2b1   :  { %v1695_v54 = vadd.f32 %v2590_v2, %v3765_v17  ;;  %v1686_v14 = vpop.f32.mrb[119].mxu1 }
 0x2b2   :  { %v1687_v56 = vadd.f32 %v3765_v17, %v1686_v14 }
 0x2b3   :  { %v2103_v7 = vpack.c.bf16 %v1695_v54, %v1692_v1 }
 0x2b4   :  { %v2098_v59 = vpack.c.bf16 %v1687_v56, %v1684_v6 }
 0x2b5   :  { %2135 = vst [vmem:[#allocation2 + $0x58] sm:$0xff] %v2103_v7  }
 0x2b6   :  { %2134 = vst [vmem:[#allocation2 + $0x50] sm:$0xff] %v2098_v59  }
 0x2be   :  { %v2593_v19 = vpop.f32.mrb[120].mxu1 }
 0x2bf   :  { %v1699_v62 = vpop.f32.mrb[121].mxu1  ;;  %v1708_v16 = vadd.f32 %v2593_v19, %v3765_v17 }
 0x2c0   :  { %v2594_v15 = vpop.f32.mrb[122].mxu1  ;;  %v1700_v40 = vadd.f32 %v3765_v17, %v1699_v62 }
 0x2c1   :  { %v1711_v18 = vadd.f32 %v2594_v15, %v3765_v17  ;;  %v1702_v20 = vpop.f32.mrb[123].mxu1 }
 0x2c2   :  { %v1703_v63 = vadd.f32 %v3765_v17, %v1702_v20 }
 0x2c3   :  { %v2113_v26 = vpack.c.bf16 %v1711_v18, %v1708_v16 }
 0x2c4   :  { %v2108_v23 = vpack.c.bf16 %v1703_v63, %v1700_v40 }
 0x2c5   :  { %2137 = vst [vmem:[#allocation2 + $0x68] sm:$0xff] %v2113_v26  }
 0x2c6   :  { %2136 = vst [vmem:[#allocation2 + $0x60] sm:$0xff] %v2108_v23  }
 0x2ce   :  { %v2597_v58 = vpop.f32.mrb[124].mxu1 }
 0x2cf   :  { %v1715_v21 = vpop.f32.mrb[125].mxu1  ;;  %v1724_v61 = vadd.f32 %v2597_v58, %v3765_v17 }
 0x2d0   :  { %v2598_v5 = vpop.f32.mrb[126].mxu1  ;;  %v1716_v28 = vadd.f32 %v3765_v17, %v1715_v21 }
 0x2d1   :  { %v1727_v22 = vadd.f32 %v2598_v5, %v3765_v17  ;;  %v1718_v24 = vpop.f32.mrb[127].mxu1 }
 0x2d2   :  { %v1719_v10 = vadd.f32 %v3765_v17, %v1718_v24 }
 0x2d3   :  { %v2123_v9 = vpack.c.bf16 %v1727_v22, %v1724_v61 }
 0x2d4   :  { %v2118_v33 = vpack.c.bf16 %v1719_v10, %v1716_v28 }
 0x2d5   :  { %2139 = vst [vmem:[#allocation2 + $0x78] sm:$0xff] %v2123_v9  }
 0x2d6   :  { %2138 = vst [vmem:[#allocation2 + $0x70] sm:$0xff] %v2118_v33  }
 0x2d7   :  { %2670 = shalt.err (!%p2667_p4)
}
 0x2d8   :  { %s2671_s21 = scalar_lea.hbm %s3816_s5, 2048 }
 0x2d9   :  { %p2672_p5 = scmp.ne.s32.totalorder %s3816_s5, %s2671_s21  ;;  %p2675_p6 = scmp.lt.u32.totalorder %s2671_s21, %s3816_s5 }
 0x2db   :  { %p2677_p7 = pnand %p2675_p6, %p2672_p5 }
 0x2dd   :  { %2680 = shalt.err (!%p2677_p7)
}
 0x2de   :  { %s2684_s26 = smov 64   ;;  %s2685_s27 = smov 4  }
 0x2df   :  { %1901 = dma.vmem_to_hbm [thread:$0]  %s1896_s17, 2048, %s3816_s5, [#allocation3], %s2684_s26, %s2684_s26, %s2685_s27  }
 0x2e0   :  { %2681 = dma.done.wait [#allocation3], 2048  }
 0x2e1   :  { %2682 = vsyncadd [#allocation3], 4294965248 }
 0x2e2   :  { %1905 = vsyncpa [#allocation3], 1 }

</bundles_post_ra>
